<compile_context>
chip_gen: v7x
topology: tpu7x:2x2x1
jax: 0.10.0
libtpu: 0.0.40
codegen_flags: <defaults>
</compile_context>

<pallas_src>
from functools import partial

import jax
import jax.numpy as jnp
from jax import lax
from jax.experimental import pallas as pl
from jax.experimental.pallas import tpu as pltpu


_VMEM_LIMIT = 40 * 1024 * 1024  # headroom below v7x's 64 MiB physical VMEM

# Lane order of the 4 stride-2 phases (phase_h, phase_w) inside the 256-lane phase
# buffer.  This particular order makes every conv2 (dh, dw) tap-group a CONTIGUOUS
# lane slice (see _conv2_groups).
_PHASE_ORDER = ((0, 1), (0, 0), (1, 0), (1, 1))


def _round_up(x, m):
    return ((x + m - 1) // m) * m


def _conv2_groups():
    """Static metadata for the 9 conv2 tap groups.

    conv2 (k=5, s=2, p=2) on y1 decomposes, per output pixel (oh, ow), into taps
    (ki, kj) that read phase (ki%2, kj%2) of y1 at phase-index (oh + ki//2 - 1,
    ow + kj//2 - 1).  Taps sharing the offset (dh, dw) = (ki//2-1, kj//2-1) read the
    SAME row-shifted slice of the phase buffer, just different lane blocks, so they
    merge into a single matmul with K = 64 * (#lane blocks).

    Returns (groups, tap_order):
      groups:   tuple of (row_shift_in_positions, lane_start, K, weight_row_offset)
      tap_order: the (ki, kj) taps in the order their (64,128) blocks are packed
                 into the (1600,128) conv2 weight matrix.
    """
    groups, tap_order, row_off = [], [], 0
    for dh in (-1, 0, 1):
        for dw in (-1, 0, 1):
            lanes = [L for L, (ph, pw) in enumerate(_PHASE_ORDER)
                     if 0 <= 2 * dh + 2 + ph < 5 and 0 <= 2 * dw + 2 + pw < 5]
            assert lanes == list(range(lanes[0], lanes[0] + len(lanes)))
            for L in lanes:
                ph, pw = _PHASE_ORDER[L]
                tap_order.append((2 * dh + 2 + ph, 2 * dw + 2 + pw))
            k = 64 * len(lanes)
            groups.append((8 * dh + dw, 64 * lanes[0], k, row_off))
            row_off += k
    assert row_off == 1600 and len(tap_order) == 25
    return tuple(groups), tuple(tap_order)


_GROUPS, _W2_TAP_ORDER = _conv2_groups()


# ----------------------------------------------------------------------------
# Fused kernel: conv1 + relu + conv2 + relu + linear(6272->1) + sigmoid
# ----------------------------------------------------------------------------
def _discriminator_kernel(p1_ref, w1_ref, b1_ref, w2_ref, b2_ref, wl_ref, bl_ref,
                          o_ref, y_ref, acc_ref, *, tb):
    padf = 9 * tb           # front/back padding rows of the phase buffer
    rows2 = 56 * tb         # conv2/linear rows per tile: 7x8 positions, image-minor

    # -- zero the conv-padding regions of the phase buffer (front/back pads and the
    #    width pad column).  Done every step so megacore grid-sharding stays correct.
    zpad = jnp.zeros((padf, 256), jnp.bfloat16)
    y_ref[0:padf, :] = zpad
    y_ref[padf + rows2:padf + rows2 + padf, :] = zpad
    zcol = jnp.zeros((tb, 256), jnp.bfloat16)
    for p in range(7):
        s = padf + (p * 8 + 7) * tb
        y_ref[s:s + tb, :] = zcol

    # -- conv1: one (49*tb, 128) @ (128, 256) block-diagonal matmul produces all 4
    #    stride-2 phases of the 14x14x64 output side-by-side in lanes.
    h1 = jnp.dot(p1_ref[0], w1_ref[...], preferred_element_type=jnp.float32)
    h1 = jnp.maximum(h1 + b1_ref[...], 0.0).astype(jnp.bfloat16)     # (49*tb, 256)

    # Scatter the 7x7 phase grid into the 7x8 (zero pad column) layout.
    for p in range(7):
        dst = padf + (p * 8) * tb
        y_ref[dst:dst + 7 * tb, :] = h1[p * 7 * tb:(p + 1) * 7 * tb, :]

    # -- conv2: 9 grouped matmuls over static row/lane-shifted slices of the phase
    #    buffer, accumulated into the f32 scratch (3 groups per accumulate round).
    n_groups = len(_GROUPS)
    grp = None
    for g, (shift, lane, k, w_off) in enumerate(_GROUPS):
        src = y_ref[padf + shift * tb:padf + shift * tb + rows2, lane:lane + k]
        d = jnp.dot(src, w2_ref[w_off:w_off + k, :],
                    preferred_element_type=jnp.float32)              # (56*tb, 128)
        grp = d if g % 3 == 0 else grp + d
        if g % 3 == 2 or g == n_groups - 1:
            if g < 3:
                acc_ref[...] = grp
            else:
                acc_ref[...] += grp

    # -- bias + relu + linear(7*7*128 -> 1) + sigmoid
    y2 = jnp.maximum(acc_ref[...] + b2_ref[...], 0.0)                 # (56*tb, 128)
    y2w = y2.reshape(56, tb, 128) * wl_ref[...]                       # wl is (56,1,128)
    logits = jnp.sum(jnp.sum(y2w, axis=2, keepdims=True), axis=0)     # (tb, 1)
    logits = logits + bl_ref[...]                                     # (1,1) broadcast
    o_ref[...] = (1.0 / (1.0 + jnp.exp(-logits))).astype(jnp.float32)


# ----------------------------------------------------------------------------
# XLA glue: conv1 im2col (phase blocked) and weight repacking -- tiny layout work
# ----------------------------------------------------------------------------
def _build_conv1_patches(x_nchw, tb):
    """Phase-blocked conv1 patches, shaped (nb, 49*tb, 128) bf16.

    Row (within a tile) = (p*7 + q)*tb + img; lanes = [32*L : 32*L+32) hold the 25
    (zero-padded to 32) taps of phase _PHASE_ORDER[L] at phase-index (p, q).
    """
    n = x_nchw.shape[0]
    n_pad = _round_up(n, tb)
    x = x_nchw[:, 0, :, :].astype(jnp.float32)                    # (n, 28, 28)
    x = jnp.pad(x, ((0, n_pad - n), (2, 2), (2, 2)))               # (n_pad, 32, 32)
    blocks = []
    for ph, pw in _PHASE_ORDER:
        taps = []
        for ki in range(5):
            for kj in range(5):
                r0, c0 = 2 * ph + ki, 2 * pw + kj
                taps.append(x[:, r0:r0 + 25:4, c0:c0 + 25:4])      # (n_pad, 7, 7)
        taps += [jnp.zeros_like(taps[0])] * 7                      # pad K 25 -> 32
        blocks.append(jnp.stack(taps, axis=-1))                    # (n_pad, 7, 7, 32)
    p1 = jnp.concatenate(blocks, axis=-1)                          # (n_pad, 7, 7, 128)
    nb = n_pad // tb
    p1 = p1.reshape(nb, tb, 7, 7, 128).transpose(0, 2, 3, 1, 4)    # (nb, 7, 7, tb, 128)
    return p1.reshape(nb, 49 * tb, 128).astype(jnp.bfloat16), n_pad


def _prep_params(params):
    # conv1: (O=64, I=1, 5, 5) -> (25, 64) -> pad K to 32 -> 4-phase block diagonal.
    w1 = jnp.transpose(params["w1"], (2, 3, 1, 0)).reshape(25, 64)
    w1 = jnp.pad(w1, ((0, 7), (0, 0)))                                       # (32, 64)
    w1b = jnp.einsum("LM,to->LtMo", jnp.eye(4, dtype=w1.dtype), w1)
    w1b = w1b.reshape(128, 256).astype(jnp.bfloat16)
    b1t = jnp.tile(params["b1"].astype(jnp.float32), 4).reshape(1, 256)

    # conv2: (O=128, I=64, 5, 5) -> 25 (64,128) tap blocks packed in group order.
    w2 = jnp.transpose(params["w2"], (2, 3, 1, 0))                            # (5,5,64,128)
    w2g = jnp.concatenate([w2[ki, kj] for ki, kj in _W2_TAP_ORDER], axis=0)
    w2g = w2g.astype(jnp.bfloat16)                                            # (1600,128)
    b2r = params["b2"].astype(jnp.float32).reshape(1, 128)

    # linear: torch flatten order is (c, oh, ow) -> (oh, ow padded to 8, c).
    wl = jnp.transpose(params["wl"].reshape(128, 7, 7), (1, 2, 0))            # (7,7,128)
    wl = jnp.pad(wl, ((0, 0), (0, 1), (0, 0)))                                # (7,8,128)
    wl56 = wl.reshape(56, 1, 128).astype(jnp.float32)
    blr = params["bl"].astype(jnp.float32).reshape(1, 1)
    return w1b, b1t, w2g, b2r, wl56, blr


# ----------------------------------------------------------------------------
# Discriminator forward
# ----------------------------------------------------------------------------
def discriminator_forward(params, x_nchw, *, tb=64):
    n = x_nchw.shape[0]
    assert x_nchw.shape[1:] == (1, 28, 28), "discriminator expects (N, 1, 28, 28)"
    tb = _round_up(max(8, min(tb, _round_up(n, 8))), 8)
    p1, n_pad = _build_conv1_patches(x_nchw, tb)
    nb = n_pad // tb
    w1b, b1t, w2g, b2r, wl56, blr = _prep_params(params)

    kernel = partial(_discriminator_kernel, tb=tb)
    out = pl.pallas_call(
        kernel,
        out_shape=jax.ShapeDtypeStruct((n_pad, 1), jnp.float32),
        grid_spec=pltpu.PrefetchScalarGridSpec(
            num_scalar_prefetch=0,
            grid=(nb,),
            in_specs=[
                pl.BlockSpec((1, 49 * tb, 128), lambda i: (i, 0, 0)),   # conv1 patches (per tile)
                pl.BlockSpec((128, 256), lambda i: (0, 0)),             # conv1 weight (resident)
                pl.BlockSpec((1, 256), lambda i: (0, 0)),               # conv1 bias
                pl.BlockSpec((1600, 128), lambda i: (0, 0)),            # conv2 weights (resident)
                pl.BlockSpec((1, 128), lambda i: (0, 0)),               # conv2 bias
                pl.BlockSpec((56, 1, 128), lambda i: (0, 0, 0)),        # linear weight (resident)
                pl.BlockSpec((1, 1), lambda i: (0, 0)),                 # linear bias
            ],
            out_specs=pl.BlockSpec((tb, 1), lambda i: (i, 0)),
            scratch_shapes=[
                pltpu.VMEM((74 * tb, 256), jnp.bfloat16),               # padded phase buffer
                pltpu.VMEM((56 * tb, 128), jnp.float32),                # conv2 accumulator
            ],
        ),
        compiler_params=pltpu.CompilerParams(
            dimension_semantics=("parallel",),
            vmem_limit_bytes=_VMEM_LIMIT,
        ),
    )(p1, w1b, b1t, w2g, b2r, wl56, blr)
    return out[:n]


# ----------------------------------------------------------------------------
# Pure-JAX f32 reference for the correctness check
# ----------------------------------------------------------------------------
def reference_forward(params, x_nchw):
    y = lax.conv_general_dilated(x_nchw, params["w1"], (2, 2), ((2, 2), (2, 2)),
                                 dimension_numbers=("NCHW", "OIHW", "NCHW"))
    y = jnp.maximum(y + params["b1"][None, :, None, None], 0.0)
    y = lax.conv_general_dilated(y, params["w2"], (2, 2), ((2, 2), (2, 2)),
                                 dimension_numbers=("NCHW", "OIHW", "NCHW"))
    y = jnp.maximum(y + params["b2"][None, :, None, None], 0.0)
    flat = y.reshape(y.shape[0], 7 * 7 * 128)
    logits = flat @ params["wl"].T + params["bl"]
    return 1.0 / (1.0 + jnp.exp(-logits))


def init_params(key):
    k1, k2, k3, k4, k5, k6 = jax.random.split(key, 6)
    w1 = jax.random.normal(k1, (64, 1, 5, 5), jnp.float32) * 0.05     # torch OIHW
    b1 = jax.random.normal(k2, (64,), jnp.float32) * 0.05
    w2 = jax.random.normal(k3, (128, 64, 5, 5), jnp.float32) * 0.02
    b2 = jax.random.normal(k4, (128,), jnp.float32) * 0.02
    wl = jax.random.normal(k5, (1, 7 * 7 * 128), jnp.float32) * 0.01  # torch (out, in)
    bl = jax.random.normal(k6, (1,), jnp.float32) * 0.01
    return dict(w1=w1, b1=b1, w2=w2, b2=b2, wl=wl, bl=bl)


if __name__ == "__main__":
    key = jax.random.PRNGKey(0)
    pkey, xkey = jax.random.split(key)
    params = init_params(pkey)
    # Spatial size is fixed at 28x28 by the module's hardcoded 7*7*128 flatten.
    x = jax.random.normal(xkey, (2, 1, 28, 28), jnp.float32)

    fwd = jax.jit(partial(discriminator_forward, tb=64))
    out = jax.block_until_ready(fwd(params, x))
    ref = jax.block_until_ready(reference_forward(params, x))

    assert out.shape == (2, 1)
    assert bool(jnp.all((out >= 0.0) & (out <= 1.0)))
    assert float(jnp.max(jnp.abs(out - ref))) < 5e-2  # bf16 matmuls vs f32 reference
    print("KERNEL_OK")
</pallas_src>

<mosaic_0001>
module attributes {stable_mosaic.version = 11 : i64} {
  func.func @_discriminator_kernel(%arg0: i32, %arg1: memref<1x392x128xbf16, #tpu.memory_space<vmem>>, %arg2: memref<128x256xbf16, #tpu.memory_space<vmem>>, %arg3: memref<1x256xf32, #tpu.memory_space<vmem>>, %arg4: memref<1600x128xbf16, #tpu.memory_space<vmem>>, %arg5: memref<1x128xf32, #tpu.memory_space<vmem>>, %arg6: memref<56x1x128xf32, #tpu.memory_space<vmem>>, %arg7: memref<1x1xf32, #tpu.memory_space<vmem>>, %arg8: memref<8x1xf32, #tpu.memory_space<vmem>>, %arg9: memref<592x256xbf16, #tpu.memory_space<vmem>>, %arg10: memref<448x128xf32, #tpu.memory_space<vmem>>) attributes {dimension_semantics = [#tpu.dimension_semantics<parallel>], iteration_bounds = array<i64: 1>, scalar_prefetch = 0 : i64, scratch_operands = 2 : i64, tpu.core_type = #tpu.core_type<tc>, window_params = [{transform_indices = @transform_0, window_bounds = array<i64: 1, 392, 128>}, {pipeline_mode = #tpu.pipeline_mode<synchronous>, transform_indices = @transform_1, window_bounds = array<i64: 128, 256>}, {pipeline_mode = #tpu.pipeline_mode<synchronous>, transform_indices = @transform_2, window_bounds = array<i64: 1, 256>}, {pipeline_mode = #tpu.pipeline_mode<synchronous>, transform_indices = @transform_3, window_bounds = array<i64: 1600, 128>}, {pipeline_mode = #tpu.pipeline_mode<synchronous>, transform_indices = @transform_4, window_bounds = array<i64: 1, 128>}, {pipeline_mode = #tpu.pipeline_mode<synchronous>, transform_indices = @transform_5, window_bounds = array<i64: 56, 1, 128>}, {pipeline_mode = #tpu.pipeline_mode<synchronous>, transform_indices = @transform_6, window_bounds = array<i64: 1, 1>}, {transform_indices = @transform_7, window_bounds = array<i64: 8, 1>}]} {
    %cst = arith.constant 0.000000e+00 : bf16
    %0 = vector.broadcast %cst : bf16 to vector<72x256xbf16>
    %c0 = arith.constant 0 : index
    %c0_0 = arith.constant 0 : index
    %1 = vector.load %arg9[%c0, %c0_0] : memref<592x256xbf16, #tpu.memory_space<vmem>>, vector<72x256xbf16>
    tpu.vector_store %arg9[%c0, %c0_0], %0 {strides = array<i32>} : memref<592x256xbf16, #tpu.memory_space<vmem>>, vector<72x256xbf16>,
    %c520 = arith.constant 520 : index
    %c0_1 = arith.constant 0 : index
    %2 = vector.load %arg9[%c520, %c0_1] : memref<592x256xbf16, #tpu.memory_space<vmem>>, vector<72x256xbf16>
    tpu.vector_store %arg9[%c520, %c0_1], %0 {strides = array<i32>} : memref<592x256xbf16, #tpu.memory_space<vmem>>, vector<72x256xbf16>,
    %cst_2 = arith.constant 0.000000e+00 : bf16
    %3 = vector.broadcast %cst_2 : bf16 to vector<8x256xbf16>
    %c128 = arith.constant 128 : index
    %c0_3 = arith.constant 0 : index
    %4 = vector.load %arg9[%c128, %c0_3] : memref<592x256xbf16, #tpu.memory_space<vmem>>, vector<8x256xbf16>
    tpu.vector_store %arg9[%c128, %c0_3], %3 {strides = array<i32>} : memref<592x256xbf16, #tpu.memory_space<vmem>>, vector<8x256xbf16>,
    %c192 = arith.constant 192 : index
    %c0_4 = arith.constant 0 : index
    %5 = vector.load %arg9[%c192, %c0_4] : memref<592x256xbf16, #tpu.memory_space<vmem>>, vector<8x256xbf16>
    tpu.vector_store %arg9[%c192, %c0_4], %3 {strides = array<i32>} : memref<592x256xbf16, #tpu.memory_space<vmem>>, vector<8x256xbf16>,
    %c256 = arith.constant 256 : index
    %c0_5 = arith.constant 0 : index
    %6 = vector.load %arg9[%c256, %c0_5] : memref<592x256xbf16, #tpu.memory_space<vmem>>, vector<8x256xbf16>
    tpu.vector_store %arg9[%c256, %c0_5], %3 {strides = array<i32>} : memref<592x256xbf16, #tpu.memory_space<vmem>>, vector<8x256xbf16>,
    %c320 = arith.constant 320 : index
    %c0_6 = arith.constant 0 : index
    %7 = vector.load %arg9[%c320, %c0_6] : memref<592x256xbf16, #tpu.memory_space<vmem>>, vector<8x256xbf16>
    tpu.vector_store %arg9[%c320, %c0_6], %3 {strides = array<i32>} : memref<592x256xbf16, #tpu.memory_space<vmem>>, vector<8x256xbf16>,
    %c384 = arith.constant 384 : index
    %c0_7 = arith.constant 0 : index
    %8 = vector.load %arg9[%c384, %c0_7] : memref<592x256xbf16, #tpu.memory_space<vmem>>, vector<8x256xbf16>
    tpu.vector_store %arg9[%c384, %c0_7], %3 {strides = array<i32>} : memref<592x256xbf16, #tpu.memory_space<vmem>>, vector<8x256xbf16>,
    %c448 = arith.constant 448 : index
    %c0_8 = arith.constant 0 : index
    %9 = vector.load %arg9[%c448, %c0_8] : memref<592x256xbf16, #tpu.memory_space<vmem>>, vector<8x256xbf16>
    tpu.vector_store %arg9[%c448, %c0_8], %3 {strides = array<i32>} : memref<592x256xbf16, #tpu.memory_space<vmem>>, vector<8x256xbf16>,
    %c512 = arith.constant 512 : index
    %c0_9 = arith.constant 0 : index
    %10 = vector.load %arg9[%c512, %c0_9] : memref<592x256xbf16, #tpu.memory_space<vmem>>, vector<8x256xbf16>
    tpu.vector_store %arg9[%c512, %c0_9], %3 {strides = array<i32>} : memref<592x256xbf16, #tpu.memory_space<vmem>>, vector<8x256xbf16>,
    %c0_10 = arith.constant 0 : index
    %c0_11 = arith.constant 0 : index
    %c0_12 = arith.constant 0 : index
    %11 = vector.load %arg1[%c0_10, %c0_11, %c0_12] : memref<1x392x128xbf16, #tpu.memory_space<vmem>>, vector<1x392x128xbf16>
    %12 = vector.shape_cast %11 : vector<1x392x128xbf16> to vector<392x128xbf16>
    %c0_13 = arith.constant 0 : index
    %c0_14 = arith.constant 0 : index
    %13 = vector.load %arg2[%c0_13, %c0_14] : memref<128x256xbf16, #tpu.memory_space<vmem>>, vector<128x256xbf16>
    %cst_15 = arith.constant dense<0.000000e+00> : vector<392x256xf32>
    %14 = tpu.matmul %12, %13, %cst_15 {dimension_numbers = #tpu.dot_dimension_numbers<[1], [0], [0], [1], [0, 0, 1, 1], [], []>} : vector<392x128xbf16>, vector<128x256xbf16>, vector<392x256xf32> -> vector<392x256xf32>
    %c0_16 = arith.constant 0 : index
    %c0_17 = arith.constant 0 : index
    %15 = vector.load %arg3[%c0_16, %c0_17] : memref<1x256xf32, #tpu.memory_space<vmem>>, vector<1x256xf32>
    %16 = vector.broadcast %15 : vector<1x256xf32> to vector<392x256xf32>
    %17 = arith.addf %14, %16 : vector<392x256xf32>
    %cst_18 = arith.constant 0.000000e+00 : f32
    %18 = vector.broadcast %cst_18 : f32 to vector<392x256xf32>
    %19 = arith.maximumf %17, %18 : vector<392x256xf32>
    %20 = arith.truncf %19 : vector<392x256xf32> to vector<392x256xbf16>
    %21 = vector.extract_strided_slice %20 {offsets = [0, 0], sizes = [56, 256], strides = [1, 1]} : vector<392x256xbf16> to vector<56x256xbf16>
    %c72 = arith.constant 72 : index
    %c0_19 = arith.constant 0 : index
    %22 = vector.load %arg9[%c72, %c0_19] : memref<592x256xbf16, #tpu.memory_space<vmem>>, vector<56x256xbf16>
    tpu.vector_store %arg9[%c72, %c0_19], %21 {strides = array<i32>} : memref<592x256xbf16, #tpu.memory_space<vmem>>, vector<56x256xbf16>,
    %23 = vector.extract_strided_slice %20 {offsets = [56, 0], sizes = [56, 256], strides = [1, 1]} : vector<392x256xbf16> to vector<56x256xbf16>
    %c136 = arith.constant 136 : index
    %c0_20 = arith.constant 0 : index
    %24 = vector.load %arg9[%c136, %c0_20] : memref<592x256xbf16, #tpu.memory_space<vmem>>, vector<56x256xbf16>
    tpu.vector_store %arg9[%c136, %c0_20], %23 {strides = array<i32>} : memref<592x256xbf16, #tpu.memory_space<vmem>>, vector<56x256xbf16>,
    %25 = vector.extract_strided_slice %20 {offsets = [112, 0], sizes = [56, 256], strides = [1, 1]} : vector<392x256xbf16> to vector<56x256xbf16>
    %c200 = arith.constant 200 : index
    %c0_21 = arith.constant 0 : index
    %26 = vector.load %arg9[%c200, %c0_21] : memref<592x256xbf16, #tpu.memory_space<vmem>>, vector<56x256xbf16>
    tpu.vector_store %arg9[%c200, %c0_21], %25 {strides = array<i32>} : memref<592x256xbf16, #tpu.memory_space<vmem>>, vector<56x256xbf16>,
    %27 = vector.extract_strided_slice %20 {offsets = [168, 0], sizes = [56, 256], strides = [1, 1]} : vector<392x256xbf16> to vector<56x256xbf16>
    %c264 = arith.constant 264 : index
    %c0_22 = arith.constant 0 : index
    %28 = vector.load %arg9[%c264, %c0_22] : memref<592x256xbf16, #tpu.memory_space<vmem>>, vector<56x256xbf16>
    tpu.vector_store %arg9[%c264, %c0_22], %27 {strides = array<i32>} : memref<592x256xbf16, #tpu.memory_space<vmem>>, vector<56x256xbf16>,
    %29 = vector.extract_strided_slice %20 {offsets = [224, 0], sizes = [56, 256], strides = [1, 1]} : vector<392x256xbf16> to vector<56x256xbf16>
    %c328 = arith.constant 328 : index
    %c0_23 = arith.constant 0 : index
    %30 = vector.load %arg9[%c328, %c0_23] : memref<592x256xbf16, #tpu.memory_space<vmem>>, vector<56x256xbf16>
    tpu.vector_store %arg9[%c328, %c0_23], %29 {strides = array<i32>} : memref<592x256xbf16, #tpu.memory_space<vmem>>, vector<56x256xbf16>,
    %31 = vector.extract_strided_slice %20 {offsets = [280, 0], sizes = [56, 256], strides = [1, 1]} : vector<392x256xbf16> to vector<56x256xbf16>
    %c392 = arith.constant 392 : index
    %c0_24 = arith.constant 0 : index
    %32 = vector.load %arg9[%c392, %c0_24] : memref<592x256xbf16, #tpu.memory_space<vmem>>, vector<56x256xbf16>
    tpu.vector_store %arg9[%c392, %c0_24], %31 {strides = array<i32>} : memref<592x256xbf16, #tpu.memory_space<vmem>>, vector<56x256xbf16>,
    %33 = vector.extract_strided_slice %20 {offsets = [336, 0], sizes = [56, 256], strides = [1, 1]} : vector<392x256xbf16> to vector<56x256xbf16>
    %c456 = arith.constant 456 : index
    %c0_25 = arith.constant 0 : index
    %34 = vector.load %arg9[%c456, %c0_25] : memref<592x256xbf16, #tpu.memory_space<vmem>>, vector<56x256xbf16>
    tpu.vector_store %arg9[%c456, %c0_25], %33 {strides = array<i32>} : memref<592x256xbf16, #tpu.memory_space<vmem>>, vector<56x256xbf16>,
    %c0_26 = arith.constant 0 : index
    %c0_27 = arith.constant 0 : index
    %35 = vector.load %arg9[%c0_26, %c0_27] : memref<592x256xbf16, #tpu.memory_space<vmem>>, vector<448x256xbf16>
    %c0_28 = arith.constant 0 : index
    %c0_29 = arith.constant 0 : index
    %36 = vector.load %arg4[%c0_28, %c0_29] : memref<1600x128xbf16, #tpu.memory_space<vmem>>, vector<256x128xbf16>
    %cst_30 = arith.constant dense<0.000000e+00> : vector<448x128xf32>
    %37 = tpu.matmul %35, %36, %cst_30 {dimension_numbers = #tpu.dot_dimension_numbers<[1], [0], [0], [1], [0, 0, 1, 1], [], []>} : vector<448x256xbf16>, vector<256x128xbf16>, vector<448x128xf32> -> vector<448x128xf32>
    %c8 = arith.constant 8 : index
    %c0_31 = arith.constant 0 : index
    %38 = vector.load %arg9[%c8, %c0_31] : memref<592x256xbf16, #tpu.memory_space<vmem>>, vector<448x256xbf16>
    %c256_32 = arith.constant 256 : index
    %c0_33 = arith.constant 0 : index
    %39 = vector.load %arg4[%c256_32, %c0_33] : memref<1600x128xbf16, #tpu.memory_space<vmem>>, vector<256x128xbf16>
    %cst_34 = arith.constant dense<0.000000e+00> : vector<448x128xf32>
    %40 = tpu.matmul %38, %39, %cst_34 {dimension_numbers = #tpu.dot_dimension_numbers<[1], [0], [0], [1], [0, 0, 1, 1], [], []>} : vector<448x256xbf16>, vector<256x128xbf16>, vector<448x128xf32> -> vector<448x128xf32>
    %41 = arith.addf %37, %40 : vector<448x128xf32>
    %c16 = arith.constant 16 : index
    %c64 = arith.constant 64 : index
    %42 = vector.load %arg9[%c16, %c64] : memref<592x256xbf16, #tpu.memory_space<vmem>>, vector<448x128xbf16>
    %c512_35 = arith.constant 512 : index
    %c0_36 = arith.constant 0 : index
    %43 = vector.load %arg4[%c512_35, %c0_36] : memref<1600x128xbf16, #tpu.memory_space<vmem>>, vector<128x128xbf16>
    %cst_37 = arith.constant dense<0.000000e+00> : vector<448x128xf32>
    %44 = tpu.matmul %42, %43, %cst_37 {dimension_numbers = #tpu.dot_dimension_numbers<[1], [0], [0], [1], [0, 0, 1, 1], [], []>} : vector<448x128xbf16>, vector<128x128xbf16>, vector<448x128xf32> -> vector<448x128xf32>
    %45 = arith.addf %41, %44 : vector<448x128xf32>
    %c0_38 = arith.constant 0 : index
    %c0_39 = arith.constant 0 : index
    %46 = vector.load %arg10[%c0_38, %c0_39] : memref<448x128xf32, #tpu.memory_space<vmem>>, vector<448x128xf32>
    tpu.vector_store %arg10[%c0_38, %c0_39], %45 {strides = array<i32>} : memref<448x128xf32, #tpu.memory_space<vmem>>, vector<448x128xf32>,
    %c64_40 = arith.constant 64 : index
    %c0_41 = arith.constant 0 : index
    %47 = vector.load %arg9[%c64_40, %c0_41] : memref<592x256xbf16, #tpu.memory_space<vmem>>, vector<448x256xbf16>
    %c640 = arith.constant 640 : index
    %c0_42 = arith.constant 0 : index
    %48 = vector.load %arg4[%c640, %c0_42] : memref<1600x128xbf16, #tpu.memory_space<vmem>>, vector<256x128xbf16>
    %cst_43 = arith.constant dense<0.000000e+00> : vector<448x128xf32>
    %49 = tpu.matmul %47, %48, %cst_43 {dimension_numbers = #tpu.dot_dimension_numbers<[1], [0], [0], [1], [0, 0, 1, 1], [], []>} : vector<448x256xbf16>, vector<256x128xbf16>, vector<448x128xf32> -> vector<448x128xf32>
    %c72_44 = arith.constant 72 : index
    %c0_45 = arith.constant 0 : index
    %50 = vector.load %arg9[%c72_44, %c0_45] : memref<592x256xbf16, #tpu.memory_space<vmem>>, vector<448x256xbf16>
    %c896 = arith.constant 896 : index
    %c0_46 = arith.constant 0 : index
    %51 = vector.load %arg4[%c896, %c0_46] : memref<1600x128xbf16, #tpu.memory_space<vmem>>, vector<256x128xbf16>
    %cst_47 = arith.constant dense<0.000000e+00> : vector<448x128xf32>
    %52 = tpu.matmul %50, %51, %cst_47 {dimension_numbers = #tpu.dot_dimension_numbers<[1], [0], [0], [1], [0, 0, 1, 1], [], []>} : vector<448x256xbf16>, vector<256x128xbf16>, vector<448x128xf32> -> vector<448x128xf32>
    %53 = arith.addf %49, %52 : vector<448x128xf32>
    %c80 = arith.constant 80 : index
    %c64_48 = arith.constant 64 : index
    %54 = vector.load %arg9[%c80, %c64_48] : memref<592x256xbf16, #tpu.memory_space<vmem>>, vector<448x128xbf16>
    %c1152 = arith.constant 1152 : index
    %c0_49 = arith.constant 0 : index
    %55 = vector.load %arg4[%c1152, %c0_49] : memref<1600x128xbf16, #tpu.memory_space<vmem>>, vector<128x128xbf16>
    %cst_50 = arith.constant dense<0.000000e+00> : vector<448x128xf32>
    %56 = tpu.matmul %54, %55, %cst_50 {dimension_numbers = #tpu.dot_dimension_numbers<[1], [0], [0], [1], [0, 0, 1, 1], [], []>} : vector<448x128xbf16>, vector<128x128xbf16>, vector<448x128xf32> -> vector<448x128xf32>
    %57 = arith.addf %53, %56 : vector<448x128xf32>
    %c0_51 = arith.constant 0 : index
    %c0_52 = arith.constant 0 : index
    %58 = vector.load %arg10[%c0_51, %c0_52] : memref<448x128xf32, #tpu.memory_space<vmem>>, vector<448x128xf32>
    %59 = arith.addf %58, %57 : vector<448x128xf32>
    %c0_53 = arith.constant 0 : index
    %c0_54 = arith.constant 0 : index
    %60 = vector.load %arg10[%c0_53, %c0_54] : memref<448x128xf32, #tpu.memory_space<vmem>>, vector<448x128xf32>
    tpu.vector_store %arg10[%c0_53, %c0_54], %59 {strides = array<i32>} : memref<448x128xf32, #tpu.memory_space<vmem>>, vector<448x128xf32>,
    %c128_55 = arith.constant 128 : index
    %c0_56 = arith.constant 0 : index
    %61 = vector.load %arg9[%c128_55, %c0_56] : memref<592x256xbf16, #tpu.memory_space<vmem>>, vector<448x128xbf16>
    %c1280 = arith.constant 1280 : index
    %c0_57 = arith.constant 0 : index
    %62 = vector.load %arg4[%c1280, %c0_57] : memref<1600x128xbf16, #tpu.memory_space<vmem>>, vector<128x128xbf16>
    %cst_58 = arith.constant dense<0.000000e+00> : vector<448x128xf32>
    %63 = tpu.matmul %61, %62, %cst_58 {dimension_numbers = #tpu.dot_dimension_numbers<[1], [0], [0], [1], [0, 0, 1, 1], [], []>} : vector<448x128xbf16>, vector<128x128xbf16>, vector<448x128xf32> -> vector<448x128xf32>
    %c136_59 = arith.constant 136 : index
    %c0_60 = arith.constant 0 : index
    %64 = vector.load %arg9[%c136_59, %c0_60] : memref<592x256xbf16, #tpu.memory_space<vmem>>, vector<448x128xbf16>
    %c1408 = arith.constant 1408 : index
    %c0_61 = arith.constant 0 : index
    %65 = vector.load %arg4[%c1408, %c0_61] : memref<1600x128xbf16, #tpu.memory_space<vmem>>, vector<128x128xbf16>
    %cst_62 = arith.constant dense<0.000000e+00> : vector<448x128xf32>
    %66 = tpu.matmul %64, %65, %cst_62 {dimension_numbers = #tpu.dot_dimension_numbers<[1], [0], [0], [1], [0, 0, 1, 1], [], []>} : vector<448x128xbf16>, vector<128x128xbf16>, vector<448x128xf32> -> vector<448x128xf32>
    %67 = arith.addf %63, %66 : vector<448x128xf32>
    %c144 = arith.constant 144 : index
    %c64_63 = arith.constant 64 : index
    %68 = vector.load %arg9[%c144, %c64_63] : memref<592x256xbf16, #tpu.memory_space<vmem>>, vector<448x64xbf16>
    %c1536 = arith.constant 1536 : index
    %c0_64 = arith.constant 0 : index
    %69 = vector.load %arg4[%c1536, %c0_64] : memref<1600x128xbf16, #tpu.memory_space<vmem>>, vector<64x128xbf16>
    %cst_65 = arith.constant dense<0.000000e+00> : vector<448x128xf32>
    %70 = tpu.matmul %68, %69, %cst_65 {dimension_numbers = #tpu.dot_dimension_numbers<[1], [0], [0], [1], [0, 0, 1, 1], [], []>} : vector<448x64xbf16>, vector<64x128xbf16>, vector<448x128xf32> -> vector<448x128xf32>
    %71 = arith.addf %67, %70 : vector<448x128xf32>
    %c0_66 = arith.constant 0 : index
    %c0_67 = arith.constant 0 : index
    %72 = vector.load %arg10[%c0_66, %c0_67] : memref<448x128xf32, #tpu.memory_space<vmem>>, vector<448x128xf32>
    %73 = arith.addf %72, %71 : vector<448x128xf32>
    %c0_68 = arith.constant 0 : index
    %c0_69 = arith.constant 0 : index
    %74 = vector.load %arg10[%c0_68, %c0_69] : memref<448x128xf32, #tpu.memory_space<vmem>>, vector<448x128xf32>
    tpu.vector_store %arg10[%c0_68, %c0_69], %73 {strides = array<i32>} : memref<448x128xf32, #tpu.memory_space<vmem>>, vector<448x128xf32>,
    %c0_70 = arith.constant 0 : index
    %c0_71 = arith.constant 0 : index
    %75 = vector.load %arg10[%c0_70, %c0_71] : memref<448x128xf32, #tpu.memory_space<vmem>>, vector<448x128xf32>
    %c0_72 = arith.constant 0 : index
    %c0_73 = arith.constant 0 : index
    %76 = vector.load %arg5[%c0_72, %c0_73] : memref<1x128xf32, #tpu.memory_space<vmem>>, vector<1x128xf32>
    %77 = vector.broadcast %76 : vector<1x128xf32> to vector<448x128xf32>
    %78 = arith.addf %75, %77 : vector<448x128xf32>
    %cst_74 = arith.constant 0.000000e+00 : f32
    %79 = vector.broadcast %cst_74 : f32 to vector<448x128xf32>
    %80 = arith.maximumf %78, %79 : vector<448x128xf32>
    %81 = vector.shape_cast %80 : vector<448x128xf32> to vector<56x8x128xf32>
    %c0_75 = arith.constant 0 : index
    %c0_76 = arith.constant 0 : index
    %c0_77 = arith.constant 0 : index
    %82 = vector.load %arg6[%c0_75, %c0_76, %c0_77] : memref<56x1x128xf32, #tpu.memory_space<vmem>>, vector<56x1x128xf32>
    %83 = vector.broadcast %82 : vector<56x1x128xf32> to vector<56x8x128xf32>
    %84 = arith.mulf %81, %83 : vector<56x8x128xf32>
    %cst_78 = arith.constant dense<0.000000e+00> : vector<56x8xf32>
    %85 = vector.multi_reduction <add>, %84, %cst_78 [2] : vector<56x8x128xf32> to vector<56x8xf32>
    %86 = vector.shape_cast %85 : vector<56x8xf32> to vector<56x8x1xf32>
    %cst_79 = arith.constant dense<0.000000e+00> : vector<8x1xf32>
    %87 = vector.multi_reduction <add>, %86, %cst_79 [0] : vector<56x8x1xf32> to vector<8x1xf32>
    %c0_80 = arith.constant 0 : index
    %c0_81 = arith.constant 0 : index
    %88 = vector.load %arg7[%c0_80, %c0_81] : memref<1x1xf32, #tpu.memory_space<vmem>>, vector<1x1xf32>
    %89 = vector.broadcast %88 : vector<1x1xf32> to vector<8x1xf32>
    %90 = arith.addf %87, %89 : vector<8x1xf32>
    %cst_82 = arith.constant 0.000000e+00 : f32
    %91 = vector.broadcast %cst_82 : f32 to vector<8x1xf32>
    %92 = arith.subf %91, %90 : vector<8x1xf32>
    %93 = math.exp %92 : vector<8x1xf32>
    %cst_83 = arith.constant 1.000000e+00 : f32
    %94 = vector.broadcast %cst_83 : f32 to vector<8x1xf32>
    %95 = arith.addf %94, %93 : vector<8x1xf32>
    %cst_84 = arith.constant 1.000000e+00 : f32
    %96 = vector.broadcast %cst_84 : f32 to vector<8x1xf32>
    %97 = arith.divf %96, %95 : vector<8x1xf32>
    %c0_85 = arith.constant 0 : index
    %c0_86 = arith.constant 0 : index
    %98 = vector.load %arg8[%c0_85, %c0_86] : memref<8x1xf32, #tpu.memory_space<vmem>>, vector<8x1xf32>
    tpu.vector_store %arg8[%c0_85, %c0_86], %97 {strides = array<i32>} : memref<8x1xf32, #tpu.memory_space<vmem>>, vector<8x1xf32>,
    return
  }
  func.func @transform_0(%arg0: i32) -> (i32, i32, i32) {
    %c0_i32 = arith.constant 0 : i32
    %c0_i32_0 = arith.constant 0 : i32
    %c0_i32_1 = arith.constant 0 : i32
    return %arg0, %c0_i32, %c0_i32_0 : i32, i32, i32
  }
  func.func @transform_1(%arg0: i32) -> (i32, i32) {
    %c0_i32 = arith.constant 0 : i32
    %c0_i32_0 = arith.constant 0 : i32
    %c0_i32_1 = arith.constant 0 : i32
    return %c0_i32, %c0_i32_0 : i32, i32
  }
  func.func @transform_2(%arg0: i32) -> (i32, i32) {
    %c0_i32 = arith.constant 0 : i32
    %c0_i32_0 = arith.constant 0 : i32
    %c0_i32_1 = arith.constant 0 : i32
    return %c0_i32, %c0_i32_0 : i32, i32
  }
  func.func @transform_3(%arg0: i32) -> (i32, i32) {
    %c0_i32 = arith.constant 0 : i32
    %c0_i32_0 = arith.constant 0 : i32
    %c0_i32_1 = arith.constant 0 : i32
    return %c0_i32, %c0_i32_0 : i32, i32
  }
  func.func @transform_4(%arg0: i32) -> (i32, i32) {
    %c0_i32 = arith.constant 0 : i32
    %c0_i32_0 = arith.constant 0 : i32
    %c0_i32_1 = arith.constant 0 : i32
    return %c0_i32, %c0_i32_0 : i32, i32
  }
  func.func @transform_5(%arg0: i32) -> (i32, i32, i32) {
    %c0_i32 = arith.constant 0 : i32
    %c0_i32_0 = arith.constant 0 : i32
    %c0_i32_1 = arith.constant 0 : i32
    %c0_i32_2 = arith.constant 0 : i32
    return %c0_i32, %c0_i32_0, %c0_i32_1 : i32, i32, i32
  }
  func.func @transform_6(%arg0: i32) -> (i32, i32) {
    %c0_i32 = arith.constant 0 : i32
    %c0_i32_0 = arith.constant 0 : i32
    %c0_i32_1 = arith.constant 0 : i32
    return %c0_i32, %c0_i32_0 : i32, i32
  }
  func.func @transform_7(%arg0: i32) -> (i32, i32) {
    %c0_i32 = arith.constant 0 : i32
    %c0_i32_0 = arith.constant 0 : i32
    return %arg0, %c0_i32 : i32, i32
  }
}

</mosaic_0001>

<bundles_post_ra>
// kernel: tile.8
= control target key start
LH: loop header
LB: loop body
LE: loop exit
PB: predicated region body
PF: predicated region fallthrough
CT: control target
= control target key end

     0   :  { %s22_s0 = inlined_call_operand.vmem [shape: f32[64], index: 0, kind: input, shape index: {}]   ;;  %s23_s1 = inlined_call_operand.vmem [shape: f32[4,64], index: 1, kind: output, shape index: {}]  }
   0x1   :  { %v4_v0 = vld [vmem:[%s22_s0] ss:$0 sm:$0xff] }
   0x2   :  { %5 = vst [vmem:[%s23_s1] sm:$0xf] %v4_v0 }

// kernel: tile.9
= control target key start
LH: loop header
LB: loop body
LE: loop exit
PB: predicated region body
PF: predicated region fallthrough
CT: control target
= control target key end

     0   :  { %s6_s8 = smov 3  ;;  %vm8_vm0 = vcmask 523264   ;;  %s30_s9 = smov 64   ;;  %vm15_vm1 = vcmask 1048064   ;;  %s50_s0 = inlined_call_operand.vmem [shape: f32[4,64], index: 0, kind: input, shape index: {}]   ;;  %s51_s1 = inlined_call_operand.vmem [shape: f32[1,256], index: 1, kind: output, shape index: {}]  }
   0x1   :  { %v4_v0 = vld [vmem:[%s50_s0] sm:$0xf]  ;;  %s11_s0 = smov 3 }
   0x2   :  { %5 = vst [vmem:[#allocation1] sm:$0xf] %v4_v0 }
   0x9   :  { %v12_v1 = vld [vmem:[#allocation1 + $0x1] ss:$2 sm:%s11_s0]   ;;  %v7_v2 = vld [vmem:[#allocation1] ss:$2 sm:%s6_s8]  }
   0xa   :  { %13 = vrot.lane.b32.xlu0 %v12_v1, %s30_s9  ;;  %9 = vst.msk [vmem:[#allocation0] ss:$8 sm:$0x3] %vm8_vm0, %v7_v2  }
  0x7c   :  { %v14_v3 = vpop.permute.xlu0 %13  }
  0x7d   :  { %16 = vst.msk [vmem:[#allocation0] ss:$8 sm:$0x3] %vm15_vm1, %v14_v3  }
  0x84   :  { %v20_v4 = vld [vmem:[#allocation0] sm:$0x1]  ;;  %v24_v5 = vld [vmem:[#allocation0 + $0x8] sm:$0x1] }
  0x85   :  { %22 = vst [vmem:[%s51_s1] sm:$0x1] %v20_v4  ;;  %28 = vst [vmem:[%s51_s1 + $0x1] sm:$0x1] %v24_v5 }

// kernel: discriminator_forward.1
= control target key start
LH: loop header
LB: loop body
LE: loop exit
PB: predicated region body
PF: predicated region fallthrough
CT: control target
= control target key end

     0   :  { %v8076_v1 = vmov 0   ;;  %s8077_s17 = smov 64   ;;  %vm805_vm0 = vcmask 1043456   ;;  %vm2164_vm1 = vcmask 523264   ;;  %vm6659_vm2 = vcmask 7168   ;;  %s10942_s1 = inlined_call_operand.vmem [shape: bf16[128,256], index: 1, kind: input, shape index: {}]   ;;  %s10943_s0 = inlined_call_operand.vmem [shape: bf16[1,392,128], index: 0, kind: input, shape index: {}]   ;;  %s10944_s3 = inlined_call_operand.vmem [shape: bf16[1600,128], index: 3, kind: input, shape index: {}]   ;;  %s10945_s2 = inlined_call_operand.vmem [shape: f32[1,256], index: 2, kind: input, shape index: {}]   ;;  %s10946_s4 = inlined_call_operand.vmem [shape: f32[1,128], index: 4, kind: input, shape index: {}]   ;;  %s10947_s5 = inlined_call_operand.vmem [shape: f32[56,1,128], index: 5, kind: input, shape index: {}]   ;;  %s10948_s6 = inlined_call_operand.<no memory space> [shape: f32[1,1], index: 6, kind: input, shape index: {}]   ;;  %s10949_s7 = inlined_call_operand.vmem [shape: f32[8,1], index: 7, kind: output, shape index: {}]  }
   0x1   :  { %v7800_v0 = vld [vmem:[%s10942_s1 + $0x4] ss:$8 sps:$4 sm:$0xff]   ;;  %42 = vst [vmem:[#allocation2 + $0x218] sm:$0xff] %v8076_v1  ;;  %400 = vmatprep.mubr.bf16.mxu0 %v8076_v1  ;;  %29 = vst [vmem:[#allocation2] sm:$0xff] %v8076_v1  ;;  %7420 = vmatprep.subr.bf16.mxu1 %v8076_v1  ;;  %v7802_v2 = vld [vmem:[%s10942_s1] ss:$8 sps:$4 sm:$0xff]  }
   0x2   :  { %30 = vst [vmem:[#allocation2 + $0x8] sm:$0xff] %v8076_v1  ;;  %37 = vst [vmem:[#allocation2 + $0x40] sm:$0xf] %v8076_v1  ;;  %368 = vmatprep.subr.bf16.mxu0 %v7800_v0  ;;  %v7803_v3 = vld [vmem:[%s10942_s1 + $0x14] ss:$8 sps:$4 sm:$0xff]   ;;  %v7824_v17 = vld [vmem:[%s10943_s0] sm:$0xff]   ;;  %7771 = vrot.lane.b32.xlu0 %v8076_v1, %s8077_s17 }
   0x3   :  { %38 = vst [vmem:[#allocation2 + $0x48] sm:$0xf] %v8076_v1  ;;  %39 = vst [vmem:[#allocation2 + $0x200] sm:$0xf0] %v8076_v1  ;;  %369 = vmatpush1.bf16.msra.mxu0 %v7802_v2  ;;  %v7805_v4 = vld [vmem:[%s10942_s1 + $0x10] ss:$8 sps:$4 sm:$0xff]   ;;  %7781 = vrot.lane.b32.xlu1 %v8076_v1, %s8077_s17  ;;  %v130_v2 = vlaneseq }
   0x4   :  { %40 = vst [vmem:[#allocation2 + $0x208] sm:$0xf0] %v8076_v1  ;;  %47 = vst [vmem:[#allocation2 + $0x240] sm:$0xff] %v8076_v1  ;;  %370 = vmatprep.subr.bf16.mxu0 %v7803_v3  ;;  %v7806_v5 = vld [vmem:[%s10942_s1 + $0x24] ss:$8 sps:$4 sm:$0xff]   ;;  %v7826_v19 = vld [vmem:[%s10943_s0 + $0x10] sm:$0xff]  }
   0x5   :  { %49 = vst [vmem:[#allocation2 + $0x80] sm:$0xf] %v8076_v1  ;;  %50 = vst [vmem:[#allocation2 + $0x88] sm:$0xf] %v8076_v1  ;;  %v7808_v6 = vld [vmem:[%s10942_s1 + $0x20] ss:$8 sps:$4 sm:$0xff]  }
   0x6   :  { %51 = vst [vmem:[#allocation2 + $0xc0] sm:$0xf] %v8076_v1  ;;  %52 = vst [vmem:[#allocation2 + $0xc8] sm:$0xf] %v8076_v1  ;;  %v7809_v7 = vld [vmem:[%s10942_s1 + $0x34] ss:$8 sps:$4 sm:$0xff]   ;;  %7776 = vrot.lane.b32.xlu0 %v8076_v1, %s8077_s17 }
   0x7   :  { %53 = vst [vmem:[#allocation2 + $0x100] sm:$0xf] %v8076_v1  ;;  %54 = vst [vmem:[#allocation2 + $0x108] sm:$0xf] %v8076_v1  ;;  %371 = vmatpush1.bf16.msra.mxu0 %v7805_v4  ;;  %v7811_v8 = vld [vmem:[%s10942_s1 + $0x30] ss:$8 sps:$4 sm:$0xff]  }
   0x8   :  { %55 = vst [vmem:[#allocation2 + $0x140] sm:$0xf] %v8076_v1  ;;  %56 = vst [vmem:[#allocation2 + $0x148] sm:$0xf] %v8076_v1  ;;  %372 = vmatprep.subr.bf16.mxu0 %v7806_v5  ;;  %v7812_v9 = vld [vmem:[%s10942_s1 + $0x44] ss:$8 sps:$4 sm:$0xff]  }
   0x9   :  { %57 = vst [vmem:[#allocation2 + $0x180] sm:$0xf] %v8076_v1  ;;  %58 = vst [vmem:[#allocation2 + $0x188] sm:$0xf] %v8076_v1  ;;  %v7814_v10 = vld [vmem:[%s10942_s1 + $0x40] ss:$8 sps:$4 sm:$0xff]  }
   0xa   :  { %59 = vst [vmem:[#allocation2 + $0x1c0] sm:$0xf] %v8076_v1  ;;  %60 = vst [vmem:[#allocation2 + $0x1c8] sm:$0xf] %v8076_v1  ;;  %v7815_v11 = vld [vmem:[%s10942_s1 + $0x54] ss:$8 sps:$4 sm:$0xff]  }
   0xb   :  { %61 = vst [vmem:[#allocation2 + $0x200] sm:$0xf] %v8076_v1  ;;  %62 = vst [vmem:[#allocation2 + $0x208] sm:$0xf] %v8076_v1  ;;  %373 = vmatpush1.bf16.msra.mxu0 %v7808_v6  ;;  %v7817_v12 = vld [vmem:[%s10942_s1 + $0x50] ss:$8 sps:$4 sm:$0xff]  }
   0xc   :  { %374 = vmatprep.subr.bf16.mxu0 %v7809_v7  ;;  %v7818_v13 = vld [vmem:[%s10942_s1 + $0x64] ss:$8 sps:$4 sm:$0xff]   ;;  %v7820_v14 = vld [vmem:[%s10942_s1 + $0x60] ss:$8 sps:$4 sm:$0xff]   ;;  %v7821_v15 = vld [vmem:[%s10942_s1 + $0x74] ss:$8 sps:$4 sm:$0xff]  }
   0xd   :  { %v7823_v16 = vld [vmem:[%s10942_s1 + $0x70] ss:$8 sps:$4 sm:$0xff]   ;;  %v7825_v18 = vld [vmem:[%s10943_s0 + $0x8] sm:$0xff]   ;;  %v7843_v20 = vld [vmem:[%s10944_s3 + $0x80] sm:$0xff]   ;;  %v8376_v60 = vrot.slane %v8076_v1, 4  ;;  %v131_v4 = vshrl.u32 %v130_v2, 7 }
   0xe   :  { %v7827_v21 = vld [vmem:[%s10943_s0 + $0x18] sm:$0xff]   ;;  %7436 = vmatpush1.bf16.msra.mxu1 %v7843_v20  ;;  %v7845_v22 = vld [vmem:[%s10944_s3 + $0x88] sm:$0xff]   ;;  %v7846_v23 = vld [vmem:[%s10944_s3 + $0x90] sm:$0xff]  }
   0xf   :  { %375 = vmatpush1.bf16.msra.mxu0 %v7811_v8  ;;  %7421 = vmatprep.subr.bf16.mxu1 %v8076_v1  ;;  %v7828_v24 = vld [vmem:[%s10943_s0 + $0x20] sm:$0xff]   ;;  %v7848_v25 = vld [vmem:[%s10944_s3 + $0x98] sm:$0xff]   ;;  %v7829_v27 = vld [vmem:[%s10943_s0 + $0x28] sm:$0xff]   ;;  %v132_v6 = vsub.s32 0, %v131_v4  ;;  %v136_v8 = vsub.s32 1, %v131_v4 }
  0x10   :  { %376 = vmatprep.subr.bf16.mxu0 %v7812_v9  ;;  %v7849_v26 = vld [vmem:[%s10944_s3 + $0xa0] sm:$0xff]   ;;  %v7851_v28 = vld [vmem:[%s10944_s3 + $0xa8] sm:$0xff]   ;;  %v7852_v29 = vld [vmem:[%s10944_s3 + $0xb0] sm:$0xff]  }
  0x11   :  { %v7830_v30 = vld [vmem:[%s10943_s0 + $0x30] sm:$0xff]   ;;  %v7853_v31 = vld [vmem:[%s10944_s3 + $0xb8] sm:$0xff]   ;;  %v7854_v32 = vld [vmem:[%s10944_s3 + $0xc0] sm:$0xff]  }
  0x12   :  { %7437 = vmatpush1.bf16.msra.mxu1 %v7845_v22  ;;  %v7831_v33 = vld [vmem:[%s10943_s0 + $0x38] sm:$0xff]   ;;  %v7855_v34 = vld [vmem:[%s10944_s3 + $0xc8] sm:$0xff]   ;;  %v7857_v35 = vld [vmem:[%s10944_s3 + $0xd0] sm:$0xff]  }
  0x13   :  { %377 = vmatpush1.bf16.msra.mxu0 %v7814_v10  ;;  %7422 = vmatprep.subr.bf16.mxu1 %v8076_v1  ;;  %v7832_v36 = vld [vmem:[%s10943_s0 + $0x40] sm:$0xff]   ;;  %v7858_v37 = vld [vmem:[%s10944_s3 + $0xd8] sm:$0xff]   ;;  %v7833_v39 = vld [vmem:[%s10943_s0 + $0x48] sm:$0xff]  }
  0x14   :  { %378 = vmatprep.subr.bf16.mxu0 %v7815_v11  ;;  %v7860_v38 = vld [vmem:[%s10944_s3 + $0xe0] sm:$0xff]   ;;  %v7861_v40 = vld [vmem:[%s10944_s3 + $0xe8] sm:$0xff]   ;;  %v7863_v41 = vld [vmem:[%s10944_s3 + $0xf0] sm:$0xff]  }
  0x15   :  { %v7834_v42 = vld [vmem:[%s10943_s0 + $0x50] sm:$0xff]   ;;  %v7864_v43 = vld [vmem:[%s10944_s3 + $0xf8] sm:$0xff]   ;;  %v7836_v45 = vld [vmem:[%s10943_s0 + $0x60] sm:$0xff]  }
  0x16   :  { %7438 = vmatpush1.bf16.msra.mxu1 %v7846_v23  ;;  %v7835_v44 = vld [vmem:[%s10943_s0 + $0x58] sm:$0xff]   ;;  %v7837_v46 = vld [vmem:[%s10943_s0 + $0x68] sm:$0xff]   ;;  %v7838_v47 = vld [vmem:[%s10943_s0 + $0x70] sm:$0xff]  }
  0x17   :  { %379 = vmatpush1.bf16.msra.mxu0 %v7817_v12  ;;  %7423 = vmatprep.subr.bf16.mxu1 %v8076_v1  ;;  %v7839_v48 = vld [vmem:[%s10943_s0 + $0x78] sm:$0xff]   ;;  %v7840_v49 = vld [vmem:[%s10943_s0 + $0x80] sm:$0xff]   ;;  %v7841_v50 = vld [vmem:[%s10943_s0 + $0x88] sm:$0xff]  }
  0x18   :  { %380 = vmatprep.subr.bf16.mxu0 %v7818_v13  ;;  %v7842_v51 = vld [vmem:[%s10943_s0 + $0x90] sm:$0xff]   ;;  %v7844_v52 = vld [vmem:[%s10943_s0 + $0x98] sm:$0xff]   ;;  %v7847_v53 = vld [vmem:[%s10943_s0 + $0xa0] sm:$0xff]  }
  0x19   :  { %v7850_v54 = vld [vmem:[%s10943_s0 + $0xa8] sm:$0xff]   ;;  %v7856_v55 = vld [vmem:[%s10943_s0 + $0xb0] sm:$0xff]   ;;  %v7868_v56 = vld [vmem:[%s10944_s3 + $0x100] sm:$0xff]  }
  0x1a   :  { %7439 = vmatpush1.bf16.msra.mxu1 %v7848_v25  ;;  %v7859_v57 = vld [vmem:[%s10943_s0 + $0xb8] sm:$0xff]   ;;  %v1063_v58 = vld [vmem:[#allocation2 + $0x8] sm:$0xf0]  ;;  %v7862_v61 = vld [vmem:[%s10943_s0 + $0xc0] ss:$0 sps:$4 sm:$0xff]  }
  0x1b   :  { %381 = vmatpush1.bf16.msra.mxu0 %v7820_v14  ;;  %7424 = vmatprep.subr.bf16.mxu1 %v8076_v1  ;;  %v1159_v59 = vrot.slane %v1063_v58, 4  ;;  %v1062_v63 = vld [vmem:[#allocation2] sm:$0xf0]  ;;  %v7871_v5 = vld [vmem:[%s10944_s3 + $0x110] sm:$0xff]   ;;  %v128_v7 = vld [vmem:[%s10945_s2] sm:$0x3] }
  0x1c   :  { %382 = vmatprep.subr.bf16.mxu0 %v7821_v15  ;;  %v1156_v0 = vrot.slane %v1062_v63, 4  ;;  %v7872_v9 = vld [vmem:[%s10944_s3 + $0x118] sm:$0xff]   ;;  %v8398_v10 = vrot.slane %v128_v7, %v132_v6  ;;  %v8401_v11 = vrot.slane %v128_v7, %v136_v8  ;;  %v7874_v12 = vld [vmem:[%s10944_s3 + $0x120] sm:$0xff]  }
  0x1d   :  { %v1161_v62 = vsel %vm805_vm0, %v1159_v59, %v8376_v60  ;;  %v8432_v59 = vld [vmem:[#allocation2 + $0x218] sm:$0xff] }
  0x1e   :  { %7440 = vmatpush1.bf16.msra.mxu1 %v7849_v26  ;;  %v1158_v3 = vsel %vm805_vm0, %v1156_v0, %v8376_v60 }
  0x1f   :  { %383 = vmatpush1.bf16.msra.mxu0 %v7823_v16  ;;  %7425 = vmatprep.subr.bf16.mxu1 %v8076_v1 }
  0x20   :  { %1422 = vmatprep.subr.bf16.mxu0 %v8076_v1 }
  0x22   :  { %401 = vmatmul.mubr.bf16.vlgmr.msra.gmra.mrb[0].mxu0 %v7824_v17  ;;  %7441 = vmatpush1.bf16.msra.mxu1 %v7851_v28 }
  0x23   :  { %410 = vmatprep.mubr.bf16.mxu0 %v8076_v1  ;;  %1423 = vmatpush1.bf16.msra.mxu0 %v7843_v20  ;;  %v7875_v20 = vld [vmem:[%s10944_s3 + $0x128] sm:$0xff]  }
  0x24   :  { %1424 = vmatprep.subr.bf16.mxu0 %v8076_v1  ;;  %7426 = vmatprep.subr.bf16.mxu1 %v8076_v1 }
  0x26   :  { %7442 = vmatpush1.bf16.msra.mxu1 %v7852_v29 }
  0x27   :  { %1425 = vmatpush1.bf16.msra.mxu0 %v7845_v22  ;;  %7427 = vmatprep.subr.bf16.mxu1 %v8076_v1 }
  0x28   :  { %1426 = vmatprep.subr.bf16.mxu0 %v8076_v1 }
  0x2a   :  { %411 = vmatmul.mubr.bf16.gmra.mrb[4].mxu0 %v7825_v18  ;;  %7443 = vmatpush1.bf16.msra.mxu1 %v7853_v31 }
  0x2b   :  { %420 = vmatprep.mubr.bf16.mxu0 %v8076_v1  ;;  %1427 = vmatpush1.bf16.msra.mxu0 %v7846_v23 }
  0x2c   :  { %1428 = vmatprep.subr.bf16.mxu0 %v8076_v1  ;;  %7428 = vmatprep.subr.bf16.mxu1 %v8076_v1 }
  0x2e   :  { %7444 = vmatpush1.bf16.msra.mxu1 %v7854_v32 }
  0x2f   :  { %1429 = vmatpush1.bf16.msra.mxu0 %v7848_v25  ;;  %7429 = vmatprep.subr.bf16.mxu1 %v8076_v1 }
  0x30   :  { %1430 = vmatprep.subr.bf16.mxu0 %v8076_v1 }
  0x32   :  { %421 = vmatmul.mubr.bf16.gmra.mrb[8].mxu0 %v7826_v19  ;;  %7445 = vmatpush1.bf16.msra.mxu1 %v7855_v34 }
  0x33   :  { %430 = vmatprep.mubr.bf16.mxu0 %v8076_v1  ;;  %1431 = vmatpush1.bf16.msra.mxu0 %v7849_v26 }
  0x34   :  { %1432 = vmatprep.subr.bf16.mxu0 %v8076_v1  ;;  %7430 = vmatprep.subr.bf16.mxu1 %v8076_v1 }
  0x36   :  { %7446 = vmatpush1.bf16.msra.mxu1 %v7857_v35 }
  0x37   :  { %1433 = vmatpush1.bf16.msra.mxu0 %v7851_v28  ;;  %7431 = vmatprep.subr.bf16.mxu1 %v8076_v1 }
  0x38   :  { %1434 = vmatprep.subr.bf16.mxu0 %v8076_v1 }
  0x3a   :  { %431 = vmatmul.mubr.bf16.gmra.mrb[12].mxu0 %v7827_v21  ;;  %7447 = vmatpush1.bf16.msra.mxu1 %v7858_v37 }
  0x3b   :  { %440 = vmatprep.mubr.bf16.mxu0 %v8076_v1  ;;  %1435 = vmatpush1.bf16.msra.mxu0 %v7852_v29 }
  0x3c   :  { %1436 = vmatprep.subr.bf16.mxu0 %v8076_v1  ;;  %7432 = vmatprep.subr.bf16.mxu1 %v8076_v1 }
  0x3e   :  { %7448 = vmatpush1.bf16.msra.mxu1 %v7860_v38 }
  0x3f   :  { %1437 = vmatpush1.bf16.msra.mxu0 %v7853_v31  ;;  %7433 = vmatprep.subr.bf16.mxu1 %v8076_v1 }
  0x40   :  { %1438 = vmatprep.subr.bf16.mxu0 %v8076_v1 }
  0x42   :  { %441 = vmatmul.mubr.bf16.gmra.mrb[16].mxu0 %v7828_v24  ;;  %7449 = vmatpush1.bf16.msra.mxu1 %v7861_v40 }
  0x43   :  { %450 = vmatprep.mubr.bf16.mxu0 %v8076_v1  ;;  %1439 = vmatpush1.bf16.msra.mxu0 %v7854_v32 }
  0x44   :  { %1440 = vmatprep.subr.bf16.mxu0 %v8076_v1  ;;  %7434 = vmatprep.subr.bf16.mxu1 %v8076_v1 }
  0x46   :  { %7450 = vmatpush1.bf16.msra.mxu1 %v7863_v41 }
  0x47   :  { %1441 = vmatpush1.bf16.msra.mxu0 %v7855_v34  ;;  %7435 = vmatprep.subr.bf16.mxu1 %v8076_v1 }
  0x48   :  { %1442 = vmatprep.subr.bf16.mxu0 %v8076_v1 }
  0x4a   :  { %451 = vmatmul.mubr.bf16.gmra.mrb[20].mxu0 %v7829_v27  ;;  %7451 = vmatpush1.bf16.msra.mxu1 %v7864_v43  ;;  %v7877_v27 = vld [vmem:[%s10944_s3 + $0x130] sm:$0xff]  }
  0x4b   :  { %460 = vmatprep.mubr.bf16.mxu0 %v8076_v1  ;;  %1443 = vmatpush1.bf16.msra.mxu0 %v7857_v35 }
  0x4c   :  { %1444 = vmatprep.subr.bf16.mxu0 %v8076_v1  ;;  %1775 = vmatprep.subr.bf16.mxu1 %v8076_v1 }
  0x4f   :  { %1445 = vmatpush1.bf16.msra.mxu0 %v7858_v37 }
  0x50   :  { %1446 = vmatprep.subr.bf16.mxu0 %v8076_v1 }
  0x52   :  { %461 = vmatmul.mubr.bf16.gmra.mrb[24].mxu0 %v7830_v30 }
  0x53   :  { %470 = vmatprep.mubr.bf16.mxu0 %v8076_v1  ;;  %1447 = vmatpush1.bf16.msra.mxu0 %v7860_v38  ;;  %v7878_v38 = vld [vmem:[%s10944_s3 + $0x138] sm:$0xff]  }
  0x54   :  { %1448 = vmatprep.subr.bf16.mxu0 %v8076_v1 }
  0x57   :  { %1449 = vmatpush1.bf16.msra.mxu0 %v7861_v40 }
  0x58   :  { %1450 = vmatprep.subr.bf16.mxu0 %v8076_v1 }
  0x5a   :  { %471 = vmatmul.mubr.bf16.gmra.mrb[28].mxu0 %v7831_v33 }
  0x5b   :  { %480 = vmatprep.mubr.bf16.mxu0 %v8076_v1  ;;  %1451 = vmatpush1.bf16.msra.mxu0 %v7863_v41 }
  0x5c   :  { %1452 = vmatprep.subr.bf16.mxu0 %v8076_v1 }
  0x5f   :  { %1453 = vmatpush1.bf16.msra.mxu0 %v7864_v43 }
  0x60   :  { %7068 = vmatprep.subr.bf16.mxu0 %v7868_v56 }
  0x62   :  { %481 = vmatmul.mubr.bf16.gmra.mrb[32].mxu0 %v7832_v36 }
  0x63   :  { %490 = vmatprep.mubr.bf16.mxu0 %v8076_v1 }
  0x6a   :  { %491 = vmatmul.mubr.bf16.gmra.mrb[36].mxu0 %v7833_v39 }
  0x6b   :  { %500 = vmatprep.mubr.bf16.mxu0 %v8076_v1 }
  0x72   :  { %501 = vmatmul.mubr.bf16.gmra.mrb[40].mxu0 %v7834_v42 }
  0x73   :  { %510 = vmatprep.mubr.bf16.mxu0 %v8076_v1 }
  0x7a   :  { %511 = vmatmul.mubr.bf16.gmra.mrb[44].mxu0 %v7835_v44 }
  0x7b   :  { %520 = vmatprep.mubr.bf16.mxu0 %v8076_v1 }
  0x82   :  { %521 = vmatmul.mubr.bf16.gmra.mrb[48].mxu0 %v7836_v45 }
  0x83   :  { %530 = vmatprep.mubr.bf16.mxu0 %v8076_v1 }
  0x8a   :  { %531 = vmatmul.mubr.bf16.gmra.mrb[52].mxu0 %v7837_v46 }
  0x8b   :  { %540 = vmatprep.mubr.bf16.mxu0 %v8076_v1 }
  0x92   :  { %541 = vmatmul.mubr.bf16.gmra.mrb[56].mxu0 %v7838_v47 }
  0x93   :  { %550 = vmatprep.mubr.bf16.mxu0 %v8076_v1 }
  0x9a   :  { %551 = vmatmul.mubr.bf16.gmra.mrb[60].mxu0 %v7839_v48 }
  0x9b   :  { %560 = vmatprep.mubr.bf16.mxu0 %v8076_v1 }
  0xa2   :  { %561 = vmatmul.mubr.bf16.gmra.mrb[64].mxu0 %v7840_v49 }
  0xa3   :  { %570 = vmatprep.mubr.bf16.mxu0 %v8076_v1 }
  0xaa   :  { %571 = vmatmul.mubr.bf16.gmra.mrb[68].mxu0 %v7841_v50 }
  0xab   :  { %580 = vmatprep.mubr.bf16.mxu0 %v8076_v1 }
  0xb2   :  { %581 = vmatmul.mubr.bf16.gmra.mrb[72].mxu0 %v7842_v51 }
  0xb3   :  { %590 = vmatprep.mubr.bf16.mxu0 %v8076_v1 }
  0xba   :  { %591 = vmatmul.mubr.bf16.gmra.mrb[76].mxu0 %v7844_v52 }
  0xbb   :  { %600 = vmatprep.mubr.bf16.mxu0 %v8076_v1 }
  0xc2   :  { %601 = vmatmul.mubr.bf16.gmra.mrb[80].mxu0 %v7847_v53 }
  0xc3   :  { %610 = vmatprep.mubr.bf16.mxu0 %v8076_v1 }
  0xca   :  { %611 = vmatmul.mubr.bf16.gmra.mrb[84].mxu0 %v7850_v54 }
  0xcb   :  { %620 = vmatprep.mubr.bf16.mxu0 %v8076_v1 }
  0xd2   :  { %621 = vmatmul.mubr.bf16.gmra.mrb[88].mxu0 %v7856_v55 }
  0xd3   :  { %630 = vmatprep.mubr.bf16.mxu0 %v8076_v1 }
  0xda   :  { %631 = vmatmul.mubr.bf16.gmra.mrb[92].mxu0 %v7859_v57 }
  0xdb   :  { %640 = vmatprep.mubr.bf16.mxu0 %v8076_v1  ;;  %v7870_v1 = vld [vmem:[%s10944_s3 + $0x108] sm:$0xff]  }
  0xe2   :  { %641 = vmatmul.mubr.bf16.gmra.mrb[96].mxu0 %v7862_v61 }
  0xe3   :  { %1454 = vmatprep.mubr.bf16.mxu0 %v1161_v62 }
  0xea   :  { %1455 = vmatmul.mubr.bf16.vlgmr.msra.gmra.mrb[100].mxu0 %v1158_v3 }
  0xeb   :  { %1462 = vmatprep.mubr.bf16.mxu0 %v8376_v60  ;;  %7069 = vmatpush3.bf16.msra.mxu0 %v7868_v56 }
  0xec   :  { %7070 = vmatprep.subr.bf16.mxu0 %v7870_v1 }
  0xef   :  { %7071 = vmatpush3.bf16.msra.mxu0 %v7870_v1 }
  0xf0   :  { %7072 = vmatprep.subr.bf16.mxu0 %v7871_v5 }
  0xf2   :  { %1463 = vmatmul.mubr.bf16.gmra.mrb[104].mxu0 %v8376_v60 }
  0xf3   :  { %1470 = vmatprep.mubr.bf16.mxu0 %v8376_v60  ;;  %7073 = vmatpush3.bf16.msra.mxu0 %v7871_v5 }
  0xf4   :  { %7074 = vmatprep.subr.bf16.mxu0 %v7872_v9 }
  0xf5   :  { %v402_v13 = vpop.f32.mrb[0].mxu0 }
  0xf6   :  { %v403_v14 = vadd.f32 %v402_v13, %v8398_v10  ;;  %v404_v15 = vpop.f32.mrb[1].mxu0 }
  0xf7   :  { %v405_v16 = vadd.f32 %v404_v15, %v8401_v11  ;;  %v406_v17 = vpop.f32.mrb[2].mxu0  ;;  %7075 = vmatpush3.bf16.msra.mxu0 %v7872_v9 }
  0xf8   :  { %v407_v18 = vadd.f32 %v406_v17, %v8398_v10  ;;  %v408_v19 = vpop.f32.mrb[3].mxu0  ;;  %7076 = vmatprep.subr.bf16.mxu0 %v7874_v12  ;;  %v649_v22 = vmax.f32 %v403_v14, 0.0 }
  0xf9   :  { %v409_v21 = vadd.f32 %v408_v19, %v8401_v11  ;;  %v650_v24 = vmax.f32 %v405_v16, 0.0 }
  0xfa   :  { %v651_v23 = vmax.f32 %v407_v18, 0.0  ;;  %1471 = vmatmul.mubr.bf16.gmra.mrb[108].mxu0 %v8376_v60 }
  0xfb   :  { %v652_v25 = vmax.f32 %v409_v21, 0.0  ;;  %7077 = vmatpush3.bf16.msra.mxu0 %v7874_v12 }
  0xfc   :  { %v747_v26 = vpack.c.bf16 %v651_v23, %v649_v22  ;;  %7078 = vmatprep.subr.bf16.mxu0 %v7875_v20 }
  0xfd   :  { %v748_v28 = vpack.c.bf16 %v652_v25, %v650_v24  ;;  %v412_v29 = vpop.f32.mrb[4].mxu0 }
  0xfe   :  { %v806_v30 = vrot.slane %v747_v26, 4  ;;  %v413_v31 = vadd.f32 %v412_v29, %v8398_v10  ;;  %v414_v32 = vpop.f32.mrb[5].mxu0 }
  0xff   :  { %v807_v33 = vrot.slane %v748_v28, 4  ;;  %v415_v34 = vadd.f32 %v414_v32, %v8401_v11  ;;  %v416_v35 = vpop.f32.mrb[6].mxu0  ;;  %7079 = vmatpush3.bf16.msra.mxu0 %v7875_v20 }
 0x100   :  { %828 = vst [vmem:[#allocation2 + $0x40] sm:$0xf0] %v806_v30  ;;  %v417_v36 = vadd.f32 %v416_v35, %v8398_v10  ;;  %v418_v37 = vpop.f32.mrb[7].mxu0  ;;  %7080 = vmatprep.subr.bf16.mxu0 %v7877_v27  ;;  %v653_v40 = vmax.f32 %v413_v31, 0.0 }
 0x101   :  { %829 = vst [vmem:[#allocation2 + $0x48] sm:$0xf0] %v807_v33  ;;  %v419_v39 = vadd.f32 %v418_v37, %v8401_v11  ;;  %v654_v42 = vmax.f32 %v415_v34, 0.0 }
 0x102   :  { %v655_v41 = vmax.f32 %v417_v36, 0.0 }
 0x103   :  { %v656_v43 = vmax.f32 %v419_v39, 0.0  ;;  %7081 = vmatpush3.bf16.msra.mxu0 %v7877_v27 }
 0x104   :  { %v749_v44 = vpack.c.bf16 %v655_v41, %v653_v40  ;;  %7082 = vmatprep.subr.bf16.mxu0 %v7878_v38 }
 0x105   :  { %v750_v45 = vpack.c.bf16 %v656_v43, %v654_v42  ;;  %v422_v46 = vpop.f32.mrb[8].mxu0 }
 0x106   :  { %v808_v47 = vrot.slane %v749_v44, 4  ;;  %v423_v48 = vadd.f32 %v422_v46, %v8398_v10  ;;  %v424_v49 = vpop.f32.mrb[9].mxu0 }
 0x107   :  { %v810_v50 = vrot.slane %v750_v45, 4  ;;  %v425_v51 = vadd.f32 %v424_v49, %v8401_v11  ;;  %v426_v52 = vpop.f32.mrb[10].mxu0  ;;  %v982_v53 = vld [vmem:[#allocation2 + $0x40] sm:$0xff]  ;;  %7083 = vmatpush3.bf16.msra.mxu0 %v7878_v38 }
 0x108   :  { %v8428_v54 = vsel %vm805_vm0, %v806_v30, %v808_v47  ;;  %v427_v55 = vadd.f32 %v426_v52, %v8398_v10  ;;  %v428_v56 = vpop.f32.mrb[11].mxu0  ;;  %2064 = vrot.lane.b32.xlu1 %v982_v53, %s8077_s17  ;;  %v1170_v57 = vrot.slane %v982_v53, 4  ;;  %v983_v58 = vld [vmem:[#allocation2 + $0x48] sm:$0xff]  ;;  %3086 = vmatprep.subr.bf16.mxu0 %v8432_v59  ;;  %v657_v0 = vmax.f32 %v423_v48, 0.0 }
 0x109   :  { %830 = vst [vmem:[#allocation2 + $0x50] sm:$0xff] %v8428_v54  ;;  %v811_v61 = vsel %vm805_vm0, %v807_v33, %v810_v50  ;;  %v429_v62 = vadd.f32 %v428_v56, %v8401_v11  ;;  %2066 = vrot.lane.b32.xlu0 %v983_v58, %s8077_s17  ;;  %v1172_v63 = vrot.slane %v983_v58, 4  ;;  %v658_v1 = vmax.f32 %v425_v51, 0.0 }
 0x10a   :  { %831 = vst [vmem:[#allocation2 + $0x58] sm:$0xff] %v811_v61  ;;  %v659_v2 = vmax.f32 %v427_v55, 0.0  ;;  %v1176_v3 = vrot.slane %v811_v61, 4  ;;  %v1171_v7 = vsel %vm805_vm0, %v8376_v60, %v1170_v57  ;;  %v1174_v21 = vrot.slane %v8428_v54, 4 }
 0x10b   :  { %v660_v4 = vmax.f32 %v429_v62, 0.0  ;;  %v1173_v5 = vsel %vm805_vm0, %v8376_v60, %v1172_v63 }
 0x10c   :  { %v751_v6 = vpack.c.bf16 %v659_v2, %v657_v0  ;;  %1478 = vmatprep.mubr.bf16.mxu0 %v1173_v5  ;;  %2068 = vrot.lane.b32.xlu1 %v8428_v54, %s8077_s17  ;;  %v1177_v8 = vsel %vm805_vm0, %v1172_v63, %v1176_v3  ;;  %v1175_v30 = vsel %vm805_vm0, %v1170_v57, %v1174_v21 }
 0x10d   :  { %v752_v9 = vpack.c.bf16 %v660_v4, %v658_v1  ;;  %v432_v12 = vpop.f32.mrb[12].mxu0  ;;  %1479 = vmatmul.mubr.bf16.gmra.mrb[112].mxu0 %v1171_v7  ;;  %2070 = vrot.lane.b32.xlu0 %v811_v61, %s8077_s17 }
 0x10e   :  { %v812_v13 = vrot.slane %v751_v6, 4  ;;  %v433_v14 = vadd.f32 %v432_v12, %v8398_v10  ;;  %v434_v15 = vpop.f32.mrb[13].mxu0  ;;  %1486 = vmatprep.mubr.bf16.mxu0 %v1177_v8 }
 0x10f   :  { %v814_v16 = vrot.slane %v752_v9, 4  ;;  %v435_v17 = vadd.f32 %v434_v15, %v8401_v11  ;;  %v436_v18 = vpop.f32.mrb[14].mxu0 }
 0x110   :  { %v8450_v60 = vsel %vm805_vm0, %v808_v47, %v812_v13  ;;  %v437_v19 = vadd.f32 %v436_v18, %v8398_v10  ;;  %v438_v20 = vpop.f32.mrb[15].mxu0  ;;  %v661_v24 = vmax.f32 %v433_v14, 0.0 }
 0x111   :  { %832 = vst [vmem:[#allocation2 + $0x60] sm:$0xff] %v8450_v60  ;;  %v815_v22 = vsel %vm805_vm0, %v810_v50, %v814_v16  ;;  %v439_v23 = vadd.f32 %v438_v20, %v8401_v11  ;;  %2072 = vrot.lane.b32.xlu1 %v8450_v60, %s8077_s17  ;;  %v662_v27 = vmax.f32 %v435_v17, 0.0  ;;  %v1178_v43 = vrot.slane %v8450_v60, 4 }
 0x112   :  { %833 = vst [vmem:[#allocation2 + $0x68] sm:$0xff] %v815_v22  ;;  %v663_v25 = vmax.f32 %v437_v19, 0.0  ;;  %v1180_v26 = vrot.slane %v815_v22, 4  ;;  %2074 = vrot.lane.b32.xlu0 %v815_v22, %s8077_s17 }
 0x113   :  { %v664_v28 = vmax.f32 %v439_v23, 0.0  ;;  %v1179_v52 = vsel %vm805_vm0, %v1174_v21, %v1178_v43 }
 0x114   :  { %v753_v29 = vpack.c.bf16 %v663_v25, %v661_v24  ;;  %v1181_v31 = vsel %vm805_vm0, %v1176_v3, %v1180_v26 }
 0x115   :  { %v754_v32 = vpack.c.bf16 %v664_v28, %v662_v27  ;;  %v442_v33 = vpop.f32.mrb[16].mxu0  ;;  %1487 = vmatmul.mubr.bf16.gmra.mrb[116].mxu0 %v1175_v30 }
 0x116   :  { %v816_v34 = vrot.slane %v753_v29, 4  ;;  %836 = vst [vmem:[#allocation2 + $0x80] sm:$0xf0] %v753_v29  ;;  %v443_v35 = vadd.f32 %v442_v33, %v8398_v10  ;;  %v444_v36 = vpop.f32.mrb[17].mxu0  ;;  %1494 = vmatprep.mubr.bf16.mxu0 %v1181_v31 }
 0x117   :  { %v818_v37 = vrot.slane %v754_v32, 4  ;;  %837 = vst [vmem:[#allocation2 + $0x88] sm:$0xf0] %v754_v32  ;;  %v445_v38 = vadd.f32 %v444_v36, %v8401_v11  ;;  %v446_v39 = vpop.f32.mrb[18].mxu0 }
 0x118   :  { %v8465_v40 = vsel %vm805_vm0, %v812_v13, %v816_v34  ;;  %v447_v41 = vadd.f32 %v446_v39, %v8398_v10  ;;  %v448_v42 = vpop.f32.mrb[19].mxu0  ;;  %v665_v46 = vmax.f32 %v443_v35, 0.0 }
 0x119   :  { %834 = vst [vmem:[#allocation2 + $0x70] sm:$0xff] %v8465_v40  ;;  %v819_v44 = vsel %vm805_vm0, %v814_v16, %v818_v37  ;;  %v449_v45 = vadd.f32 %v448_v42, %v8401_v11  ;;  %v666_v49 = vmax.f32 %v445_v38, 0.0  ;;  %v1182_v3 = vrot.slane %v8465_v40, 4 }
 0x11a   :  { %835 = vst [vmem:[#allocation2 + $0x78] sm:$0xff] %v819_v44  ;;  %v667_v47 = vmax.f32 %v447_v41, 0.0  ;;  %v1184_v48 = vrot.slane %v819_v44, 4 }
 0x11b   :  { %v668_v50 = vmax.f32 %v449_v45, 0.0  ;;  %v1183_v12 = vsel %vm805_vm0, %v1178_v43, %v1182_v3 }
 0x11c   :  { %v8472_v51 = vpack.c.bf16 %v667_v47, %v665_v46  ;;  %v1185_v53 = vsel %vm805_vm0, %v1180_v26, %v1184_v48  ;;  %v7865_v47 = vld [vmem:[%s10944_s3] sm:$0xff]  }
 0x11d   :  { %v8476_v54 = vpack.c.bf16 %v668_v50, %v666_v49  ;;  %v452_v55 = vpop.f32.mrb[20].mxu0  ;;  %v8478_v56 = vld [vmem:[#allocation2 + $0x80] sm:$0xff]  ;;  %1495 = vmatmul.mubr.bf16.gmra.mrb[120].mxu0 %v1179_v52 }
 0x11e   :  { %838 = vst [vmem:[#allocation2 + $0x90] sm:$0xff] %v8472_v51  ;;  %v453_v57 = vadd.f32 %v452_v55, %v8398_v10  ;;  %v454_v58 = vpop.f32.mrb[21].mxu0  ;;  %2080 = vrot.lane.b32.xlu1 %v8478_v56, %s8077_s17  ;;  %v991_v61 = vld [vmem:[#allocation2 + $0x88] sm:$0xff]  ;;  %1502 = vmatprep.mubr.bf16.mxu0 %v1185_v53  ;;  %v1186_v19 = vrot.slane %v8478_v56, 4  ;;  %v1190_v43 = vrot.slane %v8472_v51, 4 }
 0x11f   :  { %839 = vst [vmem:[#allocation2 + $0x98] sm:$0xff] %v8476_v54  ;;  %v455_v62 = vadd.f32 %v454_v58, %v8401_v11  ;;  %v456_v63 = vpop.f32.mrb[22].mxu0  ;;  %2082 = vrot.lane.b32.xlu0 %v991_v61, %s8077_s17  ;;  %v1188_v1 = vrot.slane %v991_v61, 4  ;;  %v1192_v22 = vrot.slane %v8476_v54, 4  ;;  %v7866_v61 = vld [vmem:[%s10944_s3 + $0x8] sm:$0xff]  }
 0x120   :  { %v457_v0 = vadd.f32 %v456_v63, %v8398_v10  ;;  %v458_v2 = vpop.f32.mrb[23].mxu0  ;;  %v669_v5 = vmax.f32 %v453_v57, 0.0  ;;  %v1187_v29 = vsel %vm805_vm0, %v1182_v3, %v1186_v19  ;;  %v1191_v58 = vsel %vm805_vm0, %v1186_v19, %v1190_v43 }
 0x121   :  { %v459_v4 = vadd.f32 %v458_v2, %v8401_v11  ;;  %v670_v7 = vmax.f32 %v455_v62, 0.0  ;;  %v1189_v15 = vsel %vm805_vm0, %v1184_v48, %v1188_v1  ;;  %v1193_v32 = vsel %vm805_vm0, %v1188_v1, %v1192_v22  ;;  %v7772_v2 = vpop.permute.xlu0 %7771 }
 0x122   :  { %v671_v6 = vmax.f32 %v457_v0, 0.0  ;;  %2076 = vrot.lane.b32.xlu1 %v8465_v40, %s8077_s17 }
 0x123   :  { %v672_v8 = vmax.f32 %v459_v4, 0.0  ;;  %2078 = vrot.lane.b32.xlu0 %v819_v44, %s8077_s17 }
 0x124   :  { %v8493_v9 = vpack.c.bf16 %v671_v6, %v669_v5 }
 0x125   :  { %v8496_v13 = vpack.c.bf16 %v672_v8, %v670_v7  ;;  %v462_v14 = vpop.f32.mrb[24].mxu0  ;;  %1503 = vmatmul.mubr.bf16.gmra.mrb[124].mxu0 %v1183_v12  ;;  %v2648_v33 = vld [vmem:[#allocation2 + $0x90] sm:$0xff]  ;;  %v7773_v12 = vunpack.i.l.bf16 %v7772_v2 }
 0x126   :  { %840 = vst [vmem:[#allocation2 + $0xa0] sm:$0xff] %v8493_v9  ;;  %v463_v16 = vadd.f32 %v462_v14, %v8398_v10  ;;  %v464_v17 = vpop.f32.mrb[25].mxu0  ;;  %2084 = vrot.lane.b32.xlu1 %v8472_v51, %s8077_s17  ;;  %1510 = vmatprep.mubr.bf16.mxu0 %v1189_v15  ;;  %v1194_v44 = vrot.slane %v8493_v9, 4  ;;  %v8541_v48 = vrot.slane %v2648_v33, 4 }
 0x127   :  { %841 = vst [vmem:[#allocation2 + $0xa8] sm:$0xff] %v8496_v13  ;;  %v465_v18 = vadd.f32 %v464_v17, %v8401_v11  ;;  %v466_v60 = vpop.f32.mrb[26].mxu0  ;;  %2086 = vrot.lane.b32.xlu0 %v8476_v54, %s8077_s17  ;;  %v1196_v41 = vrot.slane %v8496_v13, 4 }
 0x128   :  { %v467_v20 = vadd.f32 %v466_v60, %v8398_v10  ;;  %v468_v21 = vpop.f32.mrb[27].mxu0  ;;  %v673_v24 = vmax.f32 %v463_v16, 0.0  ;;  %10986 = vst [vmem:[#allocation5_spill] sm:$0xff] %v8541_v48  ;;  %v7867_v16 = vld [vmem:[%s10944_s3 + $0x10] sm:$0xff]  }
 0x129   :  { %v469_v23 = vadd.f32 %v468_v21, %v8401_v11  ;;  %v674_v26 = vmax.f32 %v465_v18, 0.0  ;;  %v1197_v0 = vsel %vm805_vm0, %v1192_v22, %v1196_v41  ;;  %v7777_v22 = vpop.permute.xlu0 %7776 }
 0x12a   :  { %v675_v25 = vmax.f32 %v467_v20, 0.0  ;;  %2088 = vrot.lane.b32.xlu1 %v8493_v9, %s8077_s17  ;;  %v7774_v9 = vunpack.i.h.bf16 %v7772_v2 }
 0x12b   :  { %v676_v27 = vmax.f32 %v469_v23, 0.0  ;;  %2090 = vrot.lane.b32.xlu0 %v8496_v13, %s8077_s17 }
 0x12c   :  { %v8515_v28 = vpack.c.bf16 %v675_v25, %v673_v24  ;;  %v2165_v23 = vsel %vm2164_vm1, %v7773_v12, %v7774_v9  ;;  %v1195_v25 = vsel %vm805_vm0, %v1190_v43, %v1194_v44 }
 0x12d   :  { %v8518_v30 = vpack.c.bf16 %v676_v27, %v674_v26  ;;  %v472_v31 = vpop.f32.mrb[28].mxu0  ;;  %1511 = vmatmul.mubr.bf16.gmra.mrb[128].mxu0 %v1187_v29  ;;  %v8521_v34 = vld [vmem:[#allocation2 + $0xa0] sm:$0xff]  ;;  %v7869_v26 = vld [vmem:[%s10944_s3 + $0x18] sm:$0xff]  }
 0x12e   :  { %842 = vst [vmem:[#allocation2 + $0xb0] sm:$0xff] %v8515_v28  ;;  %v473_v35 = vadd.f32 %v472_v31, %v8398_v10  ;;  %v474_v36 = vpop.f32.mrb[29].mxu0  ;;  %1518 = vmatprep.mubr.bf16.mxu0 %v1193_v32  ;;  %v1198_v37 = vrot.slane %v8515_v28, 4  ;;  %2092 = vrot.lane.b32.xlu1 %v8515_v28, %s8077_s17  ;;  %v2842_v38 = vrot.slane %v8521_v34, 4  ;;  %v7779_v34 = vunpack.i.h.bf16 %v7777_v22  ;;  %v7876_v28 = vld [vmem:[%s10944_s3 + $0x28] sm:$0xff]  }
 0x12f   :  { %843 = vst [vmem:[#allocation2 + $0xb8] sm:$0xff] %v8518_v30  ;;  %v475_v39 = vadd.f32 %v474_v36, %v8401_v11  ;;  %v476_v40 = vpop.f32.mrb[30].mxu0  ;;  %v1200_v42 = vrot.slane %v8518_v30, 4  ;;  %2094 = vrot.lane.b32.xlu0 %v8518_v30, %s8077_s17  ;;  %v7782_v36 = vpop.permute.xlu1 %7781 }
 0x130   :  { %v477_v45 = vadd.f32 %v476_v40, %v8398_v10  ;;  %v478_v46 = vpop.f32.mrb[31].mxu0  ;;  %v677_v52 = vmax.f32 %v473_v35, 0.0  ;;  %v1199_v51 = vsel %vm805_vm0, %v1194_v44, %v1198_v37  ;;  %v8552_v54 = vsel %vm805_vm0, %v8541_v48, %v2842_v38 }
 0x131   :  { %v479_v49 = vadd.f32 %v478_v46, %v8401_v11  ;;  %v1201_v50 = vsel %vm805_vm0, %v1196_v41, %v1200_v42  ;;  %10987 = vst [vmem:[#allocation6_spill] sm:$0xff] %v8552_v54  ;;  %v678_v55 = vmax.f32 %v475_v39, 0.0  ;;  %v7778_v35 = vunpack.i.l.bf16 %v7777_v22 }
 0x132   :  { %v679_v53 = vmax.f32 %v477_v45, 0.0  ;;  %1534 = vmatprep.mubr.bf16.mxu1 %v1201_v50  ;;  %v7784_v43 = vunpack.i.h.bf16 %v7782_v36  ;;  %v7783_v44 = vunpack.i.l.bf16 %v7782_v36 }
 0x133   :  { %v680_v56 = vmax.f32 %v479_v49, 0.0  ;;  %1535 = vmatmul.mubr.bf16.vlgmr.msra.gmra.mrb[0].mxu1 %v1199_v51  ;;  %v2166_v2 = vsel %vm2164_vm1, %v7778_v35, %v7779_v34 }
 0x134   :  { %v761_v57 = vpack.c.bf16 %v679_v53, %v677_v52  ;;  %1776 = vmatpush1.bf16.msra.mxu1 %v7865_v47 }
 0x135   :  { %v8558_v62 = vpack.c.bf16 %v680_v56, %v678_v55  ;;  %v482_v63 = vpop.f32.mrb[32].mxu0  ;;  %1519 = vmatmul.mubr.bf16.gmra.mrb[132].mxu0 %v1191_v58  ;;  %1777 = vmatprep.subr.bf16.mxu1 %v8432_v59  ;;  %v8562_v3 = vld [vmem:[#allocation2 + $0xb0] sm:$0xff] }
 0x136   :  { %v852_v1 = vrot.slane %v761_v57, 4  ;;  %v483_v4 = vadd.f32 %v482_v63, %v8398_v10  ;;  %v484_v5 = vpop.f32.mrb[33].mxu0  ;;  %1526 = vmatprep.mubr.bf16.mxu0 %v1197_v0  ;;  %v2846_v17 = vrot.slane %v8562_v3, 4 }
 0x137   :  { %v853_v6 = vrot.slane %v8558_v62, 4  ;;  %v485_v7 = vadd.f32 %v484_v5, %v8401_v11  ;;  %v486_v8 = vpop.f32.mrb[34].mxu0  ;;  %v7873_v62 = vld [vmem:[%s10944_s3 + $0x20] sm:$0xff]  }
 0x138   :  { %874 = vst [vmem:[#allocation2 + $0xc0] sm:$0xf0] %v852_v1  ;;  %v681_v13 = vmax.f32 %v483_v4, 0.0  ;;  %v487_v14 = vadd.f32 %v486_v8, %v8398_v10  ;;  %v488_v15 = vpop.f32.mrb[35].mxu0  ;;  %1778 = vmatpush1.bf16.msra.mxu1 %v7866_v61  ;;  %v8577_v20 = vsel %vm805_vm0, %v2842_v38, %v2846_v17 }
 0x139   :  { %875 = vst [vmem:[#allocation2 + $0xc8] sm:$0xf0] %v853_v6  ;;  %v682_v18 = vmax.f32 %v485_v7, 0.0  ;;  %v489_v60 = vadd.f32 %v488_v15, %v8401_v11  ;;  %1779 = vmatprep.subr.bf16.mxu1 %v8432_v59  ;;  %10988 = vst [vmem:[#allocation7_spill] sm:$0xff] %v8577_v20 }
 0x13a   :  { %v683_v19 = vmax.f32 %v487_v14, 0.0 }
 0x13b   :  { %v684_v21 = vmax.f32 %v489_v60, 0.0 }
 0x13c   :  { %v8580_v24 = vpack.c.bf16 %v683_v19, %v681_v13  ;;  %1780 = vmatpush1.bf16.msra.mxu1 %v7867_v16 }
 0x13d   :  { %v8586_v27 = vpack.c.bf16 %v684_v21, %v682_v18  ;;  %v492_v29 = vpop.f32.mrb[36].mxu0  ;;  %1527 = vmatmul.mubr.bf16.gmra.mrb[136].mxu0 %v1195_v25  ;;  %1781 = vmatprep.subr.bf16.mxu1 %v8432_v59  ;;  %v7879_v25 = vld [vmem:[%s10944_s3 + $0x30] sm:$0xff]  }
 0x13e   :  { %v854_v31 = vrot.slane %v8580_v24, 4  ;;  %v493_v32 = vadd.f32 %v492_v29, %v8398_v10  ;;  %v494_v33 = vpop.f32.mrb[37].mxu0  ;;  %7084 = vmatprep.mubr.bf16.mxu0 %v2165_v23 }
 0x13f   :  { %v856_v38 = vrot.slane %v8586_v27, 4  ;;  %v495_v39 = vadd.f32 %v494_v33, %v8401_v11  ;;  %v496_v40 = vpop.f32.mrb[38].mxu0  ;;  %v8593_v41 = vld [vmem:[#allocation2 + $0xc0] sm:$0xff] }
 0x140   :  { %v8596_v45 = vsel %vm805_vm0, %v852_v1, %v854_v31  ;;  %v685_v46 = vmax.f32 %v493_v32, 0.0  ;;  %v497_v47 = vadd.f32 %v496_v40, %v8398_v10  ;;  %v498_v49 = vpop.f32.mrb[39].mxu0  ;;  %v1202_v50 = vrot.slane %v8593_v41, 4  ;;  %2096 = vrot.lane.b32.xlu1 %v8593_v41, %s8077_s17  ;;  %v999_v52 = vld [vmem:[#allocation2 + $0xc8] sm:$0xff]  ;;  %1782 = vmatpush1.bf16.msra.mxu1 %v7869_v26  ;;  %v8602_v53 = vld [vmem:[#allocation2 + $0xc0] sm:$0xff] }
 0x141   :  { %876 = vst [vmem:[#allocation2 + $0xd0] sm:$0xff] %v8596_v45  ;;  %v857_v51 = vsel %vm805_vm0, %v853_v6, %v856_v38  ;;  %v686_v55 = vmax.f32 %v495_v39, 0.0  ;;  %v499_v56 = vadd.f32 %v498_v49, %v8401_v11  ;;  %v1204_v57 = vrot.slane %v999_v52, 4  ;;  %2098 = vrot.lane.b32.xlu0 %v999_v52, %s8077_s17  ;;  %1783 = vmatprep.subr.bf16.mxu1 %v8432_v59 }
 0x142   :  { %877 = vst [vmem:[#allocation2 + $0xd8] sm:$0xff] %v857_v51  ;;  %v687_v58 = vmax.f32 %v497_v47, 0.0  ;;  %v1208_v61 = vrot.slane %v857_v51, 4  ;;  %v10950_v1 = vrot.slane %v8602_v53, 4  ;;  %v1203_v5 = vsel %vm805_vm0, %v1198_v37, %v1202_v50 }
 0x143   :  { %v688_v63 = vmax.f32 %v499_v56, 0.0  ;;  %v1205_v0 = vsel %vm805_vm0, %v1200_v42, %v1204_v57  ;;  %v2167_v42 = vsel %vm2164_vm1, %v7783_v44, %v7784_v43  ;;  %v1206_v21 = vrot.slane %v8596_v45, 4 }
 0x144   :  { %v765_v4 = vpack.c.bf16 %v687_v58, %v685_v46  ;;  %1542 = vmatprep.mubr.bf16.mxu1 %v1205_v0  ;;  %2100 = vrot.lane.b32.xlu1 %v8596_v45, %s8077_s17  ;;  %v1209_v6 = vsel %vm805_vm0, %v1204_v57, %v1208_v61  ;;  %v8636_v37 = vsel %vm805_vm0, %v2846_v17, %v10950_v1  ;;  %v7881_v57 = vld [vmem:[%s10944_s3 + $0x40] sm:$0xff]  }
 0x145   :  { %v766_v30 = vpack.c.bf16 %v688_v63, %v686_v55  ;;  %v502_v7 = vpop.f32.mrb[40].mxu0  ;;  %1543 = vmatmul.mubr.bf16.gmra.mrb[4].mxu1 %v1203_v5  ;;  %2102 = vrot.lane.b32.xlu0 %v857_v51, %s8077_s17  ;;  %10989 = vst [vmem:[#allocation8_spill] sm:$0xff] %v8636_v37  ;;  %v1207_v29 = vsel %vm805_vm0, %v1202_v50, %v1206_v21  ;;  %v1064_v1 = vld [vmem:[#allocation2 + $0x1c0] sm:$0xf] }
 0x146   :  { %v858_v8 = vrot.slane %v765_v4, 4  ;;  %v503_v9 = vadd.f32 %v502_v7, %v8398_v10  ;;  %v504_v12 = vpop.f32.mrb[41].mxu0  ;;  %1550 = vmatprep.mubr.bf16.mxu1 %v1209_v6  ;;  %1784 = vmatpush1.bf16.msra.mxu1 %v7873_v62 }
 0x147   :  { %v860_v13 = vrot.slane %v766_v30, 4  ;;  %v505_v14 = vadd.f32 %v504_v12, %v8401_v11  ;;  %v506_v15 = vpop.f32.mrb[42].mxu0  ;;  %1785 = vmatprep.subr.bf16.mxu1 %v8432_v59  ;;  %7085 = vmatmul.mubr.bf16.vlgmr.msra.gmra.mrb[140].mxu0 %v2166_v2 }
 0x148   :  { %v8641_v16 = vsel %vm805_vm0, %v854_v31, %v858_v8  ;;  %v689_v18 = vmax.f32 %v503_v9, 0.0  ;;  %v507_v60 = vadd.f32 %v506_v15, %v8398_v10  ;;  %v508_v19 = vpop.f32.mrb[43].mxu0  ;;  %7088 = vmatprep.mubr.bf16.mxu0 %v2167_v42  ;;  %v7882_v42 = vld [vmem:[%s10944_s3 + $0x48] sm:$0xff]  }
 0x149   :  { %878 = vst [vmem:[#allocation2 + $0xe0] sm:$0xff] %v8641_v16  ;;  %v861_v3 = vsel %vm805_vm0, %v856_v38, %v860_v13  ;;  %v690_v17 = vmax.f32 %v505_v14, 0.0  ;;  %v509_v22 = vadd.f32 %v508_v19, %v8401_v11  ;;  %2104 = vrot.lane.b32.xlu1 %v8641_v16, %s8077_s17  ;;  %v7880_v38 = vld [vmem:[%s10944_s3 + $0x38] sm:$0xff]   ;;  %v1210_v47 = vrot.slane %v8641_v16, 4 }
 0x14a   :  { %879 = vst [vmem:[#allocation2 + $0xe8] sm:$0xff] %v861_v3  ;;  %v691_v23 = vmax.f32 %v507_v60, 0.0  ;;  %v1212_v24 = vrot.slane %v861_v3, 4  ;;  %2106 = vrot.lane.b32.xlu0 %v861_v3, %s8077_s17  ;;  %1786 = vmatpush1.bf16.msra.mxu1 %v7876_v28  ;;  %v7883_v60 = vld [vmem:[%s10944_s3 + $0x50] sm:$0xff]  }
 0x14b   :  { %v692_v26 = vmax.f32 %v509_v22, 0.0  ;;  %1787 = vmatprep.subr.bf16.mxu1 %v8432_v59 }
 0x14c   :  { %v767_v27 = vpack.c.bf16 %v691_v23, %v689_v18  ;;  %v1213_v31 = vsel %vm805_vm0, %v1208_v61, %v1212_v24  ;;  %v1211_v61 = vsel %vm805_vm0, %v1206_v21, %v1210_v47 }
 0x14d   :  { %v768_v32 = vpack.c.bf16 %v692_v26, %v690_v17  ;;  %v512_v33 = vpop.f32.mrb[44].mxu0  ;;  %1551 = vmatmul.mubr.bf16.gmra.mrb[8].mxu1 %v1207_v29 }
 0x14e   :  { %v862_v34 = vrot.slane %v767_v27, 4  ;;  %882 = vst [vmem:[#allocation2 + $0x100] sm:$0xf0] %v767_v27  ;;  %v513_v35 = vadd.f32 %v512_v33, %v8398_v10  ;;  %v514_v36 = vpop.f32.mrb[45].mxu0  ;;  %1558 = vmatprep.mubr.bf16.mxu1 %v1213_v31  ;;  %1788 = vmatpush1.bf16.msra.mxu1 %v7879_v25  ;;  %v7884_v27 = vld [vmem:[%s10944_s3 + $0x58] sm:$0xff]  }
 0x14f   :  { %v864_v39 = vrot.slane %v768_v32, 4  ;;  %883 = vst [vmem:[#allocation2 + $0x108] sm:$0xf0] %v768_v32  ;;  %v515_v40 = vadd.f32 %v514_v36, %v8401_v11  ;;  %v516_v41 = vpop.f32.mrb[46].mxu0  ;;  %1789 = vmatprep.subr.bf16.mxu1 %v8432_v59 }
 0x150   :  { %v8666_v43 = vsel %vm805_vm0, %v858_v8, %v862_v34  ;;  %v693_v44 = vmax.f32 %v513_v35, 0.0  ;;  %v517_v45 = vadd.f32 %v516_v41, %v8398_v10  ;;  %v518_v46 = vpop.f32.mrb[47].mxu0 }
 0x151   :  { %880 = vst [vmem:[#allocation2 + $0xf0] sm:$0xff] %v8666_v43  ;;  %v865_v49 = vsel %vm805_vm0, %v860_v13, %v864_v39  ;;  %v694_v50 = vmax.f32 %v515_v40, 0.0  ;;  %v519_v52 = vadd.f32 %v518_v46, %v8401_v11  ;;  %v1214_v28 = vrot.slane %v8666_v43, 4  ;;  %v7885_v40 = vld [vmem:[%s10944_s3 + $0x60] sm:$0xff]  }
 0x152   :  { %881 = vst [vmem:[#allocation2 + $0xf8] sm:$0xff] %v865_v49  ;;  %v695_v51 = vmax.f32 %v517_v45, 0.0  ;;  %v1216_v55 = vrot.slane %v865_v49, 4  ;;  %1790 = vmatpush1.bf16.msra.mxu1 %v7880_v38 }
 0x153   :  { %v696_v56 = vmax.f32 %v519_v52, 0.0  ;;  %1791 = vmatprep.subr.bf16.mxu1 %v8432_v59  ;;  %v1215_v21 = vsel %vm805_vm0, %v1210_v47, %v1214_v28 }
 0x154   :  { %v8677_v58 = vpack.c.bf16 %v695_v51, %v693_v44  ;;  %v1217_v62 = vsel %vm805_vm0, %v1212_v24, %v1216_v55  ;;  %v7886_v51 = vld [vmem:[%s10944_s3 + $0x68] sm:$0xff]  }
 0x155   :  { %v8681_v63 = vpack.c.bf16 %v696_v56, %v694_v50  ;;  %v522_v0 = vpop.f32.mrb[48].mxu0  ;;  %1559 = vmatmul.mubr.bf16.gmra.mrb[12].mxu1 %v1211_v61  ;;  %v8683_v2 = vld [vmem:[#allocation2 + $0x100] sm:$0xff] }
 0x156   :  { %884 = vst [vmem:[#allocation2 + $0x110] sm:$0xff] %v8677_v58  ;;  %v523_v4 = vadd.f32 %v522_v0, %v8398_v10  ;;  %v524_v5 = vpop.f32.mrb[49].mxu0  ;;  %2112 = vrot.lane.b32.xlu1 %v8683_v2, %s8077_s17  ;;  %v1007_v6 = vld [vmem:[#allocation2 + $0x108] sm:$0xff]  ;;  %1566 = vmatprep.mubr.bf16.mxu1 %v1217_v62  ;;  %v1218_v29 = vrot.slane %v8683_v2, 4 }
 0x157   :  { %885 = vst [vmem:[#allocation2 + $0x118] sm:$0xff] %v8681_v63  ;;  %v525_v30 = vadd.f32 %v524_v5, %v8401_v11  ;;  %v526_v7 = vpop.f32.mrb[50].mxu0  ;;  %2114 = vrot.lane.b32.xlu0 %v1007_v6, %s8077_s17  ;;  %1792 = vmatpush1.bf16.msra.mxu1 %v7881_v57  ;;  %v1220_v14 = vrot.slane %v1007_v6, 4  ;;  %v1224_v36 = vrot.slane %v8681_v63, 4  ;;  %v7887_v5 = vld [vmem:[%s10944_s3 + $0x70] sm:$0xff]  }
 0x158   :  { %v697_v8 = vmax.f32 %v523_v4, 0.0  ;;  %v527_v9 = vadd.f32 %v526_v7, %v8398_v10  ;;  %v528_v12 = vpop.f32.mrb[51].mxu0  ;;  %1793 = vmatprep.subr.bf16.mxu1 %v8432_v59 }
 0x159   :  { %v698_v13 = vmax.f32 %v525_v30, 0.0  ;;  %v529_v15 = vadd.f32 %v528_v12, %v8401_v11  ;;  %v1221_v22 = vsel %vm805_vm0, %v1216_v55, %v1220_v14  ;;  %v1225_v46 = vsel %vm805_vm0, %v1220_v14, %v1224_v36 }
 0x15a   :  { %v699_v16 = vmax.f32 %v527_v9, 0.0  ;;  %2108 = vrot.lane.b32.xlu1 %v8666_v43, %s8077_s17  ;;  %v1219_v43 = vsel %vm805_vm0, %v1214_v28, %v1218_v29  ;;  %v1222_v55 = vrot.slane %v8677_v58, 4  ;;  %v7891_v28 = vld [vmem:[%s10944_s3 + $0x1c0] sm:$0xff]  }
 0x15b   :  { %v700_v18 = vmax.f32 %v529_v15, 0.0  ;;  %2110 = vrot.lane.b32.xlu0 %v865_v49, %s8077_s17  ;;  %1794 = vmatpush1.bf16.msra.mxu1 %v7882_v42 }
 0x15c   :  { %v8705_v19 = vpack.c.bf16 %v699_v16, %v697_v8  ;;  %1795 = vmatprep.subr.bf16.mxu1 %v8432_v59  ;;  %v7888_v16 = vld [vmem:[%s10944_s3 + $0x78] sm:$0xff]   ;;  %3087 = vmatpush1.bf16.msra.mxu0 %v7891_v28 }
 0x15d   :  { %v8709_v3 = vpack.c.bf16 %v700_v18, %v698_v13  ;;  %v532_v17 = vpop.f32.mrb[52].mxu0  ;;  %1567 = vmatmul.mubr.bf16.gmra.mrb[16].mxu1 %v1215_v21  ;;  %3088 = vmatprep.subr.bf16.mxu0 %v8432_v59 }
 0x15e   :  { %886 = vst [vmem:[#allocation2 + $0x120] sm:$0xff] %v8705_v19  ;;  %v533_v23 = vadd.f32 %v532_v17, %v8398_v10  ;;  %v534_v24 = vpop.f32.mrb[53].mxu0  ;;  %1574 = vmatprep.mubr.bf16.mxu1 %v1221_v22  ;;  %2116 = vrot.lane.b32.xlu1 %v8677_v58, %s8077_s17  ;;  %v1223_v58 = vsel %vm805_vm0, %v1218_v29, %v1222_v55  ;;  %v1226_v18 = vrot.slane %v8705_v19, 4  ;;  %v8778_v17 = vld [vmem:[%s10944_s3 + $0x240] sm:$0xff]  }
 0x15f   :  { %887 = vst [vmem:[#allocation2 + $0x128] sm:$0xff] %v8709_v3  ;;  %v535_v25 = vadd.f32 %v534_v24, %v8401_v11  ;;  %v536_v26 = vpop.f32.mrb[54].mxu0  ;;  %2118 = vrot.lane.b32.xlu0 %v8681_v63, %s8077_s17  ;;  %1796 = vmatpush1.bf16.msra.mxu1 %v7883_v60  ;;  %v1228_v0 = vrot.slane %v8709_v3, 4 }
 0x160   :  { %v701_v31 = vmax.f32 %v533_v23, 0.0  ;;  %v537_v32 = vadd.f32 %v536_v26, %v8398_v10  ;;  %v538_v33 = vpop.f32.mrb[55].mxu0  ;;  %1797 = vmatprep.subr.bf16.mxu1 %v8432_v59  ;;  %v1227_v29 = vsel %vm805_vm0, %v1222_v55, %v1226_v18 }
 0x161   :  { %v702_v34 = vmax.f32 %v535_v25, 0.0  ;;  %v539_v35 = vadd.f32 %v538_v33, %v8401_v11  ;;  %v1229_v42 = vsel %vm805_vm0, %v1224_v36, %v1228_v0 }
 0x162   :  { %v703_v38 = vmax.f32 %v537_v32, 0.0  ;;  %2120 = vrot.lane.b32.xlu1 %v8705_v19, %s8077_s17  ;;  %v7892_v19 = vld [vmem:[%s10944_s3 + $0x1c8] sm:$0xff]  }
 0x163   :  { %v704_v39 = vmax.f32 %v539_v35, 0.0  ;;  %2122 = vrot.lane.b32.xlu0 %v8709_v3, %s8077_s17  ;;  %1798 = vmatpush1.bf16.msra.mxu1 %v7884_v27 }
 0x164   :  { %v8735_v41 = vpack.c.bf16 %v703_v38, %v701_v31  ;;  %1799 = vmatprep.subr.bf16.mxu1 %v8432_v59  ;;  %3089 = vmatpush1.bf16.msra.mxu0 %v7892_v19  ;;  %v7893_v38 = vld [vmem:[%s10944_s3 + $0x1d0] sm:$0xff]  }
 0x165   :  { %v8739_v44 = vpack.c.bf16 %v704_v39, %v702_v34  ;;  %v542_v45 = vpop.f32.mrb[56].mxu0  ;;  %1575 = vmatmul.mubr.bf16.gmra.mrb[20].mxu1 %v1219_v43  ;;  %3090 = vmatprep.subr.bf16.mxu0 %v8432_v59 }
 0x166   :  { %888 = vst [vmem:[#allocation2 + $0x130] sm:$0xff] %v8735_v41  ;;  %v543_v47 = vadd.f32 %v542_v45, %v8398_v10  ;;  %v544_v49 = vpop.f32.mrb[57].mxu0  ;;  %1582 = vmatprep.mubr.bf16.mxu1 %v1225_v46  ;;  %2124 = vrot.lane.b32.xlu1 %v8735_v41, %s8077_s17  ;;  %v1230_v46 = vrot.slane %v8735_v41, 4 }
 0x167   :  { %889 = vst [vmem:[#allocation2 + $0x138] sm:$0xff] %v8739_v44  ;;  %v545_v50 = vadd.f32 %v544_v49, %v8401_v11  ;;  %v546_v52 = vpop.f32.mrb[58].mxu0  ;;  %2126 = vrot.lane.b32.xlu0 %v8739_v44, %s8077_s17  ;;  %1800 = vmatpush1.bf16.msra.mxu1 %v7885_v40  ;;  %v1232_v24 = vrot.slane %v8739_v44, 4 }
 0x168   :  { %v705_v56 = vmax.f32 %v543_v47, 0.0  ;;  %v547_v57 = vadd.f32 %v546_v52, %v8398_v10  ;;  %v548_v61 = vpop.f32.mrb[59].mxu0  ;;  %1801 = vmatprep.subr.bf16.mxu1 %v8432_v59  ;;  %3091 = vmatpush1.bf16.msra.mxu0 %v7893_v38 }
 0x169   :  { %v706_v62 = vmax.f32 %v545_v50, 0.0  ;;  %v549_v63 = vadd.f32 %v548_v61, %v8401_v11  ;;  %v1233_v33 = vsel %vm805_vm0, %v1228_v0, %v1232_v24  ;;  %3092 = vmatprep.subr.bf16.mxu0 %v8432_v59 }
 0x16a   :  { %v707_v2 = vmax.f32 %v547_v57, 0.0 }
 0x16b   :  { %v708_v4 = vmax.f32 %v549_v63, 0.0  ;;  %1802 = vmatpush1.bf16.msra.mxu1 %v7886_v51 }
 0x16c   :  { %v775_v6 = vpack.c.bf16 %v707_v2, %v705_v56  ;;  %1803 = vmatprep.subr.bf16.mxu1 %v8432_v59  ;;  %v7894_v2 = vld [vmem:[%s10944_s3 + $0x1d8] sm:$0xff]  }
 0x16d   :  { %v776_v30 = vpack.c.bf16 %v708_v4, %v706_v62  ;;  %v552_v7 = vpop.f32.mrb[60].mxu0  ;;  %1583 = vmatmul.mubr.bf16.gmra.mrb[24].mxu1 %v1223_v58  ;;  %3093 = vmatpush1.bf16.msra.mxu0 %v7894_v2 }
 0x16e   :  { %v898_v8 = vrot.slane %v775_v6, 4  ;;  %v553_v9 = vadd.f32 %v552_v7, %v8398_v10  ;;  %v554_v12 = vpop.f32.mrb[61].mxu0  ;;  %1590 = vmatprep.mubr.bf16.mxu1 %v1229_v42  ;;  %v1231_v6 = vsel %vm805_vm0, %v1226_v18, %v1230_v46 }
 0x16f   :  { %v899_v13 = vrot.slane %v776_v30, 4  ;;  %v555_v14 = vadd.f32 %v554_v12, %v8401_v11  ;;  %v556_v15 = vpop.f32.mrb[62].mxu0  ;;  %1804 = vmatpush1.bf16.msra.mxu1 %v7887_v5 }
 0x170   :  { %920 = vst [vmem:[#allocation2 + $0x140] sm:$0xf0] %v898_v8  ;;  %v709_v60 = vmax.f32 %v553_v9, 0.0  ;;  %v557_v21 = vadd.f32 %v556_v15, %v8398_v10  ;;  %v558_v3 = vpop.f32.mrb[63].mxu0  ;;  %1805 = vmatprep.subr.bf16.mxu1 %v8432_v59 }
 0x171   :  { %921 = vst [vmem:[#allocation2 + $0x148] sm:$0xf0] %v899_v13  ;;  %v710_v22 = vmax.f32 %v555_v14, 0.0  ;;  %v559_v23 = vadd.f32 %v558_v3, %v8401_v11 }
 0x172   :  { %v711_v25 = vmax.f32 %v557_v21, 0.0 }
 0x173   :  { %v712_v26 = vmax.f32 %v559_v23, 0.0  ;;  %1806 = vmatpush1.bf16.msra.mxu1 %v7888_v16  ;;  %v7895_v16 = vld [vmem:[%s10944_s3 + $0x1e0] sm:$0xff]   ;;  %v8856_v23 = vld [vmem:[#allocation2 + $0x218] sm:$0xff] }
 0x174   :  { %v8786_v27 = vpack.c.bf16 %v711_v25, %v709_v60  ;;  %7140 = vmatprep.subr.bf16.mxu1 %v8778_v17  ;;  %3094 = vmatprep.subr.bf16.mxu0 %v8856_v23 }
 0x175   :  { %v8790_v31 = vpack.c.bf16 %v712_v26, %v710_v22  ;;  %v562_v32 = vpop.f32.mrb[64].mxu0  ;;  %1591 = vmatmul.mubr.bf16.gmra.mrb[28].mxu1 %v1227_v29  ;;  %3095 = vmatpush1.bf16.msra.mxu0 %v7895_v16 }
 0x176   :  { %v900_v34 = vrot.slane %v8786_v27, 4  ;;  %v563_v35 = vadd.f32 %v562_v32, %v8398_v10  ;;  %v564_v36 = vpop.f32.mrb[65].mxu0  ;;  %1598 = vmatprep.mubr.bf16.mxu1 %v1233_v33  ;;  %v7896_v32 = vld [vmem:[%s10944_s3 + $0x1e8] sm:$0xff]   ;;  %3096 = vmatprep.subr.bf16.mxu0 %v8856_v23 }
 0x177   :  { %v902_v39 = vrot.slane %v8790_v31, 4  ;;  %v565_v40 = vadd.f32 %v564_v36, %v8401_v11  ;;  %v566_v43 = vpop.f32.mrb[66].mxu0  ;;  %v8801_v44 = vld [vmem:[#allocation2 + $0x140] sm:$0xff] }
 0x178   :  { %v8804_v45 = vsel %vm805_vm0, %v898_v8, %v900_v34  ;;  %v713_v47 = vmax.f32 %v563_v35, 0.0  ;;  %v567_v49 = vadd.f32 %v566_v43, %v8398_v10  ;;  %v568_v50 = vpop.f32.mrb[67].mxu0  ;;  %v8808_v52 = vld [vmem:[#allocation2 + $0x148] sm:$0xff]  ;;  %2128 = vrot.lane.b32.xlu1 %v8801_v44, %s8077_s17  ;;  %v8845_v28 = vrot.slane %v8801_v44, 4 }
 0x179   :  { %922 = vst [vmem:[#allocation2 + $0x150] sm:$0xff] %v8804_v45  ;;  %v8814_v51 = vsel %vm805_vm0, %v899_v13, %v902_v39  ;;  %v714_v55 = vmax.f32 %v565_v40, 0.0  ;;  %v569_v56 = vadd.f32 %v568_v50, %v8401_v11  ;;  %v8818_v57 = vrot.slane %v8808_v52, 4  ;;  %2130 = vrot.lane.b32.xlu0 %v8808_v52, %s8077_s17  ;;  %3097 = vmatpush1.bf16.msra.mxu0 %v7896_v32 }
 0x17a   :  { %923 = vst [vmem:[#allocation2 + $0x158] sm:$0xff] %v8814_v51  ;;  %v715_v61 = vmax.f32 %v567_v49, 0.0  ;;  %v2065_v62 = vpop.permute.xlu1 %2064  ;;  %10991 = vst [vmem:[#allocation10_spill] sm:$0xff] %v8845_v28  ;;  %v1240_v26 = vrot.slane %v8814_v51, 4  ;;  %3098 = vmatprep.subr.bf16.mxu0 %v8856_v23 }
 0x17b   :  { %10990 = vst [vmem:[#allocation9_spill] sm:$0xff] %v8818_v57  ;;  %v716_v63 = vmax.f32 %v569_v56, 0.0  ;;  %v2067_v0 = vpop.permute.xlu0 %2066  ;;  %v1237_v30 = vsel %vm805_vm0, %v1232_v24, %v8818_v57  ;;  %v1238_v56 = vrot.slane %v8804_v45, 4 }
 0x17c   :  { %v8827_v4 = vpack.c.bf16 %v715_v61, %v713_v47  ;;  %v2168_v5 = vsel %vm2164_vm1, %v2065_v62, %v2067_v0  ;;  %2132 = vrot.lane.b32.xlu1 %v8804_v45, %s8077_s17 }
 0x17d   :  { %v8835_v59 = vpack.c.bf16 %v716_v63, %v714_v55  ;;  %v572_v58 = vpop.f32.mrb[68].mxu0  ;;  %7089 = vmatmul.mubr.bf16.gmra.mrb[144].mxu0 %v2168_v5  ;;  %1599 = vmatmul.mubr.bf16.gmra.mrb[32].mxu1 %v1231_v6 }
 0x17e   :  { %v904_v7 = vrot.slane %v8827_v4, 4  ;;  %v573_v42 = vadd.f32 %v572_v58, %v8398_v10  ;;  %v574_v8 = vpop.f32.mrb[69].mxu0  ;;  %1606 = vmatprep.mubr.bf16.mxu1 %v1237_v30  ;;  %2134 = vrot.lane.b32.xlu0 %v8814_v51, %s8077_s17  ;;  %v2069_v9 = vpop.permute.xlu1 %2068  ;;  %v7898_v51 = vld [vmem:[%s10944_s3 + $0x1f0] sm:$0xff]  }
 0x17f   :  { %v906_v12 = vrot.slane %v8835_v59, 4  ;;  %v575_v13 = vadd.f32 %v574_v8, %v8401_v11  ;;  %v576_v14 = vpop.f32.mrb[70].mxu0  ;;  %v2071_v15 = vpop.permute.xlu0 %2070  ;;  %3099 = vmatpush1.bf16.msra.mxu0 %v7898_v51 }
 0x180   :  { %v8852_v18 = vsel %vm805_vm0, %v900_v34, %v904_v7  ;;  %v717_v60 = vmax.f32 %v573_v42, 0.0  ;;  %v577_v21 = vadd.f32 %v576_v14, %v8398_v10  ;;  %v578_v3 = vpop.f32.mrb[71].mxu0  ;;  %v2169_v22 = vsel %vm2164_vm1, %v2069_v9, %v2071_v15  ;;  %v8891_v0 = vld [vmem:[#allocation2 + $0x150] sm:$0xff]  ;;  %v7899_v42 = vld [vmem:[%s10944_s3 + $0x1f8] sm:$0xff]   ;;  %3100 = vmatprep.subr.bf16.mxu0 %v8856_v23 }
 0x181   :  { %924 = vst [vmem:[#allocation2 + $0x160] sm:$0xff] %v8852_v18  ;;  %v8861_v24 = vsel %vm805_vm0, %v902_v39, %v906_v12  ;;  %v718_v19 = vmax.f32 %v575_v13, 0.0  ;;  %v579_v25 = vadd.f32 %v578_v3, %v8401_v11  ;;  %7092 = vmatprep.mubr.bf16.mxu0 %v2169_v22  ;;  %2136 = vrot.lane.b32.xlu1 %v8852_v18, %s8077_s17 }
 0x182   :  { %925 = vst [vmem:[#allocation2 + $0x168] sm:$0xff] %v8861_v24  ;;  %v719_v27 = vmax.f32 %v577_v21, 0.0  ;;  %2138 = vrot.lane.b32.xlu0 %v8861_v24, %s8077_s17  ;;  %v1235_v34 = vsel %vm805_vm0, %v1230_v46, %v8845_v28  ;;  %v1241_v39 = vsel %vm805_vm0, %v8818_v57, %v1240_v26  ;;  %v1244_v45 = vrot.slane %v8861_v24, 4 }
 0x183   :  { %v720_v29 = vmax.f32 %v579_v25, 0.0  ;;  %v2073_v31 = vpop.permute.xlu1 %2072  ;;  %v1239_v9 = vsel %vm805_vm0, %v8845_v28, %v1238_v56  ;;  %3101 = vmatpush1.bf16.msra.mxu0 %v7899_v42  ;;  %v9286_v28 = vld [vmem:[#allocation2 + $0x130] sm:$0xff] }
 0x184   :  { %v781_v33 = vpack.c.bf16 %v719_v27, %v717_v60  ;;  %v2075_v35 = vpop.permute.xlu0 %2074  ;;  %v1245_v14 = vsel %vm805_vm0, %v1240_v26, %v1244_v45  ;;  %v7900_v26 = vld [vmem:[%s10944_s3 + $0x200] sm:$0xff]   ;;  %v1242_v27 = vrot.slane %v8852_v18, 4  ;;  %3102 = vmatprep.subr.bf16.mxu0 %v8856_v23 }
 0x185   :  { %v782_v36 = vpack.c.bf16 %v720_v29, %v718_v19  ;;  %v582_v38 = vpop.f32.mrb[72].mxu0  ;;  %1607 = vmatmul.mubr.bf16.gmra.mrb[36].mxu1 %v1235_v34  ;;  %v2170_v40 = vsel %vm2164_vm1, %v2073_v31, %v2075_v35 }
 0x186   :  { %v908_v43 = vrot.slane %v781_v33, 4  ;;  %928 = vst [vmem:[#allocation2 + $0x180] sm:$0xf0] %v781_v33  ;;  %v583_v47 = vadd.f32 %v582_v38, %v8398_v10  ;;  %v584_v49 = vpop.f32.mrb[73].mxu0  ;;  %1614 = vmatprep.mubr.bf16.mxu1 %v1241_v39  ;;  %7093 = vmatmul.mubr.bf16.gmra.mrb[148].mxu0 %v2170_v40 }
 0x187   :  { %v910_v41 = vrot.slane %v782_v36, 4  ;;  %929 = vst [vmem:[#allocation2 + $0x188] sm:$0xf0] %v782_v36  ;;  %v585_v46 = vadd.f32 %v584_v49, %v8401_v11  ;;  %v586_v50 = vpop.f32.mrb[74].mxu0  ;;  %3103 = vmatpush1.bf16.msra.mxu0 %v7900_v26  ;;  %v1243_v49 = vsel %vm805_vm0, %v1238_v56, %v1242_v27 }
 0x188   :  { %v8887_v55 = vsel %vm805_vm0, %v904_v7, %v908_v43  ;;  %v721_v61 = vmax.f32 %v583_v47, 0.0  ;;  %v587_v62 = vadd.f32 %v586_v50, %v8398_v10  ;;  %v588_v63 = vpop.f32.mrb[75].mxu0  ;;  %v8893_v2 = vld [vmem:[#allocation2 + $0x160] sm:$0xff]  ;;  %v8907_v7 = vrot.slane %v8891_v0, 4  ;;  %3104 = vmatprep.subr.bf16.mxu0 %v8856_v23 }
 0x189   :  { %926 = vst [vmem:[#allocation2 + $0x170] sm:$0xff] %v8887_v55  ;;  %v8898_v4 = vsel %vm805_vm0, %v906_v12, %v910_v41  ;;  %v722_v5 = vmax.f32 %v585_v46, 0.0  ;;  %v589_v6 = vadd.f32 %v588_v63, %v8401_v11  ;;  %v8904_v58 = vrot.slane %v8893_v2, 4 }
 0x18a   :  { %927 = vst [vmem:[#allocation2 + $0x178] sm:$0xff] %v8898_v4  ;;  %v723_v59 = vmax.f32 %v587_v62, 0.0  ;;  %10993 = vst [vmem:[#allocation12_spill] sm:$0xff] %v8907_v7  ;;  %v8944_v31 = vrot.slane %v8898_v4, 4  ;;  %v7901_v62 = vld [vmem:[%s10944_s3 + $0x208] sm:$0xff]   ;;  %v8983_v42 = vrot.slane %v8887_v55, 4 }
 0x18b   :  { %10992 = vst [vmem:[#allocation11_spill] sm:$0xff] %v8904_v58  ;;  %v724_v30 = vmax.f32 %v589_v6, 0.0  ;;  %v8925_v16 = vsel %vm805_vm0, %v8907_v7, %v8904_v58  ;;  %3105 = vmatpush1.bf16.msra.mxu0 %v7901_v62  ;;  %v9201_v58 = vld [vmem:[#allocation2 + $0xc0] sm:$0xff]  ;;  %v9265_v7 = vld [vmem:[#allocation2 + $0x110] sm:$0xff] }
 0x18c   :  { %v8912_v8 = vpack.c.bf16 %v723_v59, %v721_v61  ;;  %10994 = vst [vmem:[#allocation13_spill] sm:$0xff] %v8925_v16  ;;  %10995 = vst [vmem:[#allocation14_spill] sm:$0xff] %v8944_v31  ;;  %v1249_v50 = vsel %vm805_vm0, %v1244_v45, %v8944_v31  ;;  %3106 = vmatprep.subr.bf16.mxu0 %v8856_v23  ;;  %v7909_v16 = vld [vmem:[%s10944_s3 + $0x260] sm:$0xff]  }
 0x18d   :  { %v8917_v12 = vpack.c.bf16 %v724_v30, %v722_v5  ;;  %1615 = vmatmul.mubr.bf16.gmra.mrb[40].mxu1 %v1239_v9  ;;  %v8919_v13 = vld [vmem:[#allocation2 + $0x180] sm:$0xff]  ;;  %v592_v15 = vpop.f32.mrb[76].mxu0  ;;  %10998 = vst [vmem:[#allocation17_spill] sm:$0xff] %v8983_v42 }
 0x18e   :  { %930 = vst [vmem:[#allocation2 + $0x190] sm:$0xff] %v8912_v8  ;;  %2144 = vrot.lane.b32.xlu1 %v8919_v13, %s8077_s17  ;;  %1622 = vmatprep.mubr.bf16.mxu1 %v1245_v14  ;;  %v8930_v60 = vld [vmem:[#allocation2 + $0x188] sm:$0xff]  ;;  %v593_v21 = vadd.f32 %v592_v15, %v8398_v10  ;;  %v594_v3 = vpop.f32.mrb[77].mxu0  ;;  %v1250_v62 = vrot.slane %v8919_v13, 4 }
 0x18f   :  { %931 = vst [vmem:[#allocation2 + $0x198] sm:$0xff] %v8917_v12  ;;  %v1252_v22 = vrot.slane %v8930_v60, 4  ;;  %2146 = vrot.lane.b32.xlu0 %v8930_v60, %s8077_s17  ;;  %v595_v24 = vadd.f32 %v594_v3, %v8401_v11  ;;  %v596_v19 = vpop.f32.mrb[78].mxu0  ;;  %v1256_v25 = vrot.slane %v8917_v12, 4 }
 0x190   :  { %v2081_v29 = vpop.permute.xlu1 %2080  ;;  %v725_v32 = vmax.f32 %v593_v21, 0.0  ;;  %v597_v33 = vadd.f32 %v596_v19, %v8398_v10  ;;  %v598_v34 = vpop.f32.mrb[79].mxu0  ;;  %v7902_v19 = vld [vmem:[%s10944_s3 + $0x210] sm:$0xff]  }
 0x191   :  { %v2083_v35 = vpop.permute.xlu0 %2082  ;;  %v726_v36 = vmax.f32 %v595_v24, 0.0  ;;  %v599_v38 = vadd.f32 %v598_v34, %v8401_v11  ;;  %v8953_v18 = vsel %vm805_vm0, %v8944_v31, %v1252_v22  ;;  %v8958_v43 = vsel %vm805_vm0, %v1252_v22, %v1256_v25  ;;  %3107 = vmatpush1.bf16.msra.mxu0 %v7902_v19 }
 0x192   :  { %2140 = vrot.lane.b32.xlu1 %v8887_v55, %s8077_s17  ;;  %v727_v39 = vmax.f32 %v597_v33, 0.0  ;;  %10996 = vst [vmem:[#allocation15_spill] sm:$0xff] %v8953_v18  ;;  %10997 = vst [vmem:[#allocation16_spill] sm:$0xff] %v8958_v43  ;;  %v2172_v6 = vsel %vm2164_vm1, %v2081_v29, %v2083_v35  ;;  %v1247_v35 = vsel %vm805_vm0, %v1242_v27, %v8983_v42  ;;  %3108 = vmatprep.subr.bf16.mxu0 %v8856_v23 }
 0x193   :  { %2142 = vrot.lane.b32.xlu0 %v8898_v4, %s8077_s17  ;;  %v728_v40 = vmax.f32 %v599_v38, 0.0  ;;  %v9036_v19 = vsel %vm805_vm0, %v8983_v42, %v1250_v62 }
 0x194   :  { %v2077_v47 = vpop.permute.xlu1 %2076  ;;  %v8961_v41 = vpack.c.bf16 %v727_v39, %v725_v32  ;;  %11002 = vst [vmem:[#allocation21_spill] sm:$0xff] %v9036_v19 }
 0x195   :  { %v2079_v46 = vpop.permute.xlu0 %2078  ;;  %1623 = vmatmul.mubr.bf16.gmra.mrb[44].mxu1 %v1243_v49  ;;  %v8966_v51 = vpack.c.bf16 %v728_v40, %v726_v36  ;;  %v602_v61 = vpop.f32.mrb[80].mxu0  ;;  %v7903_v40 = vld [vmem:[%s10944_s3 + $0x218] sm:$0xff]  }
 0x196   :  { %932 = vst [vmem:[#allocation2 + $0x1a0] sm:$0xff] %v8961_v41  ;;  %1630 = vmatprep.mubr.bf16.mxu1 %v1249_v50  ;;  %v2171_v56 = vsel %vm2164_vm1, %v2077_v47, %v2079_v46  ;;  %v603_v63 = vadd.f32 %v602_v61, %v8398_v10  ;;  %v604_v5 = vpop.f32.mrb[81].mxu0  ;;  %2148 = vrot.lane.b32.xlu1 %v8912_v8, %s8077_s17 }
 0x197   :  { %7096 = vmatprep.mubr.bf16.mxu0 %v2171_v56  ;;  %933 = vst [vmem:[#allocation2 + $0x1a8] sm:$0xff] %v8966_v51  ;;  %v605_v45 = vadd.f32 %v604_v5, %v8401_v11  ;;  %v606_v59 = vpop.f32.mrb[82].mxu0  ;;  %2150 = vrot.lane.b32.xlu0 %v8917_v12, %s8077_s17  ;;  %v1260_v30 = vrot.slane %v8966_v51, 4 }
 0x198   :  { %v2085_v9 = vpop.permute.xlu1 %2084  ;;  %7097 = vmatmul.mubr.bf16.gmra.mrb[152].mxu0 %v2172_v6  ;;  %v729_v14 = vmax.f32 %v603_v63, 0.0  ;;  %v607_v15 = vadd.f32 %v606_v59, %v8398_v10  ;;  %v608_v21 = vpop.f32.mrb[83].mxu0 }
 0x199   :  { %v2087_v3 = vpop.permute.xlu0 %2086  ;;  %v730_v22 = vmax.f32 %v605_v45, 0.0  ;;  %v609_v24 = vadd.f32 %v608_v21, %v8401_v11  ;;  %v8991_v26 = vsel %vm805_vm0, %v1256_v25, %v1260_v30  ;;  %3109 = vmatpush1.bf16.msra.mxu0 %v7903_v40 }
 0x19a   :  { %10999 = vst [vmem:[#allocation18_spill] sm:$0xff] %v8991_v26  ;;  %v731_v29 = vmax.f32 %v607_v15, 0.0  ;;  %v2173_v32 = vsel %vm2164_vm1, %v2085_v9, %v2087_v3  ;;  %2152 = vrot.lane.b32.xlu1 %v8961_v41, %s8077_s17  ;;  %3110 = vmatprep.subr.bf16.mxu0 %v8856_v23 }
 0x19b   :  { %7100 = vmatprep.mubr.bf16.mxu0 %v2173_v32  ;;  %v732_v33 = vmax.f32 %v609_v24, 0.0  ;;  %2154 = vrot.lane.b32.xlu0 %v8966_v51, %s8077_s17 }
 0x19c   :  { %v8999_v34 = vpack.c.bf16 %v731_v29, %v729_v14  ;;  %v2089_v25 = vpop.permute.xlu1 %2088  ;;  %v7904_v14 = vld [vmem:[%s10944_s3 + $0x220] sm:$0xff]  }
 0x19d   :  { %v9003_v36 = vpack.c.bf16 %v732_v33, %v730_v22  ;;  %v612_v38 = vpop.f32.mrb[84].mxu0  ;;  %1631 = vmatmul.mubr.bf16.gmra.mrb[48].mxu1 %v1247_v35  ;;  %v2091_v39 = vpop.permute.xlu0 %2090  ;;  %3111 = vmatpush1.bf16.msra.mxu0 %v7904_v14  ;;  %v7906_v33 = vld [vmem:[%s10944_s3 + $0x228] sm:$0xff]  }
 0x19e   :  { %934 = vst [vmem:[#allocation2 + $0x1b0] sm:$0xff] %v8999_v34  ;;  %v613_v47 = vadd.f32 %v612_v38, %v8398_v10  ;;  %v614_v49 = vpop.f32.mrb[85].mxu0  ;;  %1638 = vmatprep.mubr.bf16.mxu1 %v8953_v18  ;;  %v2174_v27 = vsel %vm2164_vm1, %v2089_v25, %v2091_v39  ;;  %2156 = vrot.lane.b32.xlu1 %v8999_v34, %s8077_s17 }
 0x19f   :  { %935 = vst [vmem:[#allocation2 + $0x1b8] sm:$0xff] %v9003_v36  ;;  %v615_v46 = vadd.f32 %v614_v49, %v8401_v11  ;;  %v616_v50 = vpop.f32.mrb[86].mxu0  ;;  %v9017_v61 = vrot.slane %v9003_v36, 4  ;;  %2158 = vrot.lane.b32.xlu0 %v9003_v36, %s8077_s17  ;;  %3112 = vmatprep.subr.bf16.mxu0 %v8856_v23 }
 0x1a0   :  { %v733_v56 = vmax.f32 %v613_v47, 0.0  ;;  %v617_v63 = vadd.f32 %v616_v50, %v8398_v10  ;;  %v618_v5 = vpop.f32.mrb[87].mxu0  ;;  %7101 = vmatmul.mubr.bf16.gmra.mrb[156].mxu0 %v2174_v27  ;;  %v2093_v6 = vpop.permute.xlu1 %2092  ;;  %v1254_v47 = vrot.slane %v8912_v8, 4 }
 0x1a1   :  { %11000 = vst [vmem:[#allocation19_spill] sm:$0xff] %v9017_v61  ;;  %v734_v45 = vmax.f32 %v615_v46, 0.0  ;;  %v619_v59 = vadd.f32 %v618_v5, %v8401_v11  ;;  %v2095_v9 = vpop.permute.xlu0 %2094  ;;  %v9032_v3 = vsel %vm805_vm0, %v1260_v30, %v9017_v61  ;;  %3113 = vmatpush1.bf16.msra.mxu0 %v7906_v33 }
 0x1a2   :  { %v735_v15 = vmax.f32 %v617_v63, 0.0  ;;  %v2175_v21 = vsel %vm2164_vm1, %v2093_v6, %v2095_v9  ;;  %11001 = vst [vmem:[#allocation20_spill] sm:$0xff] %v9032_v3  ;;  %v7907_v63 = vld [vmem:[%s10944_s3 + $0x230] sm:$0xff]   ;;  %3114 = vmatprep.subr.bf16.mxu0 %v8856_v23 }
 0x1a3   :  { %v736_v22 = vmax.f32 %v619_v59, 0.0  ;;  %7104 = vmatprep.mubr.bf16.mxu0 %v2175_v21 }
 0x1a4   :  { %v789_v24 = vpack.c.bf16 %v735_v15, %v733_v56  ;;  %v7908_v15 = vld [vmem:[%s10944_s3 + $0x238] sm:$0xff]  }
 0x1a5   :  { %v790_v29 = vpack.c.bf16 %v736_v22, %v734_v45  ;;  %1639 = vmatmul.mubr.bf16.gmra.mrb[52].mxu1 %v9036_v19  ;;  %v622_v32 = vpop.f32.mrb[88].mxu0  ;;  %v9054_v45 = vsel %vm805_vm0, %v1250_v62, %v1254_v47  ;;  %3115 = vmatpush1.bf16.msra.mxu0 %v7907_v63  ;;  %v7890_v19 = vld [vmem:[%s10944_s3 + $0x248] sm:$0xff]  }
 0x1a6   :  { %v944_v35 = vrot.slane %v789_v24, 4  ;;  %1646 = vmatprep.mubr.bf16.mxu1 %v8958_v43  ;;  %v623_v30 = vadd.f32 %v622_v32, %v8398_v10  ;;  %v624_v25 = vpop.f32.mrb[89].mxu0  ;;  %11003 = vst [vmem:[#allocation22_spill] sm:$0xff] %v9054_v45  ;;  %3116 = vmatprep.subr.bf16.mxu0 %v8856_v23 }
 0x1a7   :  { %v945_v38 = vrot.slane %v790_v29, 4  ;;  %v625_v39 = vadd.f32 %v624_v25, %v8401_v11  ;;  %v626_v40 = vpop.f32.mrb[90].mxu0 }
 0x1a8   :  { %966 = vst [vmem:[#allocation2 + $0x1c0] sm:$0xf0] %v944_v35  ;;  %v737_v49 = vmax.f32 %v623_v30, 0.0  ;;  %v627_v27 = vadd.f32 %v626_v40, %v8398_v10  ;;  %v628_v46 = vpop.f32.mrb[91].mxu0 }
 0x1a9   :  { %967 = vst [vmem:[#allocation2 + $0x1c8] sm:$0xf0] %v945_v38  ;;  %v738_v50 = vmax.f32 %v625_v39, 0.0  ;;  %v629_v56 = vadd.f32 %v628_v46, %v8401_v11  ;;  %3117 = vmatpush1.bf16.msra.mxu0 %v7908_v15 }
 0x1aa   :  { %v739_v5 = vmax.f32 %v627_v27, 0.0  ;;  %v1258_v27 = vrot.slane %v8961_v41, 4  ;;  %3439 = vmatprep.subr.bf16.mxu0 %v8856_v23 }
 0x1ab   :  { %v740_v6 = vmax.f32 %v629_v56, 0.0 }
 0x1ac   :  { %v791_v59 = vpack.c.bf16 %v739_v5, %v737_v49  ;;  %v9097_v15 = vsel %vm805_vm0, %v1254_v47, %v1258_v27 }
 0x1ad   :  { %1647 = vmatmul.mubr.bf16.gmra.mrb[56].mxu1 %v9054_v45  ;;  %v9057_v9 = vpack.c.bf16 %v740_v6, %v738_v50  ;;  %v632_v14 = vpop.f32.mrb[92].mxu0  ;;  %v9087_v6 = vld [vmem:[#allocation2 + $0x50] sm:$0xff]  ;;  %11004 = vst [vmem:[#allocation23_spill] sm:$0xff] %v9097_v15 }
 0x1ae   :  { %1654 = vmatprep.mubr.bf16.mxu1 %v8991_v26  ;;  %v946_v21 = vrot.slane %v791_v59, 4  ;;  %v633_v22 = vadd.f32 %v632_v14, %v8398_v10  ;;  %v634_v24 = vpop.f32.mrb[93].mxu0 }
 0x1af   :  { %v9065_v62 = vld [vmem:[#allocation2 + $0x1c0] sm:$0xff]  ;;  %v948_v29 = vrot.slane %v9057_v9, 4  ;;  %v635_v32 = vadd.f32 %v634_v24, %v8401_v11  ;;  %v636_v33 = vpop.f32.mrb[94].mxu0  ;;  %v9091_v9 = vld [vmem:[#allocation2 + $0x58] sm:$0xff] }
 0x1b0   :  { %2160 = vrot.lane.b32.xlu1 %v9065_v62, %s8077_s17  ;;  %v9071_v30 = vld [vmem:[#allocation2 + $0x1c8] sm:$0xff]  ;;  %v9074_v25 = vsel %vm805_vm0, %v944_v35, %v946_v21  ;;  %v741_v39 = vmax.f32 %v633_v22, 0.0  ;;  %v637_v40 = vadd.f32 %v636_v33, %v8398_v10  ;;  %v638_v49 = vpop.f32.mrb[95].mxu0 }
 0x1b1   :  { %2162 = vrot.lane.b32.xlu0 %v9071_v30, %s8077_s17  ;;  %968 = vst [vmem:[#allocation2 + $0x1d0] sm:$0xff] %v9074_v25  ;;  %v9082_v46 = vsel %vm805_vm0, %v945_v38, %v948_v29  ;;  %v742_v50 = vmax.f32 %v635_v32, 0.0  ;;  %v639_v56 = vadd.f32 %v638_v49, %v8401_v11 }
 0x1b2   :  { %v2097_v35 = vpop.permute.xlu1 %2096  ;;  %969 = vst [vmem:[#allocation2 + $0x1d8] sm:$0xff] %v9082_v46  ;;  %v743_v63 = vmax.f32 %v637_v40, 0.0 }
 0x1b3   :  { %v2099_v5 = vpop.permute.xlu0 %2098  ;;  %v744_v59 = vmax.f32 %v639_v56, 0.0  ;;  %v9102_v56 = vld [vmem:[#allocation2 + $0x60] sm:$0xff] }
 0x1b4   :  { %3716 = vrot.lane.b32.xlu1 %v9087_v6, %s8077_s17  ;;  %v2176_v38 = vsel %vm2164_vm1, %v2097_v35, %v2099_v5  ;;  %v793_v14 = vpack.c.bf16 %v743_v63, %v741_v39  ;;  %v1065_v35 = vld [vmem:[#allocation2 + $0x1c8] sm:$0xf] }
 0x1b5   :  { %3718 = vrot.lane.b32.xlu0 %v9091_v9, %s8077_s17  ;;  %7105 = vmatmul.mubr.bf16.gmra.mrb[160].mxu0 %v2176_v38  ;;  %v794_v22 = vpack.c.bf16 %v744_v59, %v742_v50  ;;  %v642_v24 = vpop.f32.mrb[96].mxu0  ;;  %v9107_v50 = vld [vmem:[#allocation2 + $0x68] sm:$0xff] }
 0x1b6   :  { %1655 = vmatmul.mubr.bf16.gmra.mrb[60].mxu1 %v9097_v15  ;;  %v2101_v32 = vpop.permute.xlu1 %2100  ;;  %v950_v33 = vrot.slane %v793_v14, 4  ;;  %v643_v40 = vadd.f32 %v642_v24, %v8398_v10  ;;  %v644_v49 = vpop.f32.mrb[97].mxu0  ;;  %v9114_v24 = vrot.slane %v8999_v34, 4  ;;  %v9144_v15 = vld [vmem:[#allocation2 + $0x80] sm:$0xff] }
 0x1b7   :  { %1662 = vmatprep.mubr.bf16.mxu1 %v9032_v3  ;;  %v2103_v39 = vpop.permute.xlu0 %2102  ;;  %v952_v63 = vrot.slane %v794_v22, 4  ;;  %v645_v5 = vadd.f32 %v644_v49, %v8401_v11  ;;  %v646_v47 = vpop.f32.mrb[98].mxu0  ;;  %v1268_v49 = vrot.slane %v1065_v35, 4 }
 0x1b8   :  { %3720 = vrot.lane.b32.xlu1 %v9102_v56, %s8077_s17  ;;  %v2177_v59 = vsel %vm2164_vm1, %v2101_v32, %v2103_v39  ;;  %v9111_v10 = vsel %vm805_vm0, %v946_v21, %v950_v33  ;;  %v745_v38 = vmax.f32 %v643_v40, 0.0  ;;  %v647_v14 = vpop.f32.mrb[99].mxu0  ;;  %11005 = vst [vmem:[#allocation24_spill] sm:$0xff] %v9114_v24  ;;  %v9123_v32 = vld [vmem:[#allocation2 + $0x70] sm:$0xff]  ;;  %v9127_v47 = vld [vmem:[#allocation2 + $0x78] sm:$0xff] }
 0x1b9   :  { %3722 = vrot.lane.b32.xlu0 %v9107_v50, %s8077_s17  ;;  %7108 = vmatprep.mubr.bf16.mxu0 %v2177_v59  ;;  %970 = vst [vmem:[#allocation2 + $0x1e0] sm:$0xff] %v9111_v10  ;;  %v9120_v11 = vsel %vm805_vm0, %v948_v29, %v952_v63  ;;  %v746_v22 = vmax.f32 %v645_v5, 0.0  ;;  %v9133_v29 = vsel %vm805_vm0, %v1258_v27, %v9114_v24 }
 0x1ba   :  { %971 = vst [vmem:[#allocation2 + $0x1e8] sm:$0xff] %v9120_v11  ;;  %v795_v21 = vpack.c.bf16 %v745_v38, %v745_v38  ;;  %11006 = vst [vmem:[#allocation25_spill] sm:$0xff] %v9133_v29 }
 0x1bb   :  { %v2105_v40 = vpop.permute.xlu1 %2104  ;;  %v796_v39 = vpack.c.bf16 %v746_v22, %v746_v22  ;;  %v1269_v22 = vsel %vm805_vm0, %v9017_v61, %v1268_v49  ;;  %v9154_v49 = vld [vmem:[#allocation2 + $0x88] sm:$0xff] }
 0x1bc   :  { %3724 = vrot.lane.b32.xlu1 %v9123_v32, %s8077_s17  ;;  %v2107_v59 = vpop.permute.xlu0 %2106  ;;  %v954_v14 = vrot.slane %v795_v21, 4 }
 0x1bd   :  { %3726 = vrot.lane.b32.xlu0 %v9127_v47, %s8077_s17  ;;  %v2178_v35 = vsel %vm2164_vm1, %v2105_v40, %v2107_v59  ;;  %v956_v5 = vrot.slane %v796_v39, 4  ;;  %v9136_v38 = vpop.f32.mrb[100].mxu0  ;;  %v9159_v39 = vld [vmem:[#allocation2 + $0x90] sm:$0xff] }
 0x1be   :  { %11007 = vst [vmem:[#allocation26_spill] sm:$0xff] %v9136_v38  ;;  %1663 = vmatmul.mubr.bf16.gmra.mrb[64].mxu1 %v9133_v29  ;;  %7109 = vmatmul.mubr.bf16.gmra.mrb[164].mxu0 %v2178_v35  ;;  %v9142_v21 = vsel %vm805_vm0, %v950_v33, %v954_v14  ;;  %v1458_v3 = vpop.f32.mrb[101].mxu0  ;;  %v9290_v38 = vld [vmem:[#allocation2 + $0x138] sm:$0xff] }
 0x1bf   :  { %1670 = vmatprep.mubr.bf16.mxu1 %v1269_v22  ;;  %972 = vst [vmem:[#allocation2 + $0x1f0] sm:$0xff] %v9142_v21  ;;  %v9148_v27 = vsel %vm805_vm0, %v952_v63, %v956_v5  ;;  %v9150_v40 = vpop.f32.mrb[102].mxu0  ;;  %v1266_v3 = vrot.slane %v1064_v1, 4  ;;  %v9163_v63 = vld [vmem:[#allocation2 + $0x98] sm:$0xff]  ;;  %v9174_v5 = vld [vmem:[#allocation2 + $0xa0] sm:$0xff] }
 0x1c0   :  { %11008 = vst [vmem:[#allocation27_spill] sm:$0xff] %v9150_v40  ;;  %3728 = vrot.lane.b32.xlu1 %v9144_v15, %s8077_s17  ;;  %973 = vst [vmem:[#allocation2 + $0x1f8] sm:$0xff] %v9148_v27  ;;  %v1461_v33 = vpop.f32.mrb[103].mxu0 }
 0x1c1   :  { %3730 = vrot.lane.b32.xlu0 %v9154_v49, %s8077_s17  ;;  %v1267_v59 = vsel %vm805_vm0, %v9114_v24, %v1266_v3  ;;  %v9178_v33 = vld [vmem:[#allocation2 + $0xa8] sm:$0xff]  ;;  %v9182_v24 = vld [vmem:[#allocation2 + $0xb0] sm:$0xff] }
 0x1c4   :  { %3732 = vrot.lane.b32.xlu1 %v9159_v39, %s8077_s17 }
 0x1c5   :  { %3734 = vrot.lane.b32.xlu0 %v9163_v63, %s8077_s17  ;;  %v9169_v14 = vpop.f32.mrb[104].mxu0 }
 0x1c6   :  { %11009 = vst [vmem:[#allocation28_spill] sm:$0xff] %v9169_v14  ;;  %1671 = vmatmul.mubr.bf16.gmra.mrb[68].mxu1 %v1267_v59  ;;  %v1466_v35 = vpop.f32.mrb[105].mxu0  ;;  %v9274_v14 = vld [vmem:[#allocation2 + $0x120] sm:$0xff] }
 0x1c7   :  { %1807 = vmatprep.mubr.bf16.mxu1 %v8856_v23  ;;  %v9172_v1 = vpop.f32.mrb[106].mxu0  ;;  %v9186_v35 = vld [vmem:[#allocation2 + $0xb8] sm:$0xff] }
 0x1c8   :  { %11010 = vst [vmem:[#allocation29_spill] sm:$0xff] %v9172_v1  ;;  %3736 = vrot.lane.b32.xlu1 %v9174_v5, %s8077_s17  ;;  %v2113_v22 = vpop.permute.xlu1 %2112  ;;  %v1469_v61 = vpop.f32.mrb[107].mxu0 }
 0x1c9   :  { %3738 = vrot.lane.b32.xlu0 %v9178_v33, %s8077_s17  ;;  %v2115_v3 = vpop.permute.xlu0 %2114 }
 0x1ca   :  { %v2180_v26 = vsel %vm2164_vm1, %v2113_v22, %v2115_v3  ;;  %v9205_v22 = vld [vmem:[#allocation2 + $0xc8] sm:$0xff] }
 0x1cc   :  { %3740 = vrot.lane.b32.xlu1 %v9182_v24, %s8077_s17  ;;  %v2109_v59 = vpop.permute.xlu1 %2108 }
 0x1cd   :  { %3742 = vrot.lane.b32.xlu0 %v9186_v35, %s8077_s17  ;;  %v2111_v29 = vpop.permute.xlu0 %2110  ;;  %v9191_v45 = vpop.f32.mrb[108].mxu0 }
 0x1ce   :  { %11011 = vst [vmem:[#allocation30_spill] sm:$0xff] %v9191_v45  ;;  %1808 = vmatmul.mubr.bf16.vlgmr.msra.gmra.mrb[72].mxu1 %v8856_v23  ;;  %v2179_v61 = vsel %vm2164_vm1, %v2109_v59, %v2111_v29  ;;  %v1474_v43 = vpop.f32.mrb[109].mxu0 }
 0x1cf   :  { %7141 = vmatpush3.bf16.msra.mxu1 %v8778_v17  ;;  %7112 = vmatprep.mubr.bf16.mxu0 %v2179_v61  ;;  %v9199_v18 = vpop.f32.mrb[110].mxu0  ;;  %v7897_v43 = vld [vmem:[%s10944_s3 + $0x250] sm:$0xff]  }
 0x1d0   :  { %11012 = vst [vmem:[#allocation31_spill] sm:$0xff] %v9199_v18  ;;  %3744 = vrot.lane.b32.xlu1 %v9201_v58, %s8077_s17  ;;  %7113 = vmatmul.mubr.bf16.gmra.mrb[168].mxu0 %v2180_v26  ;;  %v2117_v3 = vpop.permute.xlu1 %2116  ;;  %v1477_v29 = vpop.f32.mrb[111].mxu0  ;;  %v9214_v61 = vld [vmem:[#allocation2 + $0xd0] sm:$0xff]  ;;  %v9218_v26 = vld [vmem:[#allocation2 + $0xd8] sm:$0xff] }
 0x1d1   :  { %3746 = vrot.lane.b32.xlu0 %v9205_v22, %s8077_s17  ;;  %1815 = vmatprep.mubr.bf16.mxu1 %v8856_v23  ;;  %v2119_v17 = vpop.permute.xlu0 %2118  ;;  %v9240_v18 = vld [vmem:[#allocation2 + $0xf0] sm:$0xff] }
 0x1d2   :  { %v2181_v59 = vsel %vm2164_vm1, %v2117_v3, %v2119_v17  ;;  %7142 = vmatprep.subr.bf16.mxu1 %v7890_v19  ;;  %v7905_v3 = vld [vmem:[%s10944_s3 + $0x258] sm:$0xff]  }
 0x1d3   :  { %7116 = vmatprep.mubr.bf16.mxu0 %v2181_v59  ;;  %7143 = vmatpush3.bf16.msra.mxu1 %v7890_v19  ;;  %v9227_v19 = vld [vmem:[#allocation2 + $0xe0] sm:$0xff]  ;;  %v9232_v59 = vld [vmem:[#allocation2 + $0xe8] sm:$0xff] }
 0x1d4   :  { %3748 = vrot.lane.b32.xlu1 %v9214_v61, %s8077_s17  ;;  %v2121_v29 = vpop.permute.xlu1 %2120  ;;  %7144 = vmatprep.subr.bf16.mxu1 %v7897_v43 }
 0x1d5   :  { %3750 = vrot.lane.b32.xlu0 %v9218_v26, %s8077_s17  ;;  %v2123_v42 = vpop.permute.xlu0 %2122 }
 0x1d6   :  { %1816 = vmatmul.mubr.bf16.gmra.mrb[76].mxu1 %v8856_v23  ;;  %v2182_v17 = vsel %vm2164_vm1, %v2121_v29, %v2123_v42 }
 0x1d7   :  { %1823 = vmatprep.mubr.bf16.mxu1 %v8856_v23  ;;  %7145 = vmatpush3.bf16.msra.mxu1 %v7897_v43  ;;  %v9244_v43 = vld [vmem:[#allocation2 + $0xf8] sm:$0xff] }
 0x1d8   :  { %3752 = vrot.lane.b32.xlu1 %v9227_v19, %s8077_s17  ;;  %7117 = vmatmul.mubr.bf16.gmra.mrb[172].mxu0 %v2182_v17  ;;  %v2125_v31 = vpop.permute.xlu1 %2124  ;;  %v7910_v17 = vld [vmem:[%s10944_s3 + $0x268] sm:$0xff]  }
 0x1d9   :  { %3754 = vrot.lane.b32.xlu0 %v9232_v59, %s8077_s17  ;;  %v2127_v42 = vpop.permute.xlu0 %2126  ;;  %7146 = vmatprep.subr.bf16.mxu1 %v7905_v3 }
 0x1da   :  { %v2183_v29 = vsel %vm2164_vm1, %v2125_v31, %v2127_v42  ;;  %v9252_v31 = vld [vmem:[#allocation2 + $0x100] sm:$0xff]  ;;  %v9259_v42 = vld [vmem:[#allocation2 + $0x108] sm:$0xff] }
 0x1db   :  { %7120 = vmatprep.mubr.bf16.mxu0 %v2183_v29  ;;  %7147 = vmatpush3.bf16.msra.mxu1 %v7905_v3 }
 0x1dc   :  { %3756 = vrot.lane.b32.xlu1 %v9240_v18, %s8077_s17  ;;  %7148 = vmatprep.subr.bf16.mxu1 %v7909_v16 }
 0x1dd   :  { %3758 = vrot.lane.b32.xlu0 %v9244_v43, %s8077_s17 }
 0x1de   :  { %1824 = vmatmul.mubr.bf16.gmra.mrb[80].mxu1 %v8856_v23 }
 0x1df   :  { %1831 = vmatprep.mubr.bf16.mxu1 %v8856_v23  ;;  %7149 = vmatpush3.bf16.msra.mxu1 %v7909_v16  ;;  %v9269_v16 = vld [vmem:[#allocation2 + $0x118] sm:$0xff] }
 0x1e0   :  { %v9255_v3 = vpop.f32.mrb[112].mxu0  ;;  %3760 = vrot.lane.b32.xlu1 %v9252_v31, %s8077_s17  ;;  %7150 = vmatprep.subr.bf16.mxu1 %v7910_v17  ;;  %11015 = vst [vmem:[#allocation34_spill] sm:$0xff] %v9269_v16 }
 0x1e1   :  { %11013 = vst [vmem:[#allocation32_spill] sm:$0xff] %v9255_v3  ;;  %3762 = vrot.lane.b32.xlu0 %v9259_v42, %s8077_s17  ;;  %v1482_v29 = vpop.f32.mrb[113].mxu0  ;;  %v7959_v3 = vld [vmem:[#allocation2 + $0x48] sm:$0xff] }
 0x1e2   :  { %v9263_v45 = vpop.f32.mrb[114].mxu0 }
 0x1e3   :  { %11014 = vst [vmem:[#allocation33_spill] sm:$0xff] %v9263_v45  ;;  %v1485_v1 = vpop.f32.mrb[115].mxu0  ;;  %7151 = vmatpush3.bf16.msra.mxu1 %v7910_v17 }
 0x1e4   :  { %3764 = vrot.lane.b32.xlu1 %v9265_v7, %s8077_s17  ;;  %v9278_v1 = vld [vmem:[#allocation2 + $0x128] sm:$0xff] }
 0x1e5   :  { %3766 = vrot.lane.b32.xlu0 %v9269_v16, %s8077_s17  ;;  %11016 = vst [vmem:[#allocation35_spill] sm:$0xff] %v9278_v1 }
 0x1e6   :  { %1832 = vmatmul.mubr.bf16.gmra.mrb[84].mxu1 %v8856_v23 }
 0x1e7   :  { %1839 = vmatprep.mubr.bf16.mxu1 %v7959_v3 }
 0x1e8   :  { %3768 = vrot.lane.b32.xlu1 %v9274_v14, %s8077_s17  ;;  %v9280_v17 = vpop.f32.mrb[116].mxu0 }
 0x1e9   :  { %11017 = vst [vmem:[#allocation36_spill] sm:$0xff] %v9280_v17  ;;  %3770 = vrot.lane.b32.xlu0 %v9278_v1, %s8077_s17  ;;  %v1490_v29 = vpop.f32.mrb[117].mxu0  ;;  %v7960_v17 = vld [vmem:[#allocation2 + $0x40] sm:$0xff] }
 0x1ea   :  { %v9284_v45 = vpop.f32.mrb[118].mxu0  ;;  %v2129_v40 = vpop.permute.xlu1 %2128 }
 0x1eb   :  { %11018 = vst [vmem:[#allocation37_spill] sm:$0xff] %v9284_v45  ;;  %v1493_v23 = vpop.f32.mrb[119].mxu0  ;;  %v2131_v3 = vpop.permute.xlu0 %2130  ;;  %v7961_v45 = vld [vmem:[#allocation2 + $0x58] sm:$0xff] }
 0x1ec   :  { %3772 = vrot.lane.b32.xlu1 %v9286_v28, %s8077_s17  ;;  %v2184_v57 = vsel %vm2164_vm1, %v2129_v40, %v2131_v3 }
 0x1ed   :  { %3774 = vrot.lane.b32.xlu0 %v9290_v38, %s8077_s17  ;;  %7121 = vmatmul.mubr.bf16.gmra.mrb[176].mxu0 %v2184_v57 }
 0x1ee   :  { %1840 = vmatmul.mubr.bf16.gmra.mrb[88].mxu1 %v7960_v17  ;;  %v2133_v29 = vpop.permute.xlu1 %2132 }
 0x1ef   :  { %1847 = vmatprep.mubr.bf16.mxu1 %v7961_v45  ;;  %v9306_v45 = vld [vmem:[#allocation2 + $0x158] sm:$0xff] }
 0x1f0   :  { %3776 = vrot.lane.b32.xlu1 %v8801_v44, %s8077_s17  ;;  %v9297_v23 = vpop.f32.mrb[120].mxu0  ;;  %v2135_v1 = vpop.permute.xlu0 %2134 }
 0x1f1   :  { %11019 = vst [vmem:[#allocation38_spill] sm:$0xff] %v9297_v23  ;;  %3778 = vrot.lane.b32.xlu0 %v8808_v52, %s8077_s17  ;;  %v1498_v16 = vpop.f32.mrb[121].mxu0  ;;  %v2185_v40 = vsel %vm2164_vm1, %v2133_v29, %v2135_v1  ;;  %v7911_v52 = vld [vmem:[%s10944_s3 + $0x270] sm:$0xff]   ;;  %v7963_v1 = vld [vmem:[#allocation2 + $0x68] sm:$0xff] }
 0x1f2   :  { %v9302_v3 = vpop.f32.mrb[122].mxu0  ;;  %7124 = vmatprep.mubr.bf16.mxu0 %v2185_v40  ;;  %v7962_v16 = vld [vmem:[#allocation2 + $0x50] sm:$0xff]  ;;  %7152 = vmatprep.subr.bf16.mxu1 %v7911_v52 }
 0x1f3   :  { %v1501_v57 = vpop.f32.mrb[123].mxu0  ;;  %v2137_v17 = vpop.permute.xlu1 %2136  ;;  %7153 = vmatpush3.bf16.msra.mxu1 %v7911_v52 }
 0x1f4   :  { %3780 = vrot.lane.b32.xlu1 %v8891_v0, %s8077_s17  ;;  %v2139_v44 = vpop.permute.xlu0 %2138  ;;  %v9316_v0 = vld [vmem:[#allocation2 + $0x168] sm:$0xff] }
 0x1f5   :  { %3782 = vrot.lane.b32.xlu0 %v9306_v45, %s8077_s17  ;;  %v2186_v23 = vsel %vm2164_vm1, %v2137_v17, %v2139_v44 }
 0x1f6   :  { %1848 = vmatmul.mubr.bf16.gmra.mrb[92].mxu1 %v7962_v16  ;;  %7125 = vmatmul.mubr.bf16.gmra.mrb[180].mxu0 %v2186_v23  ;;  %v7964_v23 = vld [vmem:[#allocation2 + $0x60] sm:$0xff] }
 0x1f7   :  { %1855 = vmatprep.mubr.bf16.mxu1 %v7963_v1 }
 0x1f8   :  { %3784 = vrot.lane.b32.xlu1 %v8893_v2, %s8077_s17  ;;  %v9318_v29 = vpop.f32.mrb[124].mxu0  ;;  %v7965_v2 = vld [vmem:[#allocation2 + $0x78] sm:$0xff] }
 0x1f9   :  { %3786 = vrot.lane.b32.xlu0 %v9316_v0, %s8077_s17  ;;  %v1506_v40 = vpop.f32.mrb[125].mxu0 }
 0x1fa   :  { %v9322_v57 = vpop.f32.mrb[126].mxu0 }
 0x1fb   :  { %v1509_v17 = vpop.f32.mrb[127].mxu0 }
 0x1fc   :  { %3788 = vrot.lane.b32.xlu1 %v8887_v55, %s8077_s17 }
 0x1fd   :  { %3790 = vrot.lane.b32.xlu0 %v8898_v4, %s8077_s17 }
 0x1fe   :  { %1856 = vmatmul.mubr.bf16.gmra.mrb[96].mxu1 %v7964_v23  ;;  %v7966_v23 = vld [vmem:[#allocation2 + $0x70] sm:$0xff] }
 0x1ff   :  { %1863 = vmatprep.mubr.bf16.mxu1 %v7965_v2 }
 0x200   :  { %3792 = vrot.lane.b32.xlu1 %v8919_v13, %s8077_s17  ;;  %v2145_v44 = vpop.permute.xlu1 %2144  ;;  %v9330_v52 = vpop.f32.mrb[128].mxu0 }
 0x201   :  { %3794 = vrot.lane.b32.xlu0 %v8930_v60, %s8077_s17  ;;  %v2147_v16 = vpop.permute.xlu0 %2146  ;;  %v1514_v1 = vpop.f32.mrb[129].mxu0  ;;  %v7967_v60 = vld [vmem:[#allocation2 + $0x88] sm:$0xff] }
 0x202   :  { %v9334_v40 = vpop.f32.mrb[130].mxu0  ;;  %v2188_v13 = vsel %vm2164_vm1, %v2145_v44, %v2147_v16 }
 0x203   :  { %v1517_v55 = vpop.f32.mrb[131].mxu0 }
 0x204   :  { %3796 = vrot.lane.b32.xlu1 %v8912_v8, %s8077_s17  ;;  %v2141_v4 = vpop.permute.xlu1 %2140 }
 0x205   :  { %3798 = vrot.lane.b32.xlu0 %v8917_v12, %s8077_s17  ;;  %v2143_v17 = vpop.permute.xlu0 %2142 }
 0x206   :  { %1864 = vmatmul.mubr.bf16.gmra.mrb[100].mxu1 %v7966_v23  ;;  %v2187_v2 = vsel %vm2164_vm1, %v2141_v4, %v2143_v17  ;;  %v7969_v23 = vld [vmem:[#allocation2 + $0x98] sm:$0xff] }
 0x207   :  { %1871 = vmatprep.mubr.bf16.mxu1 %v7967_v60  ;;  %7128 = vmatprep.mubr.bf16.mxu0 %v2187_v2  ;;  %v7912_v2 = vld [vmem:[%s10944_s3 + $0x278] sm:$0xff]  }
 0x208   :  { %3800 = vrot.lane.b32.xlu1 %v8961_v41, %s8077_s17  ;;  %7129 = vmatmul.mubr.bf16.gmra.mrb[184].mxu0 %v2188_v13  ;;  %v9344_v1 = vpop.f32.mrb[132].mxu0  ;;  %v2149_v8 = vpop.permute.xlu1 %2148  ;;  %v7968_v13 = vld [vmem:[#allocation2 + $0x80] sm:$0xff] }
 0x209   :  { %3802 = vrot.lane.b32.xlu0 %v8966_v51, %s8077_s17  ;;  %v1522_v12 = vpop.f32.mrb[133].mxu0  ;;  %v2151_v55 = vpop.permute.xlu0 %2150  ;;  %7154 = vmatprep.subr.bf16.mxu1 %v7912_v2 }
 0x20a   :  { %v9348_v44 = vpop.f32.mrb[134].mxu0  ;;  %v2189_v16 = vsel %vm2164_vm1, %v2149_v8, %v2151_v55  ;;  %7155 = vmatpush3.bf16.msra.mxu1 %v7912_v2  ;;  %v2824_v2 = vrot.slane %v9091_v9, 4  ;;  %v7975_v9 = vld [vmem:[#allocation2 + $0xc8] sm:$0xff] }
 0x20b   :  { %v1525_v4 = vpop.f32.mrb[135].mxu0  ;;  %7132 = vmatprep.mubr.bf16.mxu0 %v2189_v16 }
 0x20c   :  { %3804 = vrot.lane.b32.xlu1 %v8999_v34, %s8077_s17  ;;  %v2153_v17 = vpop.permute.xlu1 %2152  ;;  %v7971_v4 = vld [vmem:[#allocation2 + $0xa8] sm:$0xff] }
 0x20d   :  { %3806 = vrot.lane.b32.xlu0 %v9003_v36, %s8077_s17  ;;  %v2155_v41 = vpop.permute.xlu0 %2154 }
 0x20e   :  { %1872 = vmatmul.mubr.bf16.gmra.mrb[104].mxu1 %v7968_v13  ;;  %v2190_v51 = vsel %vm2164_vm1, %v2153_v17, %v2155_v41  ;;  %v3697_v17 = vld [vmem:[#allocation2 + $0x208] sm:$0xff] }
 0x20f   :  { %1879 = vmatprep.mubr.bf16.mxu1 %v7969_v23  ;;  %v2727_v23 = vld [vmem:[#allocation2 + $0x48] sm:$0xf0] }
 0x210   :  { %3808 = vrot.lane.b32.xlu1 %v9065_v62, %s8077_s17  ;;  %v9361_v60 = vpop.f32.mrb[136].mxu0  ;;  %7133 = vmatmul.mubr.bf16.gmra.mrb[188].mxu0 %v2190_v51  ;;  %v2157_v34 = vpop.permute.xlu1 %2156  ;;  %v7970_v62 = vld [vmem:[#allocation2 + $0x90] sm:$0xff] }
 0x211   :  { %11020 = vst [vmem:[#allocation39_spill] sm:$0xff] %v9361_v60  ;;  %3810 = vrot.lane.b32.xlu0 %v9071_v30, %s8077_s17  ;;  %v1530_v36 = vpop.f32.mrb[137].mxu0  ;;  %v2159_v8 = vpop.permute.xlu0 %2158  ;;  %v3696_v30 = vld [vmem:[#allocation2 + $0x200] sm:$0xff] }
 0x212   :  { %v9365_v12 = vpop.f32.mrb[138].mxu0  ;;  %v2191_v55 = vsel %vm2164_vm1, %v2157_v34, %v2159_v8  ;;  %v2823_v36 = vrot.slane %v2727_v23, 4  ;;  %v4425_v23 = vld [vmem:[#allocation2 + $0x140] sm:$0xff] }
 0x213   :  { %11021 = vst [vmem:[#allocation40_spill] sm:$0xff] %v9365_v12  ;;  %v1533_v16 = vpop.f32.mrb[139].mxu0  ;;  %7136 = vmatprep.mubr.bf16.mxu0 %v2191_v55  ;;  %v7974_v55 = vld [vmem:[#allocation2 + $0xb0] sm:$0xff] }
 0x214   :  { %3812 = vrot.lane.b32.xlu1 %v9074_v25, %s8077_s17  ;;  %v7785_v25 = vpack.i.bf16 %v3697_v17, %v3696_v30  ;;  %v2825_v8 = vsel %vm805_vm0, %v2823_v36, %v2824_v2  ;;  %v2821_v16 = vrot.slane %v9087_v6, 4  ;;  %v2826_v30 = vrot.slane %v9102_v56, 4 }
 0x215   :  { %3814 = vrot.lane.b32.xlu0 %v9082_v46, %s8077_s17  ;;  %v2832_v17 = vrot.slane %v9127_v47, 4  ;;  %v7979_v47 = vld [vmem:[#allocation2 + $0xe8] sm:$0xff]  ;;  %v2836_v36 = vrot.slane %v9154_v49, 4  ;;  %v4429_v49 = vld [vmem:[#allocation2 + $0x180] sm:$0xff] }
 0x216   :  { %1880 = vmatmul.mubr.bf16.gmra.mrb[108].mxu1 %v7970_v62 }
 0x217   :  { %1887 = vmatprep.mubr.bf16.mxu1 %v7971_v4  ;;  %v7976_v4 = vld [vmem:[#allocation2 + $0xc0] sm:$0xff] }
 0x218   :  { %3816 = vrot.lane.b32.xlu1 %v9111_v10, %s8077_s17  ;;  %v7972_v10 = vld [vmem:[#allocation2 + $0xa0] sm:$0xff] }
 0x219   :  { %3818 = vrot.lane.b32.xlu0 %v9120_v11, %s8077_s17  ;;  %v7973_v11 = vld [vmem:[#allocation2 + $0xb8] sm:$0xff] }
 0x21a   :  { %v9376_v41 = vpop.f32.mrb[140].mxu0 }
 0x21b   :  { %v9378_v13 = vpop.f32.mrb[141].mxu0 }
 0x21c   :  { %3820 = vrot.lane.b32.xlu1 %v9142_v21, %s8077_s17  ;;  %v9382_v46 = vpop.f32.mrb[142].mxu0 }
 0x21d   :  { %3822 = vrot.lane.b32.xlu0 %v9148_v27, %s8077_s17  ;;  %v9386_v51 = vpop.f32.mrb[143].mxu0 }
 0x21e   :  { %1888 = vmatmul.mubr.bf16.gmra.mrb[0].mxu1 %v7972_v10  ;;  %v7914_v10 = vld [vmem:[%s10944_s3 + $0x140] sm:$0xff]  }
 0x21f   :  { %1895 = vmatprep.mubr.bf16.mxu1 %v7973_v11  ;;  %v7978_v11 = vld [vmem:[#allocation2 + $0xd0] sm:$0xff] }
 0x220   :  { %7786 = vrot.lane.b32.xlu1 %v7785_v25, %s8077_s17  ;;  %v2827_v25 = vsel %vm805_vm0, %v2821_v16, %v2826_v30 }
 0x221   :  { %5209 = vrot.lane.b32.xlu0 %v9159_v39, %s8077_s17  ;;  %v2726_v39 = vld [vmem:[#allocation2 + $0x40] sm:$0xf0] }
 0x222   :  { %v2161_v21 = vpop.permute.xlu1 %2160 }
 0x223   :  { %v2163_v34 = vpop.permute.xlu0 %2162 }
 0x224   :  { %5211 = vrot.lane.b32.xlu1 %v9174_v5, %s8077_s17  ;;  %v2192_v27 = vsel %vm2164_vm1, %v2161_v21, %v2163_v34  ;;  %v2828_v5 = vrot.slane %v9107_v50, 4  ;;  %v7977_v50 = vld [vmem:[#allocation2 + $0xd8] sm:$0xff]  ;;  %v7981_v34 = vld [vmem:[#allocation2 + $0x150] sm:$0xff] }
 0x225   :  { %5213 = vrot.lane.b32.xlu0 %v9182_v24, %s8077_s17  ;;  %7137 = vmatmul.mubr.bf16.gmra.mrb[192].mxu0 %v2192_v27  ;;  %v2820_v24 = vrot.slane %v2726_v39, 4  ;;  %v9433_v21 = vld [vmem:[#allocation2 + $0x218] sm:$0xff]  ;;  %v7982_v27 = vld [vmem:[#allocation2 + $0x160] sm:$0xff]  ;;  %v7916_v39 = vld [vmem:[%s10944_s3 + $0x148] sm:$0xff]  }
 0x226   :  { %1896 = vmatmul.mubr.bf16.gmra.mrb[4].mxu1 %v7974_v55  ;;  %3118 = vmatprep.mubr.bf16.mxu0 %v2825_v8  ;;  %v2829_v6 = vsel %vm805_vm0, %v2824_v2, %v2828_v5  ;;  %v2833_v56 = vsel %vm805_vm0, %v2828_v5, %v2832_v17  ;;  %v2830_v2 = vrot.slane %v9123_v32, 4  ;;  %v4428_v8 = vld [vmem:[#allocation2 + $0x170] sm:$0xff]  ;;  %v2837_v32 = vsel %vm805_vm0, %v2832_v17, %v2836_v36 }
 0x227   :  { %1903 = vmatprep.mubr.bf16.mxu1 %v7975_v9  ;;  %v2822_v62 = vsel %vm805_vm0, %v2820_v24, %v2821_v16  ;;  %v7983_v9 = vld [vmem:[#allocation2 + $0xe0] sm:$0xff]  ;;  %v7984_v16 = vld [vmem:[#allocation2 + $0xf8] sm:$0xff]  ;;  %v4430_v5 = vld [vmem:[#allocation2 + $0x190] sm:$0xff]  ;;  %v2840_v24 = vrot.slane %v9163_v63, 4 }
 0x228   :  { %5215 = vrot.lane.b32.xlu1 %v9201_v58, %s8077_s17  ;;  %v9413_v58 = vld [vmem:[%s10944_s3 + $0x2c0] sm:$0xff]   ;;  %v2831_v55 = vsel %vm805_vm0, %v2826_v30, %v2830_v2  ;;  %v7985_v17 = vld [vmem:[#allocation2 + $0xf0] sm:$0xff]  ;;  %v7986_v63 = vld [vmem:[#allocation2 + $0x108] sm:$0xff] }
 0x229   :  { %5217 = vrot.lane.b32.xlu0 %v9214_v61, %s8077_s17  ;;  %7212 = vmatprep.subr.bf16.mxu1 %v9413_v58  ;;  %v2841_v30 = vsel %vm805_vm0, %v2836_v36, %v2840_v24  ;;  %v4437_v36 = vld [vmem:[#allocation2 + $0x200] sm:$0xff] }
 0x22c   :  { %5219 = vrot.lane.b32.xlu1 %v9227_v19, %s8077_s17 }
 0x22d   :  { %5221 = vrot.lane.b32.xlu0 %v9240_v18, %s8077_s17  ;;  %3119 = vmatmul.mubr.bf16.vlgmr.msra.gmra.mrb[196].mxu0 %v2822_v62  ;;  %v2834_v62 = vrot.slane %v9144_v15, 4  ;;  %v4434_v15 = vld [vmem:[#allocation2 + $0x1d0] sm:$0xff] }
 0x22e   :  { %1904 = vmatmul.mubr.bf16.gmra.mrb[8].mxu1 %v7976_v4  ;;  %3126 = vmatprep.mubr.bf16.mxu0 %v2829_v6  ;;  %v4431_v6 = vld [vmem:[#allocation2 + $0x1a0] sm:$0xff]  ;;  %v4432_v4 = vld [vmem:[#allocation2 + $0x1b0] sm:$0xff] }
 0x22f   :  { %1911 = vmatprep.mubr.bf16.mxu1 %v7977_v50  ;;  %3440 = vmatpush1.bf16.msra.mxu0 %v7914_v10  ;;  %v2835_v50 = vsel %vm805_vm0, %v2830_v2, %v2834_v62  ;;  %v2844_v10 = vrot.slane %v9178_v33, 4  ;;  %v7987_v2 = vld [vmem:[#allocation2 + $0x100] sm:$0xff]  ;;  %v7918_v33 = vld [vmem:[%s10944_s3 + $0x150] sm:$0xff]  }
 0x230   :  { %5223 = vrot.lane.b32.xlu1 %v9252_v31, %s8077_s17  ;;  %3441 = vmatprep.subr.bf16.mxu0 %v9433_v21 }
 0x231   :  { %5225 = vrot.lane.b32.xlu0 %v9265_v7, %s8077_s17 }
 0x233   :  { %3442 = vmatpush1.bf16.msra.mxu0 %v7916_v39 }
 0x234   :  { %5227 = vrot.lane.b32.xlu1 %v9274_v14, %s8077_s17  ;;  %3443 = vmatprep.subr.bf16.mxu0 %v9433_v21 }
 0x235   :  { %5229 = vrot.lane.b32.xlu0 %v9286_v28, %s8077_s17  ;;  %3127 = vmatmul.mubr.bf16.gmra.mrb[200].mxu0 %v2827_v25  ;;  %v4433_v25 = vld [vmem:[#allocation2 + $0x1c0] sm:$0xff] }
 0x236   :  { %1912 = vmatmul.mubr.bf16.gmra.mrb[12].mxu1 %v7978_v11  ;;  %3134 = vmatprep.mubr.bf16.mxu0 %v2833_v56  ;;  %v4435_v56 = vld [vmem:[#allocation2 + $0x1e0] sm:$0xff]  ;;  %v2839_v11 = vsel %vm805_vm0, %v2834_v62, %v8541_v48  ;;  %v8004_v48 = vld [vmem:[#allocation2 + $0x198] sm:$0xff] }
 0x237   :  { %1919 = vmatprep.mubr.bf16.mxu1 %v7979_v47  ;;  %v4436_v47 = vld [vmem:[#allocation2 + $0x1f0] sm:$0xff]  ;;  %3444 = vmatpush1.bf16.msra.mxu0 %v7918_v33 }
 0x238   :  { %5231 = vrot.lane.b32.xlu1 %v4425_v23, %s8077_s17  ;;  %v2845_v23 = vsel %vm805_vm0, %v2840_v24, %v2844_v10  ;;  %3445 = vmatprep.subr.bf16.mxu0 %v9433_v21 }
 0x239   :  { %5233 = vrot.lane.b32.xlu0 %v7981_v34, %s8077_s17  ;;  %v7988_v34 = vld [vmem:[#allocation2 + $0x118] sm:$0xff] }
 0x23c   :  { %5235 = vrot.lane.b32.xlu1 %v7982_v27, %s8077_s17 }
 0x23d   :  { %5237 = vrot.lane.b32.xlu0 %v4428_v8, %s8077_s17  ;;  %3135 = vmatmul.mubr.bf16.gmra.mrb[204].mxu0 %v2831_v55  ;;  %v2848_v8 = vrot.slane %v9186_v35, 4 }
 0x23e   :  { %1920 = vmatmul.mubr.bf16.gmra.mrb[16].mxu1 %v7983_v9  ;;  %3142 = vmatprep.mubr.bf16.mxu0 %v2837_v32 }
 0x23f   :  { %1927 = vmatprep.mubr.bf16.mxu1 %v7984_v16  ;;  %v2849_v39 = vsel %vm805_vm0, %v2844_v10, %v2848_v8  ;;  %v7989_v16 = vld [vmem:[#allocation2 + $0x110] sm:$0xff]  ;;  %v9503_v10 = vpop.permute.xlu1 %3716 }
 0x240   :  { %5239 = vrot.lane.b32.xlu1 %v4429_v49, %s8077_s17  ;;  %v7990_v49 = vld [vmem:[#allocation2 + $0x128] sm:$0xff] }
 0x241   :  { %5241 = vrot.lane.b32.xlu0 %v4430_v5, %s8077_s17  ;;  %v2852_v5 = vrot.slane %v9205_v22, 4  ;;  %v7992_v22 = vld [vmem:[#allocation2 + $0x138] sm:$0xff] }
 0x244   :  { %5243 = vrot.lane.b32.xlu1 %v4431_v6, %s8077_s17  ;;  %v7920_v6 = vld [vmem:[%s10944_s3 + $0x158] sm:$0xff]  }
 0x245   :  { %5245 = vrot.lane.b32.xlu0 %v4432_v4, %s8077_s17  ;;  %3143 = vmatmul.mubr.bf16.gmra.mrb[208].mxu0 %v2835_v50  ;;  %v2853_v50 = vsel %vm805_vm0, %v2848_v8, %v2852_v5 }
 0x246   :  { %1928 = vmatmul.mubr.bf16.gmra.mrb[20].mxu1 %v7985_v17  ;;  %3150 = vmatprep.mubr.bf16.mxu0 %v2841_v30  ;;  %v7991_v30 = vld [vmem:[#allocation2 + $0x120] sm:$0xff] }
 0x247   :  { %1935 = vmatprep.mubr.bf16.mxu1 %v7986_v63  ;;  %3446 = vmatpush1.bf16.msra.mxu0 %v7920_v6  ;;  %v7921_v17 = vld [vmem:[%s10944_s3 + $0x160] sm:$0xff]   ;;  %v2856_v63 = vrot.slane %v9218_v26, 4  ;;  %v7924_v26 = vld [vmem:[%s10944_s3 + $0x170] sm:$0xff]   ;;  %v7996_v6 = vld [vmem:[#allocation2 + $0x158] sm:$0xff] }
 0x248   :  { %5247 = vrot.lane.b32.xlu1 %v4433_v25, %s8077_s17  ;;  %3447 = vmatprep.subr.bf16.mxu0 %v9433_v21  ;;  %v7922_v25 = vld [vmem:[%s10944_s3 + $0x168] sm:$0xff]  }
 0x249   :  { %5249 = vrot.lane.b32.xlu0 %v4434_v15, %s8077_s17  ;;  %v2857_v15 = vsel %vm805_vm0, %v2852_v5, %v2856_v63 }
 0x24b   :  { %3448 = vmatpush1.bf16.msra.mxu0 %v7921_v17 }
 0x24c   :  { %5251 = vrot.lane.b32.xlu1 %v4435_v56, %s8077_s17  ;;  %3449 = vmatprep.subr.bf16.mxu0 %v9433_v21  ;;  %v7993_v56 = vld [vmem:[#allocation2 + $0x130] sm:$0xff] }
 0x24d   :  { %3151 = vmatmul.mubr.bf16.gmra.mrb[212].mxu0 %v2839_v11  ;;  %5253 = vrot.lane.b32.xlu0 %v4436_v47, %s8077_s17  ;;  %v7994_v11 = vld [vmem:[#allocation2 + $0x148] sm:$0xff]  ;;  %v2854_v47 = vrot.slane %v9214_v61, 4 }
 0x24e   :  { %1936 = vmatmul.mubr.bf16.gmra.mrb[24].mxu1 %v7987_v2  ;;  %3158 = vmatprep.mubr.bf16.mxu0 %v2845_v23  ;;  %v2860_v23 = vrot.slane %v9232_v59, 4  ;;  %v9511_v2 = vpop.permute.xlu0 %3718 }
 0x24f   :  { %1943 = vmatprep.mubr.bf16.mxu1 %v7988_v34  ;;  %3450 = vmatpush1.bf16.msra.mxu0 %v7922_v25  ;;  %v7925_v34 = vld [vmem:[%s10944_s3 + $0x178] sm:$0xff]   ;;  %v7927_v25 = vld [vmem:[%s10944_s3 + $0x188] sm:$0xff]  }
 0x250   :  { %v9465_v27 = vpop.f32.mrb[144].mxu0  ;;  %5255 = vrot.lane.b32.xlu1 %v4437_v36, %s8077_s17  ;;  %3451 = vmatprep.subr.bf16.mxu0 %v9433_v21  ;;  %v9518_v36 = vpop.permute.xlu1 %3720 }
 0x251   :  { %v9469_v55 = vpop.f32.mrb[145].mxu0 }
 0x252   :  { %v9472_v32 = vpop.f32.mrb[146].mxu0 }
 0x253   :  { %v9474_v9 = vpop.f32.mrb[147].mxu0  ;;  %3452 = vmatpush1.bf16.msra.mxu0 %v7924_v26 }
 0x254   :  { %3453 = vmatprep.subr.bf16.mxu0 %v9433_v21  ;;  %v9542_v17 = vpop.permute.xlu1 %3724 }
 0x255   :  { %3159 = vmatmul.mubr.bf16.gmra.mrb[216].mxu0 %v8552_v54 }
 0x256   :  { %1944 = vmatmul.mubr.bf16.gmra.mrb[28].mxu1 %v7989_v16  ;;  %3166 = vmatprep.mubr.bf16.mxu0 %v2849_v39  ;;  %v11022_v39 = vrot.slane %v8602_v53, 4  ;;  %v2861_v16 = vsel %vm805_vm0, %v2856_v63, %v2860_v23  ;;  %v7926_v53 = vld [vmem:[%s10944_s3 + $0x180] sm:$0xff]  }
 0x257   :  { %1951 = vmatprep.mubr.bf16.mxu1 %v7990_v49  ;;  %v7995_v49 = vld [vmem:[#allocation2 + $0x140] sm:$0xff]  ;;  %3454 = vmatpush1.bf16.msra.mxu0 %v7925_v34 }
 0x258   :  { %v9525_v61 = vsel %vm805_vm0, %v11022_v39, %v2854_v47  ;;  %3455 = vmatprep.subr.bf16.mxu0 %v9433_v21  ;;  %v7998_v39 = vld [vmem:[#allocation2 + $0x168] sm:$0xff] }
 0x259   :  { %v9479_v35 = vpop.f32.mrb[148].mxu0  ;;  %11023 = vst [vmem:[#allocation41_spill] sm:$0xff] %v9525_v61 }
 0x25a   :  { %v9481_v24 = vpop.f32.mrb[149].mxu0 }
 0x25b   :  { %v9483_v62 = vpop.f32.mrb[150].mxu0  ;;  %3456 = vmatpush1.bf16.msra.mxu0 %v7926_v53 }
 0x25c   :  { %v9488_v4 = vpop.f32.mrb[151].mxu0  ;;  %3457 = vmatprep.subr.bf16.mxu0 %v9433_v21 }
 0x25d   :  { %3167 = vmatmul.mubr.bf16.gmra.mrb[220].mxu0 %v8577_v20  ;;  %v8003_v20 = vld [vmem:[#allocation2 + $0x180] sm:$0xff] }
 0x25e   :  { %1952 = vmatmul.mubr.bf16.gmra.mrb[32].mxu1 %v7991_v30  ;;  %3174 = vmatprep.mubr.bf16.mxu0 %v2853_v50  ;;  %v2858_v50 = vrot.slane %v9227_v19, 4  ;;  %v2864_v30 = vrot.slane %v9244_v43, 4 }
 0x25f   :  { %1959 = vmatprep.mubr.bf16.mxu1 %v7992_v22  ;;  %v9540_v22 = vpop.permute.xlu0 %3722  ;;  %3458 = vmatpush1.bf16.msra.mxu0 %v7927_v25 }
 0x260   :  { %v2865_v19 = vsel %vm805_vm0, %v2860_v23, %v2864_v30  ;;  %3459 = vmatprep.subr.bf16.mxu0 %v9433_v21  ;;  %v2868_v23 = vrot.slane %v9259_v42, 4  ;;  %v8000_v42 = vld [vmem:[#allocation2 + $0x178] sm:$0xff] }
 0x263   :  { %v9561_v34 = vpop.permute.xlu0 %3726 }
 0x265   :  { %3175 = vmatmul.mubr.bf16.gmra.mrb[224].mxu0 %v8636_v37 }
 0x266   :  { %1960 = vmatmul.mubr.bf16.gmra.mrb[36].mxu1 %v7993_v56  ;;  %3182 = vmatprep.mubr.bf16.mxu0 %v2857_v15  ;;  %v9550_v15 = vsel %vm805_vm0, %v2854_v47, %v2858_v50  ;;  %v7929_v47 = vld [vmem:[%s10944_s3 + $0x190] sm:$0xff]  }
 0x267   :  { %1967 = vmatprep.mubr.bf16.mxu1 %v7994_v11  ;;  %11025 = vst [vmem:[#allocation43_spill] sm:$0xff] %v9550_v15  ;;  %v7997_v11 = vld [vmem:[#allocation2 + $0x150] sm:$0xff]  ;;  %3460 = vmatpush1.bf16.msra.mxu0 %v7929_v47  ;;  %v9578_v25 = vpop.permute.xlu0 %3730  ;;  %v11028_v47 = vld [vmem:[#allocation34_spill] sm:$0xff] }
 0x268   :  { %3461 = vmatprep.subr.bf16.mxu0 %v9433_v21 }
 0x26b   :  { %v9513_v33 = vpop.f32.mrb[152].mxu0 }
 0x26c   :  { %v9520_v8 = vpop.f32.mrb[153].mxu0 }
 0x26d   :  { %v9528_v59 = vpop.f32.mrb[154].mxu0  ;;  %3183 = vmatmul.mubr.bf16.gmra.mrb[228].mxu0 %v9525_v61  ;;  %v11031_v61 = vld [vmem:[#allocation35_spill] sm:$0xff] }
 0x26e   :  { %1968 = vmatmul.mubr.bf16.gmra.mrb[40].mxu1 %v7995_v49  ;;  %v9532_v5 = vpop.f32.mrb[155].mxu0  ;;  %3190 = vmatprep.mubr.bf16.mxu0 %v2861_v16  ;;  %v2862_v16 = vrot.slane %v9240_v18, 4  ;;  %v9567_v49 = vpop.permute.xlu1 %3728  ;;  %v2869_v18 = vsel %vm805_vm0, %v2864_v30, %v2868_v23  ;;  %v7933_v30 = vld [vmem:[%s10944_s3 + $0x1a8] sm:$0xff]  }
 0x26f   :  { %1975 = vmatprep.mubr.bf16.mxu1 %v7996_v6  ;;  %v7930_v6 = vld [vmem:[%s10944_s3 + $0x198] sm:$0xff]  }
 0x270   :  { %v9575_v53 = vsel %vm805_vm0, %v2858_v50, %v2862_v16  ;;  %3462 = vmatpush1.bf16.msra.mxu0 %v7930_v6  ;;  %v7931_v50 = vld [vmem:[%s10944_s3 + $0x1a0] sm:$0xff]  }
 0x271   :  { %11027 = vst [vmem:[#allocation45_spill] sm:$0xff] %v9575_v53  ;;  %3463 = vmatprep.subr.bf16.mxu0 %v9433_v21 }
 0x273   :  { %v9544_v63 = vpop.f32.mrb[156].mxu0 }
 0x274   :  { %11024 = vst [vmem:[#allocation42_spill] sm:$0xff] %v9544_v63  ;;  %v9552_v56 = vpop.f32.mrb[157].mxu0  ;;  %3464 = vmatpush1.bf16.msra.mxu0 %v7931_v50  ;;  %v7934_v50 = vld [vmem:[%s10944_s3 + $0x1b0] sm:$0xff]  }
 0x275   :  { %3191 = vmatmul.mubr.bf16.gmra.mrb[232].mxu0 %v9550_v15  ;;  %v9557_v43 = vpop.f32.mrb[158].mxu0  ;;  %v9590_v15 = vpop.permute.xlu0 %3734  ;;  %3465 = vmatprep.subr.bf16.mxu0 %v9433_v21 }
 0x276   :  { %11026 = vst [vmem:[#allocation44_spill] sm:$0xff] %v9557_v43  ;;  %1976 = vmatmul.mubr.bf16.gmra.mrb[44].mxu1 %v7997_v11  ;;  %3198 = vmatprep.mubr.bf16.mxu0 %v2865_v19  ;;  %v9559_v26 = vpop.f32.mrb[159].mxu0  ;;  %v9582_v19 = vpop.permute.xlu1 %3732  ;;  %v7999_v11 = vld [vmem:[#allocation2 + $0x160] sm:$0xff] }
 0x277   :  { %1983 = vmatprep.mubr.bf16.mxu1 %v7998_v39  ;;  %v2866_v39 = vrot.slane %v9252_v31, 4 }
 0x278   :  { %3466 = vmatpush1.bf16.msra.mxu0 %v7933_v30 }
 0x279   :  { %v9598_v6 = vsel %vm805_vm0, %v2862_v16, %v2866_v39  ;;  %3467 = vmatprep.subr.bf16.mxu0 %v9433_v21  ;;  %v9611_v37 = vpop.permute.xlu0 %3738 }
 0x27a   :  { %11029 = vst [vmem:[#allocation34_spill] sm:$0xff] %v9598_v6 }
 0x27c   :  { %3468 = vmatpush1.bf16.msra.mxu0 %v7934_v50  ;;  %v2874_v50 = vrot.slane %v9274_v14, 4 }
 0x27d   :  { %3199 = vmatmul.mubr.bf16.gmra.mrb[236].mxu0 %v9575_v53  ;;  %v2872_v53 = vrot.slane %v11028_v47, 4  ;;  %v2870_v47 = vrot.slane %v9265_v7, 4  ;;  %v7935_v7 = vld [vmem:[%s10944_s3 + $0x1b8] sm:$0xff]   ;;  %3469 = vmatprep.subr.bf16.mxu0 %v9433_v21  ;;  %v9630_v54 = vpop.permute.xlu0 %3742 }
 0x27e   :  { %1984 = vmatmul.mubr.bf16.gmra.mrb[48].mxu1 %v7999_v11  ;;  %3206 = vmatprep.mubr.bf16.mxu0 %v2869_v18  ;;  %v9595_v18 = vpop.permute.xlu1 %3736  ;;  %v8001_v11 = vld [vmem:[#allocation2 + $0x170] sm:$0xff] }
 0x27f   :  { %1991 = vmatprep.mubr.bf16.mxu1 %v8000_v42  ;;  %v2873_v31 = vsel %vm805_vm0, %v2868_v23, %v2872_v53  ;;  %v8002_v42 = vld [vmem:[#allocation2 + $0x188] sm:$0xff] }
 0x280   :  { %3470 = vmatpush1.bf16.msra.mxu0 %v7935_v7  ;;  %v8006_v7 = vld [vmem:[#allocation2 + $0x1a8] sm:$0xff] }
 0x285   :  { %3207 = vmatmul.mubr.bf16.gmra.mrb[240].mxu0 %v9598_v6  ;;  %v2876_v6 = vrot.slane %v11031_v61, 4 }
 0x286   :  { %1992 = vmatmul.mubr.bf16.gmra.mrb[52].mxu1 %v8001_v11  ;;  %3214 = vmatprep.mubr.bf16.mxu0 %v2873_v31  ;;  %v9615_v31 = vpop.permute.xlu1 %3740 }
 0x287   :  { %1999 = vmatprep.mubr.bf16.mxu1 %v8002_v42  ;;  %v9625_v42 = vsel %vm805_vm0, %v2866_v39, %v2870_v47  ;;  %v2877_v61 = vsel %vm805_vm0, %v2872_v53, %v2876_v6  ;;  %v2880_v39 = vrot.slane %v9290_v38, 4  ;;  %v8005_v38 = vld [vmem:[#allocation2 + $0x190] sm:$0xff] }
 0x288   :  { %v9607_v16 = vpop.f32.mrb[160].mxu0  ;;  %11035 = vst [vmem:[#allocation49_spill] sm:$0xff] %v9625_v42 }
 0x289   :  { %11030 = vst [vmem:[#allocation46_spill] sm:$0xff] %v9607_v16  ;;  %v9613_v23 = vpop.f32.mrb[161].mxu0 }
 0x28a   :  { %11032 = vst [vmem:[#allocation35_spill] sm:$0xff] %v9613_v23  ;;  %v9617_v11 = vpop.f32.mrb[162].mxu0  ;;  %v11044_v23 = vld [vmem:[#allocation26_spill] sm:$0xff] }
 0x28b   :  { %11033 = vst [vmem:[#allocation47_spill] sm:$0xff] %v9617_v11  ;;  %v9619_v30 = vpop.f32.mrb[163].mxu0  ;;  %v9633_v11 = vpop.permute.xlu1 %3744 }
 0x28c   :  { %11034 = vst [vmem:[#allocation48_spill] sm:$0xff] %v9619_v30 }
 0x28d   :  { %3215 = vmatmul.mubr.bf16.gmra.mrb[244].mxu0 %v9625_v42 }
 0x28e   :  { %2000 = vmatmul.mubr.bf16.gmra.mrb[56].mxu1 %v8003_v20  ;;  %3222 = vmatprep.mubr.bf16.mxu0 %v2877_v61  ;;  %v9643_v20 = vsel %vm805_vm0, %v2870_v47, %v2874_v50  ;;  %v9647_v61 = vpop.permute.xlu0 %3746 }
 0x28f   :  { %2007 = vmatprep.mubr.bf16.mxu1 %v8004_v48  ;;  %11039 = vst [vmem:[#allocation53_spill] sm:$0xff] %v9643_v20  ;;  %v2881_v48 = vsel %vm805_vm0, %v2876_v6, %v2880_v39  ;;  %v9651_v14 = vpop.permute.xlu1 %3748  ;;  %v11043_v6 = vld [vmem:[#allocation9_spill] sm:$0xff] }
 0x291   :  { %v9636_v16 = vpop.f32.mrb[164].mxu0 }
 0x292   :  { %11036 = vst [vmem:[#allocation50_spill] sm:$0xff] %v9636_v16  ;;  %v9638_v21 = vpop.f32.mrb[165].mxu0  ;;  %v9656_v47 = vpop.permute.xlu0 %3750 }
 0x293   :  { %11037 = vst [vmem:[#allocation51_spill] sm:$0xff] %v9638_v21  ;;  %v9640_v42 = vpop.f32.mrb[166].mxu0  ;;  %v9658_v16 = vpop.permute.xlu1 %3752 }
 0x294   :  { %11038 = vst [vmem:[#allocation52_spill] sm:$0xff] %v9640_v42  ;;  %v9645_v53 = vpop.f32.mrb[167].mxu0  ;;  %v9654_v42 = vrot.slane %v9286_v28, 4  ;;  %v2888_v28 = vrot.slane %v9306_v45, 4 }
 0x295   :  { %11040 = vst [vmem:[#allocation54_spill] sm:$0xff] %v9645_v53  ;;  %3223 = vmatmul.mubr.bf16.gmra.mrb[248].mxu0 %v9643_v20  ;;  %v2885_v20 = vsel %vm805_vm0, %v2880_v39, %v11043_v6 }
 0x296   :  { %2008 = vmatmul.mubr.bf16.gmra.mrb[60].mxu1 %v8005_v38  ;;  %3230 = vmatprep.mubr.bf16.mxu0 %v2881_v48  ;;  %11041 = vst [vmem:[#allocation55_spill] sm:$0xff] %v9654_v42  ;;  %v9662_v53 = vsel %vm805_vm0, %v2874_v50, %v9654_v42  ;;  %v8007_v38 = vld [vmem:[#allocation2 + $0x1a0] sm:$0xff]  ;;  %v8008_v48 = vld [vmem:[#allocation2 + $0x1b8] sm:$0xff] }
 0x297   :  { %2015 = vmatprep.mubr.bf16.mxu1 %v8006_v7  ;;  %11042 = vst [vmem:[#allocation56_spill] sm:$0xff] %v9662_v53  ;;  %v9668_v7 = vpop.permute.xlu0 %3754  ;;  %v9670_v30 = vpop.permute.xlu1 %3756 }
 0x29d   :  { %3231 = vmatmul.mubr.bf16.gmra.mrb[252].mxu0 %v9662_v53  ;;  %v11045_v53 = vld [vmem:[#allocation10_spill] sm:$0xff] }
 0x29e   :  { %2016 = vmatmul.mubr.bf16.gmra.mrb[64].mxu1 %v8007_v38  ;;  %3238 = vmatprep.mubr.bf16.mxu0 %v2885_v20  ;;  %v2883_v39 = vsel %vm805_vm0, %v9654_v42, %v11045_v53  ;;  %v11047_v20 = vld [vmem:[#allocation27_spill] sm:$0xff]  ;;  %v8009_v42 = vld [vmem:[#allocation2 + $0x1b0] sm:$0xff] }
 0x29f   :  { %2023 = vmatprep.mubr.bf16.mxu1 %v8008_v48 }
 0x2a1   :  { %v1809_v21 = vpop.f32.mrb[72].mxu1 }
 0x2a2   :  { %v1810_v50 = vadd.f32 %v1809_v21, %v11044_v23  ;;  %v1811_v43 = vpop.f32.mrb[73].mxu1  ;;  %v2889_v23 = vsel %vm805_vm0, %v11043_v6, %v2888_v28  ;;  %v2892_v6 = vrot.slane %v9316_v0, 4  ;;  %v7915_v0 = vld [vmem:[%s10944_s3 + $0x2c8] sm:$0xff]  }
 0x2a3   :  { %v1812_v12 = vpop.f32.mrb[74].mxu1  ;;  %v9680_v63 = vpop.f32.mrb[168].mxu0 }
 0x2a4   :  { %v9677_v38 = vadd.f32 %v9378_v13, %v1810_v50  ;;  %v1813_v48 = vadd.f32 %v1812_v12, %v11047_v20  ;;  %v1814_v45 = vpop.f32.mrb[75].mxu1  ;;  %v9682_v60 = vpop.f32.mrb[169].mxu0  ;;  %v3828_v12 = vsel %vm2164_vm1, %v9503_v10, %v9511_v2  ;;  %v11050_v20 = vld [vmem:[#allocation28_spill] sm:$0xff]  ;;  %v11053_v2 = vld [vmem:[#allocation29_spill] sm:$0xff] }
 0x2a5   :  { %3239 = vmatmul.mubr.bf16.gmra.mrb[0].mxu0 %v2883_v39  ;;  %v9689_v21 = vpop.f32.mrb[170].mxu0  ;;  %v9694_v13 = vpop.permute.xlu0 %3758 }
 0x2a6   :  { %11046 = vst [vmem:[#allocation9_spill] sm:$0xff] %v9677_v38  ;;  %v9687_v43 = vadd.f32 %v9386_v51, %v1813_v48  ;;  %11049 = vst [vmem:[#allocation10_spill] sm:$0xff] %v9689_v21  ;;  %2024 = vmatmul.mubr.bf16.gmra.mrb[68].mxu1 %v8009_v42  ;;  %3246 = vmatprep.mubr.bf16.mxu0 %v2889_v23  ;;  %v9696_v50 = vpop.f32.mrb[171].mxu0  ;;  %v9698_v39 = vpop.permute.xlu1 %3760  ;;  %v11051_v42 = vld [vmem:[#allocation12_spill] sm:$0xff] }
 0x2a7   :  { %7156 = vmatprep.mubr.bf16.mxu1 %v3828_v12  ;;  %v2887_v23 = vsel %vm805_vm0, %v11045_v53, %v11051_v42  ;;  %v2893_v53 = vsel %vm805_vm0, %v2888_v28, %v2892_v6  ;;  %v11055_v28 = vld [vmem:[#allocation30_spill] sm:$0xff] }
 0x2a8   :  { %11048 = vst [vmem:[#allocation26_spill] sm:$0xff] %v9687_v43 }
 0x2a9   :  { %v1817_v51 = vpop.f32.mrb[76].mxu1 }
 0x2aa   :  { %v1818_v48 = vadd.f32 %v1817_v51, %v11050_v20  ;;  %v1819_v45 = vpop.f32.mrb[77].mxu1  ;;  %v3829_v51 = vsel %vm2164_vm1, %v9518_v36, %v9540_v22  ;;  %v9717_v20 = vpop.permute.xlu0 %3762  ;;  %v7917_v22 = vld [vmem:[%s10944_s3 + $0x2d0] sm:$0xff]  }
 0x2ab   :  { %v1820_v43 = vpop.f32.mrb[78].mxu1  ;;  %v9709_v12 = vpop.f32.mrb[172].mxu0 }
 0x2ac   :  { %v9706_v10 = vadd.f32 %v9376_v41, %v1818_v48  ;;  %v1821_v38 = vadd.f32 %v1820_v43, %v11053_v2  ;;  %v1822_v21 = vpop.f32.mrb[79].mxu1  ;;  %v9720_v41 = vpop.f32.mrb[173].mxu0 }
 0x2ad   :  { %3247 = vmatmul.mubr.bf16.gmra.mrb[4].mxu0 %v2887_v23  ;;  %v9722_v48 = vpop.permute.xlu1 %3764  ;;  %v3830_v21 = vsel %vm2164_vm1, %v9542_v17, %v9561_v34  ;;  %v9730_v45 = vpop.f32.mrb[174].mxu0  ;;  %v11057_v34 = vld [vmem:[#allocation31_spill] sm:$0xff] }
 0x2ae   :  { %11052 = vst [vmem:[#allocation27_spill] sm:$0xff] %v9706_v10  ;;  %v9725_v43 = vadd.f32 %v9382_v46, %v1821_v38  ;;  %3254 = vmatprep.mubr.bf16.mxu0 %v2893_v53  ;;  %7157 = vmatmul.mubr.bf16.vlgmr.msra.gmra.mrb[112].mxu1 %v3829_v51  ;;  %v9733_v36 = vpop.f32.mrb[175].mxu0  ;;  %v9739_v2 = vpop.permute.xlu0 %3766  ;;  %v11058_v10 = vld [vmem:[#allocation13_spill] sm:$0xff] }
 0x2af   :  { %7213 = vmatpush3.bf16.msra.mxu1 %v9413_v58  ;;  %7160 = vmatprep.mubr.bf16.mxu1 %v3830_v21 }
 0x2b0   :  { %11054 = vst [vmem:[#allocation28_spill] sm:$0xff] %v9725_v43  ;;  %7214 = vmatprep.subr.bf16.mxu1 %v7915_v0  ;;  %v7919_v43 = vld [vmem:[%s10944_s3 + $0x2d8] sm:$0xff]  }
 0x2b1   :  { %v1825_v46 = vpop.f32.mrb[80].mxu1  ;;  %v9741_v17 = vpop.permute.xlu1 %3768 }
 0x2b2   :  { %v1826_v38 = vadd.f32 %v1825_v46, %v11055_v28  ;;  %v1827_v23 = vpop.f32.mrb[81].mxu1  ;;  %v11059_v46 = vld [vmem:[#allocation14_spill] sm:$0xff] }
 0x2b3   :  { %v1828_v51 = vpop.f32.mrb[82].mxu1  ;;  %7215 = vmatpush3.bf16.msra.mxu1 %v7915_v0  ;;  %v2897_v28 = vsel %vm805_vm0, %v2892_v6, %v11059_v46  ;;  %v3831_v0 = vsel %vm2164_vm1, %v9567_v49, %v9578_v25  ;;  %v7923_v6 = vld [vmem:[%s10944_s3 + $0x2e0] sm:$0xff]   ;;  %v9765_v23 = vpop.permute.xlu0 %3770 }
 0x2b4   :  { %v9744_v58 = vadd.f32 %v9469_v55, %v1826_v38  ;;  %v1829_v53 = vadd.f32 %v1828_v51, %v11057_v34  ;;  %v1830_v21 = vpop.f32.mrb[83].mxu1  ;;  %7216 = vmatprep.subr.bf16.mxu1 %v7917_v22  ;;  %v3832_v38 = vsel %vm2164_vm1, %v9582_v19, %v9590_v15  ;;  %v11063_v46 = vld [vmem:[#allocation11_spill] sm:$0xff] }
 0x2b5   :  { %3255 = vmatmul.mubr.bf16.gmra.mrb[8].mxu0 %v11058_v10  ;;  %v9767_v49 = vpop.permute.xlu1 %3772  ;;  %v11062_v21 = vld [vmem:[#allocation17_spill] sm:$0xff] }
 0x2b6   :  { %11056 = vst [vmem:[#allocation12_spill] sm:$0xff] %v9744_v58  ;;  %v9757_v55 = vadd.f32 %v9474_v9, %v1829_v53  ;;  %3262 = vmatprep.mubr.bf16.mxu0 %v2897_v28  ;;  %7161 = vmatmul.mubr.bf16.gmra.mrb[116].mxu1 %v3831_v0  ;;  %v11061_v9 = vld [vmem:[#allocation32_spill] sm:$0xff]  ;;  %v2895_v15 = vsel %vm805_vm0, %v11063_v46, %v11062_v21 }
 0x2b7   :  { %7164 = vmatprep.mubr.bf16.mxu1 %v3832_v38  ;;  %7217 = vmatpush3.bf16.msra.mxu1 %v7917_v22  ;;  %v11065_v22 = vld [vmem:[#allocation33_spill] sm:$0xff]  ;;  %v7928_v38 = vld [vmem:[%s10944_s3 + $0x2e8] sm:$0xff]  }
 0x2b8   :  { %11060 = vst [vmem:[#allocation29_spill] sm:$0xff] %v9757_v55  ;;  %7218 = vmatprep.subr.bf16.mxu1 %v7919_v43  ;;  %v11068_v21 = vld [vmem:[#allocation36_spill] sm:$0xff]  ;;  %v11103_v55 = vld [vmem:[#allocation51_spill] sm:$0xff] }
 0x2b9   :  { %v1833_v51 = vpop.f32.mrb[84].mxu1 }
 0x2ba   :  { %v1834_v25 = vadd.f32 %v1833_v51, %v11061_v9  ;;  %v1835_v34 = vpop.f32.mrb[85].mxu1  ;;  %v11067_v9 = vld [vmem:[#allocation15_spill] sm:$0xff] }
 0x2bb   :  { %v1836_v53 = vpop.f32.mrb[86].mxu1  ;;  %7219 = vmatpush3.bf16.msra.mxu1 %v7919_v43  ;;  %v3833_v43 = vsel %vm2164_vm1, %v9595_v18, %v9611_v37  ;;  %v9792_v34 = vpop.permute.xlu1 %3776  ;;  %v7932_v37 = vld [vmem:[%s10944_s3 + $0x2f0] sm:$0xff]  }
 0x2bc   :  { %v9774_v19 = vadd.f32 %v9465_v27, %v1834_v25  ;;  %v1837_v28 = vadd.f32 %v1836_v53, %v11065_v22  ;;  %v1838_v0 = vpop.f32.mrb[87].mxu1  ;;  %7220 = vmatprep.subr.bf16.mxu1 %v7923_v6  ;;  %v3834_v27 = vsel %vm2164_vm1, %v9615_v31, %v9630_v54  ;;  %v9790_v25 = vpop.permute.xlu0 %3774 }
 0x2bd   :  { %3263 = vmatmul.mubr.bf16.gmra.mrb[12].mxu0 %v2895_v15  ;;  %v11070_v0 = vld [vmem:[#allocation37_spill] sm:$0xff] }
 0x2be   :  { %11064 = vst [vmem:[#allocation30_spill] sm:$0xff] %v9774_v19  ;;  %v9784_v51 = vadd.f32 %v9472_v32, %v1837_v28  ;;  %3270 = vmatprep.mubr.bf16.mxu0 %v11067_v9  ;;  %7165 = vmatmul.mubr.bf16.gmra.mrb[120].mxu1 %v3833_v43 }
 0x2bf   :  { %7168 = vmatprep.mubr.bf16.mxu1 %v3834_v27  ;;  %7221 = vmatpush3.bf16.msra.mxu1 %v7923_v6  ;;  %v7936_v27 = vld [vmem:[%s10944_s3 + $0x2f8] sm:$0xff]  }
 0x2c0   :  { %11066 = vst [vmem:[#allocation31_spill] sm:$0xff] %v9784_v51  ;;  %v9794_v53 = vpop.f32.mrb[176].mxu0  ;;  %7222 = vmatprep.subr.bf16.mxu1 %v7928_v38  ;;  %v11071_v51 = vld [vmem:[#allocation21_spill] sm:$0xff] }
 0x2c1   :  { %v1841_v32 = vpop.f32.mrb[88].mxu1  ;;  %v9799_v18 = vpop.f32.mrb[177].mxu0 }
 0x2c2   :  { %v1842_v15 = vadd.f32 %v1841_v32, %v11068_v21  ;;  %v1843_v22 = vpop.f32.mrb[89].mxu1  ;;  %v9802_v54 = vpop.f32.mrb[178].mxu0  ;;  %v3835_v32 = vsel %vm2164_vm1, %v9633_v11, %v9647_v61  ;;  %v9831_v11 = vld [vmem:[%s10944_s3 + $0x280] sm:$0xff]  }
 0x2c3   :  { %v1844_v31 = vpop.f32.mrb[90].mxu1  ;;  %v9804_v28 = vpop.f32.mrb[179].mxu0  ;;  %7223 = vmatpush3.bf16.msra.mxu1 %v7928_v38  ;;  %v11073_v38 = vld [vmem:[#allocation16_spill] sm:$0xff] }
 0x2c4   :  { %v9807_v6 = vadd.f32 %v9481_v24, %v1842_v15  ;;  %v1845_v43 = vadd.f32 %v1844_v31, %v11070_v0  ;;  %v1846_v9 = vpop.f32.mrb[91].mxu1  ;;  %7224 = vmatprep.subr.bf16.mxu1 %v7932_v37  ;;  %v3836_v24 = vsel %vm2164_vm1, %v9651_v14, %v9656_v47  ;;  %v9824_v15 = vpop.permute.xlu0 %3778 }
 0x2c5   :  { %3271 = vmatmul.mubr.bf16.gmra.mrb[16].mxu0 %v11071_v51  ;;  %v9826_v22 = vpop.permute.xlu1 %3780  ;;  %v11074_v51 = vld [vmem:[#allocation38_spill] sm:$0xff] }
 0x2c6   :  { %11069 = vst [vmem:[#allocation13_spill] sm:$0xff] %v9807_v6  ;;  %v9818_v21 = vadd.f32 %v9488_v4, %v1845_v43  ;;  %3278 = vmatprep.mubr.bf16.mxu0 %v11073_v38  ;;  %7169 = vmatmul.mubr.bf16.gmra.mrb[124].mxu1 %v3835_v32  ;;  %v2728_v6 = vld [vmem:[#allocation2 + $0x200] sm:$0xf] }
 0x2c7   :  { %7172 = vmatprep.mubr.bf16.mxu1 %v3836_v24  ;;  %7225 = vmatpush3.bf16.msra.mxu1 %v7932_v37 }
 0x2c8   :  { %11072 = vst [vmem:[#allocation14_spill] sm:$0xff] %v9818_v21  ;;  %7226 = vmatprep.subr.bf16.mxu1 %v7936_v27  ;;  %v9847_v24 = vpop.permute.xlu0 %3782  ;;  %v11094_v21 = vld [vmem:[#allocation44_spill] sm:$0xff] }
 0x2c9   :  { %v1849_v4 = vpop.f32.mrb[92].mxu1  ;;  %v9833_v61 = vpop.f32.mrb[180].mxu0 }
 0x2ca   :  { %v1850_v31 = vadd.f32 %v1849_v4, %v11074_v51  ;;  %v1851_v0 = vpop.f32.mrb[93].mxu1  ;;  %v9836_v43 = vpop.f32.mrb[181].mxu0  ;;  %v11076_v4 = vld [vmem:[#allocation22_spill] sm:$0xff]  ;;  %v3837_v51 = vsel %vm2164_vm1, %v9658_v16, %v9668_v7 }
 0x2cb   :  { %v1852_v14 = vpop.f32.mrb[94].mxu1  ;;  %v9838_v47 = vpop.f32.mrb[182].mxu0  ;;  %7227 = vmatpush3.bf16.msra.mxu1 %v7936_v27  ;;  %v11078_v27 = vld [vmem:[#allocation18_spill] sm:$0xff] }
 0x2cc   :  { %v9841_v37 = vadd.f32 %v9479_v35, %v1850_v31  ;;  %v1853_v9 = vadd.f32 %v1852_v14, %v9302_v3  ;;  %v1854_v32 = vpop.f32.mrb[95].mxu1  ;;  %v9844_v38 = vpop.f32.mrb[183].mxu0  ;;  %7284 = vmatprep.subr.bf16.mxu1 %v9831_v11  ;;  %v3838_v3 = vsel %vm2164_vm1, %v9670_v30, %v9694_v13  ;;  %v3839_v30 = vsel %vm2164_vm1, %v9698_v39, %v9717_v20  ;;  %v11082_v13 = vld [vmem:[#allocation20_spill] sm:$0xff] }
 0x2cd   :  { %3279 = vmatmul.mubr.bf16.gmra.mrb[20].mxu0 %v11076_v4  ;;  %v9853_v0 = vpop.permute.xlu1 %3784  ;;  %v9863_v4 = vpop.permute.xlu0 %3786 }
 0x2ce   :  { %11075 = vst [vmem:[#allocation32_spill] sm:$0xff] %v9841_v37  ;;  %v9856_v35 = vadd.f32 %v9483_v62, %v1853_v9  ;;  %3286 = vmatprep.mubr.bf16.mxu0 %v11078_v27  ;;  %7173 = vmatmul.mubr.bf16.gmra.mrb[128].mxu1 %v3837_v51  ;;  %v11080_v27 = vld [vmem:[#allocation23_spill] sm:$0xff]  ;;  %v3845_v37 = vsel %vm2164_vm1, %v9853_v0, %v9863_v4 }
 0x2cf   :  { %7176 = vmatprep.mubr.bf16.mxu1 %v3838_v3  ;;  %v9882_v3 = vld [vmem:[#allocation2 + $0x1c8] sm:$0xff] }
 0x2d0   :  { %11077 = vst [vmem:[#allocation17_spill] sm:$0xff] %v9856_v35 }
 0x2d1   :  { %v1857_v31 = vpop.f32.mrb[96].mxu1  ;;  %v9865_v7 = vpop.permute.xlu1 %3788 }
 0x2d2   :  { %v1858_v14 = vadd.f32 %v1857_v31, %v9318_v29  ;;  %v1859_v32 = vpop.f32.mrb[97].mxu1  ;;  %v9885_v31 = vpop.permute.xlu0 %3790 }
 0x2d3   :  { %v1860_v16 = vpop.f32.mrb[98].mxu1 }
 0x2d4   :  { %v9868_v62 = vadd.f32 %v9520_v8, %v1858_v14  ;;  %v1861_v9 = vadd.f32 %v1860_v16, %v9322_v57  ;;  %v1862_v51 = vpop.f32.mrb[99].mxu1  ;;  %v3840_v8 = vsel %vm2164_vm1, %v9722_v48, %v9739_v2  ;;  %v2916_v57 = vrot.slane %v9882_v3, 4 }
 0x2d5   :  { %3287 = vmatmul.mubr.bf16.gmra.mrb[24].mxu0 %v11080_v27  ;;  %v9887_v32 = vpop.permute.xlu1 %3792 }
 0x2d6   :  { %11079 = vst [vmem:[#allocation11_spill] sm:$0xff] %v9868_v62  ;;  %v9876_v29 = vadd.f32 %v9532_v5, %v1861_v9  ;;  %3294 = vmatprep.mubr.bf16.mxu0 %v11082_v13  ;;  %7177 = vmatmul.mubr.bf16.gmra.mrb[132].mxu1 %v3839_v30  ;;  %v11084_v30 = vld [vmem:[#allocation25_spill] sm:$0xff]  ;;  %v11085_v13 = vld [vmem:[#allocation19_spill] sm:$0xff] }
 0x2d7   :  { %7180 = vmatprep.mubr.bf16.mxu1 %v3840_v8  ;;  %v2917_v8 = vsel %vm805_vm0, %v11085_v13, %v2916_v57 }
 0x2d8   :  { %11081 = vst [vmem:[#allocation33_spill] sm:$0xff] %v9876_v29 }
 0x2d9   :  { %v1865_v14 = vpop.f32.mrb[100].mxu1 }
 0x2da   :  { %v1866_v5 = vadd.f32 %v1865_v14, %v9330_v52  ;;  %v1867_v39 = vpop.f32.mrb[101].mxu1  ;;  %v3841_v52 = vsel %vm2164_vm1, %v9741_v17, %v9765_v23  ;;  %v9922_v23 = vpop.permute.xlu1 %3796 }
 0x2db   :  { %v1868_v20 = vpop.f32.mrb[102].mxu1  ;;  %v9890_v16 = vpop.f32.mrb[184].mxu0 }
 0x2dc   :  { %v9893_v9 = vadd.f32 %v9513_v33, %v1866_v5  ;;  %v1869_v48 = vadd.f32 %v1868_v20, %v9334_v40  ;;  %v1870_v2 = vpop.f32.mrb[103].mxu1  ;;  %v9896_v51 = vpop.f32.mrb[185].mxu0  ;;  %v3842_v40 = vsel %vm2164_vm1, %v9767_v49, %v9790_v25  ;;  %v9914_v5 = vld [vmem:[#allocation2 + $0x1c0] sm:$0xff]  ;;  %v11087_v49 = vld [vmem:[#allocation24_spill] sm:$0xff] }
 0x2dd   :  { %v9898_v27 = vpop.f32.mrb[186].mxu0  ;;  %3295 = vmatmul.mubr.bf16.gmra.mrb[28].mxu0 %v11084_v30  ;;  %v2914_v39 = vrot.slane %v9914_v5, 4  ;;  %v9917_v20 = vpop.permute.xlu0 %3794  ;;  %v9919_v2 = vld [vmem:[#allocation2 + $0x1d8] sm:$0xff] }
 0x2de   :  { %11083 = vst [vmem:[#allocation15_spill] sm:$0xff] %v9893_v9  ;;  %v9907_v14 = vadd.f32 %v9528_v59, %v1869_v48  ;;  %v9909_v33 = vpop.f32.mrb[187].mxu0  ;;  %3302 = vmatprep.mubr.bf16.mxu0 %v2917_v8  ;;  %7181 = vmatmul.mubr.bf16.gmra.mrb[136].mxu1 %v3841_v52  ;;  %v2920_v59 = vrot.slane %v9919_v2, 4 }
 0x2df   :  { %7184 = vmatprep.mubr.bf16.mxu1 %v3842_v40  ;;  %v2915_v25 = vsel %vm805_vm0, %v11087_v49, %v2914_v39 }
 0x2e0   :  { %11086 = vst [vmem:[#allocation36_spill] sm:$0xff] %v9907_v14  ;;  %v2921_v29 = vsel %vm805_vm0, %v2916_v57, %v2920_v59  ;;  %v9949_v57 = vld [vmem:[#allocation2 + $0x1d0] sm:$0xff] }
 0x2e1   :  { %v1873_v17 = vpop.f32.mrb[104].mxu1 }
 0x2e2   :  { %v1874_v48 = vadd.f32 %v1873_v17, %v9344_v1  ;;  %v1875_v30 = vpop.f32.mrb[105].mxu1  ;;  %v3843_v1 = vsel %vm2164_vm1, %v9792_v34, %v9824_v15  ;;  %v9952_v34 = vld [vmem:[#allocation2 + $0x1e8] sm:$0xff] }
 0x2e3   :  { %v1876_v13 = vpop.f32.mrb[106].mxu1  ;;  %v9925_v8 = vpop.f32.mrb[188].mxu0  ;;  %v2924_v15 = vrot.slane %v9952_v34, 4 }
 0x2e4   :  { %v9930_v52 = vadd.f32 %v9552_v56, %v1874_v48  ;;  %v1877_v40 = vadd.f32 %v1876_v13, %v9348_v44  ;;  %v1878_v14 = vpop.f32.mrb[107].mxu1  ;;  %v9933_v9 = vpop.f32.mrb[189].mxu0  ;;  %v3844_v44 = vsel %vm2164_vm1, %v9826_v22, %v9847_v24  ;;  %v11090_v13 = vld [vmem:[#allocation39_spill] sm:$0xff]  ;;  %v11091_v24 = vld [vmem:[#allocation42_spill] sm:$0xff] }
 0x2e5   :  { %3303 = vmatmul.mubr.bf16.gmra.mrb[32].mxu0 %v2915_v25  ;;  %v9939_v17 = vpop.f32.mrb[190].mxu0  ;;  %v3799_v30 = vpop.permute.xlu0 %3798  ;;  %v2918_v14 = vrot.slane %v9949_v57, 4  ;;  %v2925_v35 = vsel %vm805_vm0, %v2920_v59, %v2924_v15  ;;  %v9974_v59 = vld [vmem:[#allocation2 + $0x1f8] sm:$0xff] }
 0x2e6   :  { %11088 = vst [vmem:[#allocation37_spill] sm:$0xff] %v9930_v52  ;;  %v9942_v49 = vadd.f32 %v9559_v26, %v1877_v40  ;;  %3310 = vmatprep.mubr.bf16.mxu0 %v2921_v29  ;;  %7185 = vmatmul.mubr.bf16.gmra.mrb[140].mxu1 %v3843_v1  ;;  %v9947_v56 = vpop.f32.mrb[191].mxu0  ;;  %v3801_v26 = vpop.permute.xlu1 %3800 }
 0x2e7   :  { %7188 = vmatprep.mubr.bf16.mxu1 %v3844_v44  ;;  %v2919_v1 = vsel %vm805_vm0, %v2914_v39, %v2918_v14  ;;  %v11093_v44 = vld [vmem:[#allocation40_spill] sm:$0xff]  ;;  %v3846_v39 = vsel %vm2164_vm1, %v9865_v7, %v9885_v31 }
 0x2e8   :  { %11089 = vst [vmem:[#allocation21_spill] sm:$0xff] %v9942_v49  ;;  %v11098_v7 = vld [vmem:[#allocation48_spill] sm:$0xff] }
 0x2e9   :  { %v1881_v48 = vpop.f32.mrb[108].mxu1  ;;  %v3803_v22 = vpop.permute.xlu0 %3802 }
 0x2ea   :  { %v1882_v29 = vadd.f32 %v1881_v48, %v11090_v13  ;;  %v1883_v25 = vpop.f32.mrb[109].mxu1  ;;  %v9971_v13 = vld [vmem:[#allocation2 + $0x1e0] sm:$0xff] }
 0x2eb   :  { %v1884_v40 = vpop.f32.mrb[110].mxu1  ;;  %v2928_v25 = vrot.slane %v9974_v59, 4 }
 0x2ec   :  { %v9958_v49 = vadd.f32 %v11091_v24, %v1882_v29  ;;  %v1885_v52 = vadd.f32 %v1884_v40, %v11093_v44  ;;  %v1886_v62 = vpop.f32.mrb[111].mxu1  ;;  %v3805_v29 = vpop.permute.xlu1 %3804  ;;  %v3847_v44 = vsel %vm2164_vm1, %v9887_v32, %v9917_v20  ;;  %v11100_v32 = vld [vmem:[#allocation46_spill] sm:$0xff] }
 0x2ed   :  { %3311 = vmatmul.mubr.bf16.gmra.mrb[36].mxu0 %v2919_v1  ;;  %v2922_v62 = vrot.slane %v9971_v13, 4  ;;  %v3807_v4 = vpop.permute.xlu0 %3806  ;;  %v2929_v24 = vsel %vm805_vm0, %v2924_v15, %v2928_v25 }
 0x2ee   :  { %11092 = vst [vmem:[#allocation16_spill] sm:$0xff] %v9958_v49  ;;  %v9966_v48 = vadd.f32 %v11094_v21, %v1885_v52  ;;  %3318 = vmatprep.mubr.bf16.mxu0 %v2925_v35  ;;  %7189 = vmatmul.mubr.bf16.gmra.mrb[144].mxu1 %v3845_v37  ;;  %v11096_v21 = vld [vmem:[#allocation35_spill] sm:$0xff] }
 0x2ef   :  { %7192 = vmatprep.mubr.bf16.mxu1 %v3846_v39  ;;  %v2923_v40 = vsel %vm805_vm0, %v2918_v14, %v2922_v62  ;;  %v9990_v14 = vld [vmem:[#allocation2 + $0x1f0] sm:$0xff] }
 0x2f0   :  { %11095 = vst [vmem:[#allocation38_spill] sm:$0xff] %v9966_v48  ;;  %v3809_v39 = vpop.permute.xlu1 %3808 }
 0x2f1   :  { %v1889_v0 = vpop.f32.mrb[0].mxu1 }
 0x2f2   :  { %v9978_v52 = vadd.f32 %v11096_v21, %v1889_v0  ;;  %v1891_v37 = vpop.f32.mrb[1].mxu1  ;;  %v3848_v0 = vsel %vm2164_vm1, %v9922_v23, %v3799_v30  ;;  %v2729_v21 = vld [vmem:[#allocation2 + $0x208] sm:$0xf] }
 0x2f3   :  { %v1892_v35 = vpop.f32.mrb[2].mxu1  ;;  %v2926_v37 = vrot.slane %v9990_v14, 4 }
 0x2f4   :  { %11097 = vst [vmem:[#allocation22_spill] sm:$0xff] %v9978_v52  ;;  %v9982_v31 = vadd.f32 %v11098_v7, %v1892_v35  ;;  %v1894_v1 = vpop.f32.mrb[3].mxu1  ;;  %v3811_v35 = vpop.permute.xlu0 %3810  ;;  %v2932_v7 = vrot.slane %v2729_v21, 4  ;;  %v11102_v52 = vld [vmem:[#allocation47_spill] sm:$0xff] }
 0x2f5   :  { %3319 = vmatmul.mubr.bf16.gmra.mrb[40].mxu0 %v2923_v40 }
 0x2f6   :  { %11099 = vst [vmem:[#allocation18_spill] sm:$0xff] %v9982_v31  ;;  %3326 = vmatprep.mubr.bf16.mxu0 %v2929_v24  ;;  %7193 = vmatmul.mubr.bf16.gmra.mrb[148].mxu1 %v3847_v44  ;;  %v3813_v31 = vpop.permute.xlu1 %3812  ;;  %v2933_v21 = vsel %vm805_vm0, %v2928_v25, %v2932_v7  ;;  %v11105_v7 = vld [vmem:[#allocation50_spill] sm:$0xff] }
 0x2f7   :  { %7196 = vmatprep.mubr.bf16.mxu1 %v3848_v0  ;;  %v2927_v0 = vsel %vm805_vm0, %v2922_v62, %v2926_v37 }
 0x2f8   :  { %v9993_v40 = vpop.f32.mrb[192].mxu0 }
 0x2f9   :  { %v1897_v15 = vpop.f32.mrb[4].mxu1  ;;  %v9995_v1 = vpop.f32.mrb[193].mxu0 }
 0x2fa   :  { %v9998_v20 = vadd.f32 %v11100_v32, %v1897_v15  ;;  %v1899_v24 = vpop.f32.mrb[5].mxu1  ;;  %v10000_v44 = vpop.f32.mrb[194].mxu0  ;;  %v3849_v15 = vsel %vm2164_vm1, %v3801_v26, %v3803_v22  ;;  %v3850_v32 = vsel %vm2164_vm1, %v3805_v29, %v3807_v4  ;;  %v2639_v22 = vld [vmem:[#allocation2 + $0x48] sm:$0xff]  ;;  %v3851_v29 = vsel %vm2164_vm1, %v3809_v39, %v3811_v35 }
 0x2fb   :  { %v1900_v23 = vpop.f32.mrb[6].mxu1  ;;  %v10002_v30 = vpop.f32.mrb[195].mxu0  ;;  %v2930_v24 = vrot.slane %v2728_v6, 4 }
 0x2fc   :  { %11101 = vst [vmem:[#allocation23_spill] sm:$0xff] %v9998_v20  ;;  %v10006_v48 = vadd.f32 %v11102_v52, %v1900_v23  ;;  %v1902_v49 = vpop.f32.mrb[7].mxu1  ;;  %v3815_v20 = vpop.permute.xlu0 %3814 }
 0x2fd   :  { %3327 = vmatmul.mubr.bf16.gmra.mrb[44].mxu0 %v2927_v0  ;;  %v3817_v62 = vpop.permute.xlu1 %3816  ;;  %v2931_v23 = vsel %vm805_vm0, %v2926_v37, %v2930_v24  ;;  %v11104_v0 = vld [vmem:[#allocation54_spill] sm:$0xff]  ;;  %v3852_v6 = vsel %vm2164_vm1, %v3813_v31, %v3815_v20 }
 0x2fe   :  { %3334 = vmatprep.mubr.bf16.mxu0 %v2933_v21  ;;  %7197 = vmatmul.mubr.bf16.gmra.mrb[152].mxu1 %v3849_v15  ;;  %v8018_v31 = vld [vmem:[#allocation2 + $0x58] sm:$0xff] }
 0x2ff   :  { %7200 = vmatprep.mubr.bf16.mxu1 %v3850_v32  ;;  %v11106_v32 = vld [vmem:[#allocation52_spill] sm:$0xff] }
 0x300   :  { %v3819_v4 = vpop.permute.xlu0 %3818 }
 0x301   :  { %v1905_v19 = vpop.f32.mrb[8].mxu1  ;;  %v3853_v39 = vsel %vm2164_vm1, %v3817_v62, %v3819_v4 }
 0x302   :  { %v10012_v58 = vadd.f32 %v11103_v55, %v1905_v19  ;;  %v1907_v52 = vpop.f32.mrb[9].mxu1  ;;  %v3821_v55 = vpop.permute.xlu1 %3820 }
 0x303   :  { %v1908_v49 = vpop.f32.mrb[10].mxu1 }
 0x304   :  { %v10016_v25 = vadd.f32 %v11104_v0, %v1908_v49  ;;  %v1910_v26 = vpop.f32.mrb[11].mxu1  ;;  %v2638_v49 = vld [vmem:[#allocation2 + $0x40] sm:$0xff] }
 0x305   :  { %3335 = vmatmul.mubr.bf16.gmra.mrb[48].mxu0 %v2931_v23  ;;  %v3823_v23 = vpop.permute.xlu0 %3822 }
 0x306   :  { %3471 = vmatprep.mubr.bf16.mxu0 %v2639_v22  ;;  %7201 = vmatmul.mubr.bf16.gmra.mrb[156].mxu1 %v3851_v29  ;;  %v7787_v35 = vpop.permute.xlu1 %7786  ;;  %v3854_v20 = vsel %vm2164_vm1, %v3821_v55, %v3823_v23  ;;  %v4457_v29 = vld [vmem:[#allocation2 + $0x80] sm:$0xf0]  ;;  %v8020_v55 = vld [vmem:[#allocation2 + $0x68] sm:$0xff] }
 0x307   :  { %7204 = vmatprep.mubr.bf16.mxu1 %v3852_v6  ;;  %v7789_v0 = vunpack.i.h.bf16 %v7787_v35  ;;  %v7788_v26 = vunpack.i.l.bf16 %v7787_v35 }
 0x309   :  { %v1913_v19 = vpop.f32.mrb[12].mxu1 }
 0x30a   :  { %v10021_v21 = vadd.f32 %v11105_v7, %v1913_v19  ;;  %v1915_v37 = vpop.f32.mrb[13].mxu1 }
 0x30b   :  { %v1916_v15 = vpop.f32.mrb[14].mxu1  ;;  %v3855_v37 = vsel %vm2164_vm1, %v7788_v26, %v7789_v0  ;;  %v7938_v0 = vld [vmem:[%s10944_s3 + $0x288] sm:$0xff]   ;;  %v8021_v26 = vld [vmem:[#allocation2 + $0x60] sm:$0xff] }
 0x30c   :  { %v10024_v24 = vadd.f32 %v11106_v32, %v1916_v15  ;;  %v1918_v52 = vpop.f32.mrb[15].mxu1  ;;  %v4504_v15 = vrot.slane %v4457_v29, 4  ;;  %v8019_v32 = vld [vmem:[#allocation2 + $0x50] sm:$0xff]  ;;  %v11113_v29 = vld [vmem:[#allocation6_spill] sm:$0xff] }
 0x30d   :  { %3472 = vmatmul.mubr.bf16.vlgmr.msra.gmra.mrb[196].mxu0 %v2638_v49  ;;  %v11109_v52 = vld [vmem:[#allocation5_spill] sm:$0xff] }
 0x30e   :  { %3479 = vmatprep.mubr.bf16.mxu0 %v8018_v31  ;;  %7205 = vmatmul.mubr.bf16.gmra.mrb[160].mxu1 %v3853_v39  ;;  %v4506_v49 = vsel %vm805_vm0, %v4504_v15, %v11109_v52  ;;  %v11111_v31 = vld [vmem:[#allocation10_spill] sm:$0xff]  ;;  %v8023_v52 = vld [vmem:[#allocation2 + $0x70] sm:$0xff] }
 0x30f   :  { %7208 = vmatprep.mubr.bf16.mxu1 %v3854_v20 }
 0x311   :  { %v1921_v22 = vpop.f32.mrb[16].mxu1 }
 0x312   :  { %v10029_v6 = vadd.f32 %v9682_v60, %v1921_v22  ;;  %v1923_v19 = vpop.f32.mrb[17].mxu1  ;;  %v8022_v22 = vld [vmem:[#allocation2 + $0x78] sm:$0xff] }
 0x313   :  { %v1924_v7 = vpop.f32.mrb[18].mxu1  ;;  %v7939_v19 = vld [vmem:[%s10944_s3 + $0x290] sm:$0xff]  }
 0x314   :  { %11107 = vst [vmem:[#allocation20_spill] sm:$0xff] %v10029_v6  ;;  %v10033_v62 = vadd.f32 %v9696_v50, %v1924_v7  ;;  %v1926_v4 = vpop.f32.mrb[19].mxu1  ;;  %v8074_v6 = vld [vmem:[#allocation2 + $0x1b8] sm:$0xff] }
 0x315   :  { %3480 = vmatmul.mubr.bf16.gmra.mrb[200].mxu0 %v8019_v32 }
 0x316   :  { %11108 = vst [vmem:[#allocation25_spill] sm:$0xff] %v10033_v62  ;;  %3487 = vmatprep.mubr.bf16.mxu0 %v8020_v55  ;;  %7209 = vmatmul.mubr.bf16.gmra.mrb[164].mxu1 %v3855_v37  ;;  %v8073_v62 = vld [vmem:[#allocation2 + $0x1a0] sm:$0xff] }
 0x317   :  { %7228 = vmatprep.mubr.bf16.mxu1 %v4506_v49  ;;  %v8024_v49 = vld [vmem:[#allocation2 + $0x88] sm:$0xff] }
 0x319   :  { %v1929_v60 = vpop.f32.mrb[20].mxu1 }
 0x31a   :  { %v10038_v23 = vadd.f32 %v9680_v63, %v1929_v60  ;;  %v1931_v39 = vpop.f32.mrb[21].mxu1  ;;  %v11114_v63 = vld [vmem:[#allocation7_spill] sm:$0xff]  ;;  %v11117_v60 = vld [vmem:[#allocation8_spill] sm:$0xff] }
 0x31b   :  { %v1932_v35 = vpop.f32.mrb[22].mxu1 }
 0x31c   :  { %11110 = vst [vmem:[#allocation19_spill] sm:$0xff] %v10038_v23  ;;  %v10041_v50 = vadd.f32 %v11111_v31, %v1932_v35  ;;  %v1934_v20 = vpop.f32.mrb[23].mxu1  ;;  %v8072_v23 = vld [vmem:[#allocation2 + $0x1a8] sm:$0xff] }
 0x31d   :  { %3488 = vmatmul.mubr.bf16.gmra.mrb[204].mxu0 %v8021_v26 }
 0x31e   :  { %11112 = vst [vmem:[#allocation24_spill] sm:$0xff] %v10041_v50  ;;  %3495 = vmatprep.mubr.bf16.mxu0 %v8022_v22  ;;  %7229 = vmatmul.mubr.bf16.vlgmr.msra.gmra.mrb[168].mxu1 %v11113_v29  ;;  %v7942_v22 = vld [vmem:[%s10944_s3 + $0x2a8] sm:$0xff]   ;;  %v8025_v29 = vld [vmem:[#allocation2 + $0x80] sm:$0xff]  ;;  %v8071_v50 = vld [vmem:[#allocation2 + $0x190] sm:$0xff] }
 0x31f   :  { %7285 = vmatpush3.bf16.msra.mxu1 %v9831_v11  ;;  %7232 = vmatprep.mubr.bf16.mxu1 %v11114_v63  ;;  %v7940_v11 = vld [vmem:[%s10944_s3 + $0x298] sm:$0xff]  }
 0x320   :  { %7286 = vmatprep.subr.bf16.mxu1 %v7938_v0  ;;  %v8026_v63 = vld [vmem:[#allocation2 + $0x98] sm:$0xff] }
 0x321   :  { %v1937_v7 = vpop.f32.mrb[24].mxu1 }
 0x322   :  { %v10053_v37 = vadd.f32 %v9720_v41, %v1937_v7  ;;  %v1939_v4 = vpop.f32.mrb[25].mxu1  ;;  %v11118_v41 = vld [vmem:[#allocation41_spill] sm:$0xff] }
 0x323   :  { %v1940_v15 = vpop.f32.mrb[26].mxu1  ;;  %7287 = vmatpush3.bf16.msra.mxu1 %v7938_v0 }
 0x324   :  { %11115 = vst [vmem:[#allocation39_spill] sm:$0xff] %v10053_v37  ;;  %v10056_v32 = vadd.f32 %v9733_v36, %v1940_v15  ;;  %v1942_v55 = vpop.f32.mrb[27].mxu1  ;;  %7288 = vmatprep.subr.bf16.mxu1 %v7939_v19  ;;  %v7941_v36 = vld [vmem:[%s10944_s3 + $0x2a0] sm:$0xff]   ;;  %v8070_v37 = vld [vmem:[#allocation2 + $0x198] sm:$0xff] }
 0x325   :  { %3496 = vmatmul.mubr.bf16.gmra.mrb[208].mxu0 %v8023_v52 }
 0x326   :  { %11116 = vst [vmem:[#allocation42_spill] sm:$0xff] %v10056_v32  ;;  %3503 = vmatprep.mubr.bf16.mxu0 %v8024_v49  ;;  %7233 = vmatmul.mubr.bf16.gmra.mrb[172].mxu1 %v11117_v60  ;;  %v7944_v49 = vld [vmem:[%s10944_s3 + $0x2b8] sm:$0xff]   ;;  %v10089_v60 = vld [vmem:[#allocation2 + $0x90] sm:$0xff]  ;;  %v8069_v32 = vld [vmem:[#allocation2 + $0x180] sm:$0xff] }
 0x327   :  { %7236 = vmatprep.mubr.bf16.mxu1 %v11118_v41  ;;  %7289 = vmatpush3.bf16.msra.mxu1 %v7939_v19  ;;  %v11121_v19 = vld [vmem:[#allocation43_spill] sm:$0xff] }
 0x328   :  { %7290 = vmatprep.subr.bf16.mxu1 %v7940_v11  ;;  %v8028_v41 = vld [vmem:[#allocation2 + $0xa8] sm:$0xff] }
 0x329   :  { %v1945_v39 = vpop.f32.mrb[28].mxu1 }
 0x32a   :  { %v10067_v35 = vadd.f32 %v9709_v12, %v1945_v39  ;;  %v1947_v31 = vpop.f32.mrb[29].mxu1  ;;  %v11122_v12 = vld [vmem:[#allocation45_spill] sm:$0xff] }
 0x32b   :  { %v1948_v20 = vpop.f32.mrb[30].mxu1  ;;  %7291 = vmatpush3.bf16.msra.mxu1 %v7940_v11 }
 0x32c   :  { %11119 = vst [vmem:[#allocation40_spill] sm:$0xff] %v10067_v35  ;;  %v10070_v0 = vadd.f32 %v9730_v45, %v1948_v20  ;;  %v1950_v26 = vpop.f32.mrb[31].mxu1  ;;  %7292 = vmatprep.subr.bf16.mxu1 %v7941_v36  ;;  %v7943_v45 = vld [vmem:[%s10944_s3 + $0x2b0] sm:$0xff]  }
 0x32d   :  { %3504 = vmatmul.mubr.bf16.gmra.mrb[212].mxu0 %v8025_v29 }
 0x32e   :  { %11120 = vst [vmem:[#allocation44_spill] sm:$0xff] %v10070_v0  ;;  %3511 = vmatprep.mubr.bf16.mxu0 %v8026_v63  ;;  %7237 = vmatmul.mubr.bf16.gmra.mrb[176].mxu1 %v11121_v19  ;;  %v10106_v63 = vld [vmem:[#allocation2 + $0xa0] sm:$0xff]  ;;  %v8030_v19 = vld [vmem:[#allocation2 + $0xb8] sm:$0xff]  ;;  %v8067_v0 = vld [vmem:[#allocation2 + $0x170] sm:$0xff] }
 0x32f   :  { %7240 = vmatprep.mubr.bf16.mxu1 %v11122_v12  ;;  %7293 = vmatpush3.bf16.msra.mxu1 %v7941_v36  ;;  %v11126_v36 = vld [vmem:[#allocation49_spill] sm:$0xff] }
 0x330   :  { %7294 = vmatprep.subr.bf16.mxu1 %v7942_v22  ;;  %v11129_v12 = vld [vmem:[#allocation53_spill] sm:$0xff] }
 0x331   :  { %v1953_v7 = vpop.f32.mrb[32].mxu1 }
 0x332   :  { %v10081_v4 = vadd.f32 %v9799_v18, %v1953_v7  ;;  %v1955_v15 = vpop.f32.mrb[33].mxu1  ;;  %v11125_v18 = vld [vmem:[#allocation34_spill] sm:$0xff] }
 0x333   :  { %v1956_v55 = vpop.f32.mrb[34].mxu1  ;;  %7295 = vmatpush3.bf16.msra.mxu1 %v7942_v22 }
 0x334   :  { %11123 = vst [vmem:[#allocation35_spill] sm:$0xff] %v10081_v4  ;;  %v10084_v11 = vadd.f32 %v9804_v28, %v1956_v55  ;;  %v1958_v52 = vpop.f32.mrb[35].mxu1  ;;  %7296 = vmatprep.subr.bf16.mxu1 %v7943_v45  ;;  %v10097_v28 = vld [vmem:[%s10944_s3 + $0x300] sm:$0xff]   ;;  %v8066_v4 = vld [vmem:[#allocation2 + $0x178] sm:$0xff] }
 0x335   :  { %3512 = vmatmul.mubr.bf16.gmra.mrb[216].mxu0 %v10089_v60 }
 0x336   :  { %11124 = vst [vmem:[#allocation48_spill] sm:$0xff] %v10084_v11  ;;  %3519 = vmatprep.mubr.bf16.mxu0 %v8028_v41  ;;  %7241 = vmatmul.mubr.bf16.gmra.mrb[180].mxu1 %v11125_v18  ;;  %v10120_v18 = vld [vmem:[#allocation2 + $0xb0] sm:$0xff]  ;;  %v8065_v11 = vld [vmem:[#allocation2 + $0x160] sm:$0xff] }
 0x337   :  { %7244 = vmatprep.mubr.bf16.mxu1 %v11126_v36  ;;  %7297 = vmatpush3.bf16.msra.mxu1 %v7943_v45  ;;  %v11130_v45 = vld [vmem:[#allocation56_spill] sm:$0xff]  ;;  %v11133_v36 = vld [vmem:[#allocation55_spill] sm:$0xff] }
 0x338   :  { %7298 = vmatprep.subr.bf16.mxu1 %v7944_v49 }
 0x339   :  { %v1961_v39 = vpop.f32.mrb[36].mxu1 }
 0x33a   :  { %v10100_v31 = vadd.f32 %v9794_v53, %v1961_v39  ;;  %v1963_v20 = vpop.f32.mrb[37].mxu1  ;;  %v10111_v53 = vld [vmem:[#allocation2 + $0x140] sm:$0xff] }
 0x33b   :  { %v1964_v26 = vpop.f32.mrb[38].mxu1  ;;  %7299 = vmatpush3.bf16.msra.mxu1 %v7944_v49  ;;  %v4527_v7 = vrot.slane %v10111_v53, 4  ;;  %v8033_v20 = vld [vmem:[#allocation2 + $0xc8] sm:$0xff] }
 0x33c   :  { %11127 = vst [vmem:[#allocation46_spill] sm:$0xff] %v10100_v31  ;;  %v10103_v22 = vadd.f32 %v9802_v54, %v1964_v26  ;;  %v1966_v29 = vpop.f32.mrb[39].mxu1  ;;  %7356 = vmatprep.subr.bf16.mxu1 %v10097_v28 }
 0x33d   :  { %3520 = vmatmul.mubr.bf16.gmra.mrb[220].mxu0 %v10106_v63  ;;  %v4528_v39 = vsel %vm805_vm0, %v11133_v36, %v4527_v7  ;;  %v10127_v29 = vld [vmem:[#allocation2 + $0x170] sm:$0xff] }
 0x33e   :  { %11128 = vst [vmem:[#allocation47_spill] sm:$0xff] %v10103_v22  ;;  %3527 = vmatprep.mubr.bf16.mxu0 %v8030_v19  ;;  %7245 = vmatmul.mubr.bf16.gmra.mrb[184].mxu1 %v11129_v12 }
 0x33f   :  { %7248 = vmatprep.mubr.bf16.mxu1 %v11130_v45 }
 0x341   :  { %v1969_v15 = vpop.f32.mrb[40].mxu1 }
 0x342   :  { %v10115_v54 = vadd.f32 %v9836_v43, %v1969_v15  ;;  %v1971_v55 = vpop.f32.mrb[41].mxu1  ;;  %v4530_v43 = vsel %vm805_vm0, %v4527_v7, %v11051_v42  ;;  %v8036_v42 = vld [vmem:[#allocation2 + $0xd8] sm:$0xff] }
 0x343   :  { %v1972_v52 = vpop.f32.mrb[42].mxu1 }
 0x344   :  { %11131 = vst [vmem:[#allocation51_spill] sm:$0xff] %v10115_v54  ;;  %v10118_v49 = vadd.f32 %v9844_v38, %v1972_v52  ;;  %v1974_v41 = vpop.f32.mrb[43].mxu1  ;;  %v4533_v38 = vrot.slane %v10127_v29, 4  ;;  %v10136_v52 = vld [vmem:[#allocation2 + $0xc0] sm:$0xff] }
 0x345   :  { %3528 = vmatmul.mubr.bf16.gmra.mrb[224].mxu0 %v10120_v18 }
 0x346   :  { %11132 = vst [vmem:[#allocation54_spill] sm:$0xff] %v10118_v49  ;;  %3535 = vmatprep.mubr.bf16.mxu0 %v8033_v20  ;;  %7249 = vmatmul.mubr.bf16.gmra.mrb[188].mxu1 %v4528_v39  ;;  %v4534_v7 = vsel %vm805_vm0, %v11063_v46, %v4533_v38  ;;  %v10154_v46 = vld [vmem:[#allocation2 + $0xd0] sm:$0xff] }
 0x347   :  { %7252 = vmatprep.mubr.bf16.mxu1 %v4530_v43 }
 0x349   :  { %v1977_v26 = vpop.f32.mrb[44].mxu1 }
 0x34a   :  { %v10131_v19 = vadd.f32 %v9833_v61, %v1977_v26  ;;  %v1979_v12 = vpop.f32.mrb[45].mxu1  ;;  %v10142_v61 = vld [vmem:[#allocation2 + $0x180] sm:$0xff] }
 0x34b   :  { %v1980_v45 = vpop.f32.mrb[46].mxu1  ;;  %v4535_v41 = vrot.slane %v10142_v61, 4 }
 0x34c   :  { %11134 = vst [vmem:[#allocation50_spill] sm:$0xff] %v10131_v19  ;;  %v10134_v15 = vadd.f32 %v9838_v47, %v1980_v45  ;;  %v1982_v55 = vpop.f32.mrb[47].mxu1  ;;  %v10145_v47 = vld [vmem:[#allocation2 + $0x190] sm:$0xff]  ;;  %v10193_v19 = vld [vmem:[#allocation2 + $0x218] sm:$0xff] }
 0x34d   :  { %3536 = vmatmul.mubr.bf16.gmra.mrb[228].mxu0 %v10136_v52  ;;  %v4537_v39 = vrot.slane %v10145_v47, 4  ;;  %v4536_v45 = vsel %vm805_vm0, %v4533_v38, %v4535_v41  ;;  %v8040_v55 = vld [vmem:[#allocation2 + $0xe8] sm:$0xff] }
 0x34e   :  { %11135 = vst [vmem:[#allocation52_spill] sm:$0xff] %v10134_v15  ;;  %3543 = vmatprep.mubr.bf16.mxu0 %v8036_v42  ;;  %7253 = vmatmul.mubr.bf16.gmra.mrb[192].mxu1 %v11058_v10 }
 0x34f   :  { %7256 = vmatprep.mubr.bf16.mxu1 %v4534_v7  ;;  %v4538_v42 = vsel %vm805_vm0, %v4535_v41, %v4537_v39  ;;  %v10171_v41 = vld [vmem:[#allocation2 + $0xe0] sm:$0xff] }
 0x351   :  { %v1985_v36 = vpop.f32.mrb[48].mxu1 }
 0x352   :  { %v10149_v20 = vadd.f32 %v9896_v51, %v1985_v36  ;;  %v1987_v43 = vpop.f32.mrb[49].mxu1  ;;  %v10159_v51 = vld [vmem:[#allocation2 + $0x1a0] sm:$0xff] }
 0x353   :  { %v1988_v26 = vpop.f32.mrb[50].mxu1  ;;  %v4539_v7 = vrot.slane %v10159_v51, 4 }
 0x354   :  { %11136 = vst [vmem:[#allocation5_spill] sm:$0xff] %v10149_v20  ;;  %v10152_v10 = vadd.f32 %v9909_v33, %v1988_v26  ;;  %v1990_v12 = vpop.f32.mrb[51].mxu1  ;;  %v10162_v33 = vld [vmem:[#allocation2 + $0x1b0] sm:$0xff] }
 0x355   :  { %3544 = vmatmul.mubr.bf16.gmra.mrb[232].mxu0 %v10154_v46  ;;  %v4541_v43 = vrot.slane %v10162_v33, 4 }
 0x356   :  { %11137 = vst [vmem:[#allocation10_spill] sm:$0xff] %v10152_v10  ;;  %3551 = vmatprep.mubr.bf16.mxu0 %v8040_v55  ;;  %7257 = vmatmul.mubr.bf16.gmra.mrb[196].mxu1 %v4536_v45  ;;  %v8044_v10 = vld [vmem:[#allocation2 + $0xf8] sm:$0xff] }
 0x357   :  { %7260 = vmatprep.mubr.bf16.mxu1 %v4538_v42  ;;  %v4540_v42 = vsel %vm805_vm0, %v4537_v39, %v4539_v7  ;;  %v4542_v20 = vsel %vm805_vm0, %v4539_v7, %v4541_v43  ;;  %v10188_v7 = vld [vmem:[#allocation2 + $0xf0] sm:$0xff] }
 0x359   :  { %v1993_v36 = vpop.f32.mrb[52].mxu1 }
 0x35a   :  { %v10166_v26 = vadd.f32 %v9890_v16, %v1993_v36  ;;  %v1995_v12 = vpop.f32.mrb[53].mxu1  ;;  %v10176_v16 = vld [vmem:[#allocation2 + $0x1c0] sm:$0xff] }
 0x35b   :  { %v1996_v38 = vpop.f32.mrb[54].mxu1  ;;  %v4543_v36 = vrot.slane %v10176_v16, 4 }
 0x35c   :  { %11138 = vst [vmem:[#allocation6_spill] sm:$0xff] %v10166_v26  ;;  %v10169_v55 = vadd.f32 %v9898_v27, %v1996_v38  ;;  %v1998_v45 = vpop.f32.mrb[55].mxu1  ;;  %v10179_v27 = vld [vmem:[#allocation2 + $0x1d0] sm:$0xff]  ;;  %v8048_v26 = vld [vmem:[#allocation2 + $0x108] sm:$0xff] }
 0x35d   :  { %3552 = vmatmul.mubr.bf16.gmra.mrb[236].mxu0 %v10171_v41  ;;  %v4545_v38 = vrot.slane %v10179_v27, 4 }
 0x35e   :  { %11139 = vst [vmem:[#allocation7_spill] sm:$0xff] %v10169_v55  ;;  %3559 = vmatprep.mubr.bf16.mxu0 %v8044_v10  ;;  %7261 = vmatmul.mubr.bf16.gmra.mrb[200].mxu1 %v4540_v42 }
 0x35f   :  { %7264 = vmatprep.mubr.bf16.mxu1 %v4542_v20  ;;  %v4544_v20 = vsel %vm805_vm0, %v4541_v43, %v4543_v36  ;;  %v4546_v15 = vsel %vm805_vm0, %v4543_v36, %v4545_v38 }
 0x361   :  { %v2001_v12 = vpop.f32.mrb[56].mxu1 }
 0x362   :  { %v10183_v45 = vadd.f32 %v9933_v9, %v2001_v12  ;;  %v2003_v55 = vpop.f32.mrb[57].mxu1  ;;  %v7790_v9 = vpack.i.bf16 %v10193_v19, %v10193_v19  ;;  %v10202_v12 = vld [vmem:[#allocation2 + $0x1f0] sm:$0xff] }
 0x363   :  { %v2004_v39 = vpop.f32.mrb[58].mxu1 }
 0x364   :  { %11140 = vst [vmem:[#allocation8_spill] sm:$0xff] %v10183_v45  ;;  %v10186_v10 = vadd.f32 %v9947_v56, %v2004_v39  ;;  %v2006_v42 = vpop.f32.mrb[59].mxu1  ;;  %7791 = vrot.lane.b32.xlu0 %v7790_v9, %s8077_s17  ;;  %7796 = vrot.lane.b32.xlu1 %v7790_v9, %s8077_s17  ;;  %v10199_v56 = vld [vmem:[#allocation2 + $0x1e0] sm:$0xff]  ;;  %v8053_v45 = vld [vmem:[#allocation2 + $0x118] sm:$0xff] }
 0x365   :  { %3560 = vmatmul.mubr.bf16.gmra.mrb[240].mxu0 %v10188_v7  ;;  %v4547_v55 = vrot.slane %v10199_v56, 4 }
 0x366   :  { %11141 = vst [vmem:[#allocation41_spill] sm:$0xff] %v10186_v10  ;;  %3567 = vmatprep.mubr.bf16.mxu0 %v8048_v26  ;;  %7265 = vmatmul.mubr.bf16.gmra.mrb[204].mxu1 %v4544_v20  ;;  %v4549_v26 = vrot.slane %v10202_v12, 4  ;;  %v10211_v10 = vld [vmem:[#allocation2 + $0x100] sm:$0xff] }
 0x367   :  { %7268 = vmatprep.mubr.bf16.mxu1 %v4546_v15  ;;  %v4548_v9 = vsel %vm805_vm0, %v4545_v38, %v4547_v55 }
 0x368   :  { %v4550_v49 = vsel %vm805_vm0, %v4547_v55, %v4549_v26  ;;  %v10227_v55 = vld [vmem:[#allocation2 + $0x110] sm:$0xff] }
 0x369   :  { %v2009_v43 = vpop.f32.mrb[60].mxu1 }
 0x36a   :  { %v10206_v36 = vadd.f32 %v9925_v8, %v2009_v43  ;;  %v2011_v39 = vpop.f32.mrb[61].mxu1  ;;  %v4553_v8 = vrot.slane %v10193_v19, 4 }
 0x36b   :  { %v2012_v42 = vpop.f32.mrb[62].mxu1  ;;  %v10217_v39 = vld [vmem:[#allocation2 + $0x200] sm:$0xff] }
 0x36c   :  { %11142 = vst [vmem:[#allocation43_spill] sm:$0xff] %v10206_v36  ;;  %v10209_v15 = vadd.f32 %v9939_v17, %v2012_v42  ;;  %v2014_v20 = vpop.f32.mrb[63].mxu1  ;;  %v4551_v17 = vrot.slane %v10217_v39, 4  ;;  %v8056_v36 = vld [vmem:[#allocation2 + $0x128] sm:$0xff] }
 0x36d   :  { %3568 = vmatmul.mubr.bf16.gmra.mrb[244].mxu0 %v10211_v10 }
 0x36e   :  { %11143 = vst [vmem:[#allocation45_spill] sm:$0xff] %v10209_v15  ;;  %3575 = vmatprep.mubr.bf16.mxu0 %v8053_v45  ;;  %7269 = vmatmul.mubr.bf16.gmra.mrb[208].mxu1 %v4548_v9  ;;  %v4554_v9 = vsel %vm805_vm0, %v4551_v17, %v4553_v8 }
 0x36f   :  { %7272 = vmatprep.mubr.bf16.mxu1 %v4550_v49  ;;  %v4552_v49 = vsel %vm805_vm0, %v4549_v26, %v4551_v17  ;;  %v8058_v26 = vld [vmem:[#allocation2 + $0x138] sm:$0xff] }
 0x371   :  { %v2017_v43 = vpop.f32.mrb[64].mxu1 }
 0x372   :  { %v10221_v42 = vadd.f32 %v9995_v1, %v2017_v43  ;;  %v2019_v20 = vpop.f32.mrb[65].mxu1 }
 0x373   :  { %v2020_v15 = vpop.f32.mrb[66].mxu1 }
 0x374   :  { %11144 = vst [vmem:[#allocation34_spill] sm:$0xff] %v10221_v42  ;;  %v10224_v38 = vadd.f32 %v10002_v30, %v2020_v15  ;;  %v2022_v45 = vpop.f32.mrb[67].mxu1  ;;  %v10237_v42 = vld [vmem:[#allocation2 + $0x120] sm:$0xff] }
 0x375   :  { %3576 = vmatmul.mubr.bf16.gmra.mrb[248].mxu0 %v10227_v55 }
 0x376   :  { %11145 = vst [vmem:[#allocation49_spill] sm:$0xff] %v10224_v38  ;;  %3583 = vmatprep.mubr.bf16.mxu0 %v8056_v36  ;;  %7273 = vmatmul.mubr.bf16.gmra.mrb[212].mxu1 %v4552_v49  ;;  %v4458_v38 = vld [vmem:[#allocation2 + $0x240] sm:$0xf] }
 0x377   :  { %7276 = vmatprep.mubr.bf16.mxu1 %v4554_v9  ;;  %v4559_v36 = vrot.slane %v4458_v38, 4 }
 0x379   :  { %v2025_v1 = vpop.f32.mrb[68].mxu1 }
 0x37a   :  { %v10232_v43 = vadd.f32 %v9993_v40, %v2025_v1  ;;  %v2027_v20 = vpop.f32.mrb[69].mxu1  ;;  %v10249_v1 = vld [vmem:[#allocation2 + $0x130] sm:$0xff] }
 0x37b   :  { %v2028_v30 = vpop.f32.mrb[70].mxu1  ;;  %v8060_v20 = vld [vmem:[#allocation2 + $0x148] sm:$0xff] }
 0x37c   :  { %11146 = vst [vmem:[#allocation53_spill] sm:$0xff] %v10232_v43  ;;  %v10235_v15 = vadd.f32 %v10000_v44, %v2028_v30  ;;  %v2030_v45 = vpop.f32.mrb[71].mxu1  ;;  %v4560_v44 = vsel %vm805_vm0, %v4553_v8, %v4559_v36  ;;  %v4413_v30 = vld [vmem:[#allocation2 + $0x80] sm:$0xff]  ;;  %v8062_v43 = vld [vmem:[#allocation2 + $0x158] sm:$0xff] }
 0x37d   :  { %3584 = vmatmul.mubr.bf16.gmra.mrb[252].mxu0 %v10237_v42  ;;  %v8061_v36 = vld [vmem:[#allocation2 + $0x140] sm:$0xff] }
 0x37e   :  { %11147 = vst [vmem:[#allocation56_spill] sm:$0xff] %v10235_v15  ;;  %3591 = vmatprep.mubr.bf16.mxu0 %v8058_v26  ;;  %7277 = vmatmul.mubr.bf16.gmra.mrb[216].mxu1 %v4553_v8 }
 0x37f   :  { %7280 = vmatprep.mubr.bf16.mxu1 %v4553_v8  ;;  %v7946_v8 = vld [vmem:[%s10944_s3 + $0x308] sm:$0xff]  }
 0x381   :  { %v10240_v17 = vpop.f32.mrb[112].mxu1 }
 0x382   :  { %v10242_v40 = vpop.f32.mrb[113].mxu1 }
 0x383   :  { %v10244_v9 = vpop.f32.mrb[114].mxu1 }
 0x384   :  { %v10247_v49 = vpop.f32.mrb[115].mxu1 }
 0x385   :  { %3592 = vmatmul.mubr.bf16.gmra.mrb[0].mxu0 %v10249_v1 }
 0x386   :  { %3599 = vmatprep.mubr.bf16.mxu0 %v8060_v20  ;;  %7281 = vmatmul.mubr.bf16.gmra.mrb[220].mxu1 %v4560_v44  ;;  %v7947_v44 = vld [vmem:[%s10944_s3 + $0x310] sm:$0xff]  }
 0x387   :  { %7300 = vmatprep.mubr.bf16.mxu1 %v4413_v30 }
 0x389   :  { %v10252_v38 = vpop.f32.mrb[116].mxu1 }
 0x38a   :  { %v10254_v45 = vpop.f32.mrb[117].mxu1 }
 0x38b   :  { %v10256_v26 = vpop.f32.mrb[118].mxu1 }
 0x38c   :  { %v10258_v15 = vpop.f32.mrb[119].mxu1 }
 0x38d   :  { %3600 = vmatmul.mubr.bf16.gmra.mrb[4].mxu0 %v8061_v36 }
 0x38e   :  { %3607 = vmatprep.mubr.bf16.mxu0 %v8062_v43  ;;  %7301 = vmatmul.mubr.bf16.vlgmr.msra.gmra.mrb[168].mxu1 %v10089_v60  ;;  %v7948_v60 = vld [vmem:[%s10944_s3 + $0x318] sm:$0xff]  }
 0x38f   :  { %7357 = vmatpush3.bf16.msra.mxu1 %v10097_v28  ;;  %7304 = vmatprep.mubr.bf16.mxu1 %v10106_v63  ;;  %v8063_v28 = vld [vmem:[#allocation2 + $0x150] sm:$0xff]  ;;  %v8064_v63 = vld [vmem:[#allocation2 + $0x168] sm:$0xff] }
 0x390   :  { %7358 = vmatprep.subr.bf16.mxu1 %v7946_v8 }
 0x391   :  { %v10269_v20 = vpop.f32.mrb[120].mxu1 }
 0x392   :  { %v10271_v30 = vpop.f32.mrb[121].mxu1 }
 0x393   :  { %v10273_v54 = vpop.f32.mrb[122].mxu1  ;;  %7359 = vmatpush3.bf16.msra.mxu1 %v7946_v8 }
 0x394   :  { %v10275_v36 = vpop.f32.mrb[123].mxu1  ;;  %7360 = vmatprep.subr.bf16.mxu1 %v7947_v44 }
 0x395   :  { %3608 = vmatmul.mubr.bf16.gmra.mrb[8].mxu0 %v8063_v28 }
 0x396   :  { %3615 = vmatprep.mubr.bf16.mxu0 %v8064_v63  ;;  %7305 = vmatmul.mubr.bf16.gmra.mrb[172].mxu1 %v10120_v18 }
 0x397   :  { %7308 = vmatprep.mubr.bf16.mxu1 %v10136_v52  ;;  %7361 = vmatpush3.bf16.msra.mxu1 %v7947_v44 }
 0x398   :  { %7362 = vmatprep.subr.bf16.mxu1 %v7948_v60 }
 0x399   :  { %v10282_v43 = vpop.f32.mrb[124].mxu1 }
 0x39a   :  { %v10284_v8 = vpop.f32.mrb[125].mxu1 }
 0x39b   :  { %v10286_v22 = vpop.f32.mrb[126].mxu1  ;;  %7363 = vmatpush3.bf16.msra.mxu1 %v7948_v60  ;;  %v8068_v60 = vld [vmem:[#allocation2 + $0x188] sm:$0xff] }
 0x39c   :  { %v10288_v31 = vpop.f32.mrb[127].mxu1 }
 0x39d   :  { %3616 = vmatmul.mubr.bf16.gmra.mrb[12].mxu0 %v8065_v11 }
 0x39e   :  { %3623 = vmatprep.mubr.bf16.mxu0 %v8066_v4  ;;  %7309 = vmatmul.mubr.bf16.gmra.mrb[176].mxu1 %v10154_v46 }
 0x39f   :  { %7312 = vmatprep.mubr.bf16.mxu1 %v10171_v41 }
 0x3a1   :  { %v10292_v18 = vpop.f32.mrb[128].mxu1 }
 0x3a2   :  { %v10294_v52 = vpop.f32.mrb[129].mxu1 }
 0x3a3   :  { %v10296_v44 = vpop.f32.mrb[130].mxu1 }
 0x3a4   :  { %v10298_v63 = vpop.f32.mrb[131].mxu1 }
 0x3a5   :  { %3624 = vmatmul.mubr.bf16.gmra.mrb[16].mxu0 %v8067_v0 }
 0x3a6   :  { %3631 = vmatprep.mubr.bf16.mxu0 %v8068_v60  ;;  %7313 = vmatmul.mubr.bf16.gmra.mrb[180].mxu1 %v10188_v7 }
 0x3a7   :  { %7316 = vmatprep.mubr.bf16.mxu1 %v10211_v10 }
 0x3a9   :  { %v10302_v4 = vpop.f32.mrb[132].mxu1 }
 0x3aa   :  { %v10304_v46 = vpop.f32.mrb[133].mxu1 }
 0x3ab   :  { %v10306_v41 = vpop.f32.mrb[134].mxu1 }
 0x3ac   :  { %v10308_v35 = vpop.f32.mrb[135].mxu1 }
 0x3ad   :  { %3632 = vmatmul.mubr.bf16.gmra.mrb[20].mxu0 %v8069_v32 }
 0x3ae   :  { %3639 = vmatprep.mubr.bf16.mxu0 %v8070_v37  ;;  %7317 = vmatmul.mubr.bf16.gmra.mrb[184].mxu1 %v10227_v55 }
 0x3af   :  { %7320 = vmatprep.mubr.bf16.mxu1 %v10237_v42 }
 0x3b1   :  { %v10312_v0 = vpop.f32.mrb[136].mxu1 }
 0x3b2   :  { %v10314_v7 = vpop.f32.mrb[137].mxu1 }
 0x3b3   :  { %v10316_v10 = vpop.f32.mrb[138].mxu1 }
 0x3b4   :  { %v10318_v60 = vpop.f32.mrb[139].mxu1 }
 0x3b5   :  { %3640 = vmatmul.mubr.bf16.gmra.mrb[24].mxu0 %v8071_v50 }
 0x3b6   :  { %3647 = vmatprep.mubr.bf16.mxu0 %v8072_v23  ;;  %7321 = vmatmul.mubr.bf16.gmra.mrb[188].mxu1 %v10249_v1 }
 0x3b7   :  { %7324 = vmatprep.mubr.bf16.mxu1 %v10111_v53 }
 0x3b9   :  { %v10322_v37 = vpop.f32.mrb[140].mxu1 }
 0x3ba   :  { %11148 = vst [vmem:[#allocation55_spill] sm:$0xff] %v10322_v37  ;;  %v10324_v32 = vpop.f32.mrb[141].mxu1  ;;  %v8075_v37 = vld [vmem:[#allocation2 + $0x1b0] sm:$0xff] }
 0x3bb   :  { %v10326_v42 = vpop.f32.mrb[142].mxu1 }
 0x3bc   :  { %v10328_v55 = vpop.f32.mrb[143].mxu1 }
 0x3bd   :  { %3648 = vmatmul.mubr.bf16.gmra.mrb[28].mxu0 %v8073_v62 }
 0x3be   :  { %3655 = vmatprep.mubr.bf16.mxu0 %v8074_v6  ;;  %7325 = vmatmul.mubr.bf16.gmra.mrb[192].mxu1 %v8063_v28 }
 0x3bf   :  { %7328 = vmatprep.mubr.bf16.mxu1 %v8065_v11 }
 0x3c1   :  { %v10330_v50 = vpop.f32.mrb[144].mxu1 }
 0x3c2   :  { %v10332_v23 = vpop.f32.mrb[145].mxu1 }
 0x3c3   :  { %v10334_v1 = vpop.f32.mrb[146].mxu1 }
 0x3c4   :  { %v10336_v53 = vpop.f32.mrb[147].mxu1 }
 0x3c5   :  { %3656 = vmatmul.mubr.bf16.gmra.mrb[32].mxu0 %v8075_v37 }
 0x3c6   :  { %3663 = vmatprep.mubr.bf16.mxu0 %v9882_v3  ;;  %7329 = vmatmul.mubr.bf16.gmra.mrb[196].mxu1 %v10127_v29 }
 0x3c7   :  { %7332 = vmatprep.mubr.bf16.mxu1 %v10142_v61 }
 0x3c9   :  { %v10341_v62 = vpop.f32.mrb[148].mxu1 }
 0x3ca   :  { %v10343_v6 = vpop.f32.mrb[149].mxu1 }
 0x3cb   :  { %v10345_v11 = vpop.f32.mrb[150].mxu1 }
 0x3cc   :  { %v10347_v28 = vpop.f32.mrb[151].mxu1 }
 0x3cd   :  { %3664 = vmatmul.mubr.bf16.gmra.mrb[36].mxu0 %v9914_v5 }
 0x3ce   :  { %3671 = vmatprep.mubr.bf16.mxu0 %v9919_v2  ;;  %7333 = vmatmul.mubr.bf16.gmra.mrb[200].mxu1 %v10145_v47 }
 0x3cf   :  { %7336 = vmatprep.mubr.bf16.mxu1 %v10159_v51 }
 0x3d1   :  { %v10353_v3 = vpop.f32.mrb[152].mxu1 }
 0x3d2   :  { %v10355_v29 = vpop.f32.mrb[153].mxu1 }
 0x3d3   :  { %v10357_v61 = vpop.f32.mrb[154].mxu1 }
 0x3d4   :  { %11149 = vst [vmem:[#allocation57_spill] sm:$0xff] %v10357_v61  ;;  %v10359_v37 = vpop.f32.mrb[155].mxu1 }
 0x3d5   :  { %3672 = vmatmul.mubr.bf16.gmra.mrb[40].mxu0 %v9949_v57 }
 0x3d6   :  { %3679 = vmatprep.mubr.bf16.mxu0 %v9952_v34  ;;  %7337 = vmatmul.mubr.bf16.gmra.mrb[204].mxu1 %v10162_v33 }
 0x3d7   :  { %7340 = vmatprep.mubr.bf16.mxu1 %v10176_v16 }
 0x3d9   :  { %v10365_v5 = vpop.f32.mrb[156].mxu1 }
 0x3da   :  { %11150 = vst [vmem:[#allocation58_spill] sm:$0xff] %v10365_v5  ;;  %v10367_v2 = vpop.f32.mrb[157].mxu1 }
 0x3db   :  { %11151 = vst [vmem:[#allocation59_spill] sm:$0xff] %v10367_v2  ;;  %v10369_v47 = vpop.f32.mrb[158].mxu1 }
 0x3dc   :  { %11152 = vst [vmem:[#allocation60_spill] sm:$0xff] %v10369_v47  ;;  %v10371_v51 = vpop.f32.mrb[159].mxu1 }
 0x3dd   :  { %11153 = vst [vmem:[#allocation61_spill] sm:$0xff] %v10371_v51  ;;  %3680 = vmatmul.mubr.bf16.gmra.mrb[44].mxu0 %v9971_v13  ;;  %v11154_v13 = vld [vmem:[#allocation9_spill] sm:$0xff] }
 0x3de   :  { %3687 = vmatprep.mubr.bf16.mxu0 %v9974_v59  ;;  %7341 = vmatmul.mubr.bf16.gmra.mrb[208].mxu1 %v10179_v27 }
 0x3df   :  { %7344 = vmatprep.mubr.bf16.mxu1 %v10199_v56  ;;  %v11156_v56 = vld [vmem:[#allocation26_spill] sm:$0xff] }
 0x3e0   :  { %v3473_v57 = vpop.f32.mrb[196].mxu0 }
 0x3e1   :  { %v4189_v34 = vadd.f32 %v10242_v40, %v3473_v57  ;;  %v3475_v33 = vpop.f32.mrb[197].mxu0  ;;  %v10378_v16 = vpop.f32.mrb[160].mxu1 }
 0x3e2   :  { %v3476_v5 = vpop.f32.mrb[198].mxu0  ;;  %v10380_v2 = vpop.f32.mrb[161].mxu1 }
 0x3e3   :  { %v4190_v47 = vadd.f32 %v10247_v49, %v3476_v5  ;;  %v3478_v51 = vpop.f32.mrb[199].mxu0  ;;  %v10383_v61 = vpop.f32.mrb[162].mxu1  ;;  %v10386_v59 = vadd.f32 %v4189_v34, %v11154_v13 }
 0x3e4   :  { %v10388_v27 = vpop.f32.mrb[163].mxu1 }
 0x3e5   :  { %11155 = vst [vmem:[#allocation9_spill] sm:$0xff] %v10386_v59  ;;  %3688 = vmatmul.mubr.bf16.gmra.mrb[48].mxu0 %v9990_v14  ;;  %v10392_v40 = vadd.f32 %v4190_v47, %v11156_v56  ;;  %v11159_v47 = vld [vmem:[#allocation27_spill] sm:$0xff] }
 0x3e6   :  { %7345 = vmatmul.mubr.bf16.gmra.mrb[212].mxu1 %v10202_v12 }
 0x3e7   :  { %11157 = vst [vmem:[#allocation26_spill] sm:$0xff] %v10392_v40  ;;  %7348 = vmatprep.mubr.bf16.mxu1 %v10217_v39  ;;  %v11161_v39 = vld [vmem:[#allocation28_spill] sm:$0xff] }
 0x3e8   :  { %v3481_v57 = vpop.f32.mrb[200].mxu0 }
 0x3e9   :  { %v4191_v49 = vadd.f32 %v10240_v17, %v3481_v57  ;;  %v3483_v5 = vpop.f32.mrb[201].mxu0  ;;  %v10397_v51 = vpop.f32.mrb[164].mxu1 }
 0x3ea   :  { %v3484_v33 = vpop.f32.mrb[202].mxu0  ;;  %v10399_v34 = vpop.f32.mrb[165].mxu1 }
 0x3eb   :  { %v4192_v13 = vadd.f32 %v10244_v9, %v3484_v33  ;;  %v3486_v59 = vpop.f32.mrb[203].mxu0  ;;  %v10402_v14 = vpop.f32.mrb[166].mxu1  ;;  %v10405_v56 = vadd.f32 %v4191_v49, %v11159_v47  ;;  %v11164_v47 = vld [vmem:[#allocation29_spill] sm:$0xff] }
 0x3ec   :  { %11158 = vst [vmem:[#allocation62_spill] sm:$0xff] %v10402_v14  ;;  %v10407_v12 = vpop.f32.mrb[167].mxu1  ;;  %v11163_v14 = vld [vmem:[#allocation12_spill] sm:$0xff] }
 0x3ed   :  { %11160 = vst [vmem:[#allocation27_spill] sm:$0xff] %v10405_v56  ;;  %v10410_v40 = vadd.f32 %v4192_v13, %v11161_v39  ;;  %v5210_v13 = vpop.permute.xlu0 %5209 }
 0x3ee   :  { %7349 = vmatmul.mubr.bf16.gmra.mrb[216].mxu1 %v10193_v19 }
 0x3ef   :  { %11162 = vst [vmem:[#allocation28_spill] sm:$0xff] %v10410_v40  ;;  %7352 = vmatprep.mubr.bf16.mxu1 %v10193_v19 }
 0x3f0   :  { %v3489_v17 = vpop.f32.mrb[204].mxu0 }
 0x3f1   :  { %v4193_v57 = vadd.f32 %v10254_v45, %v3489_v17  ;;  %v3491_v5 = vpop.f32.mrb[205].mxu0 }
 0x3f2   :  { %v3492_v9 = vpop.f32.mrb[206].mxu0 }
 0x3f3   :  { %v4194_v59 = vadd.f32 %v10258_v15, %v3492_v9  ;;  %v3494_v33 = vpop.f32.mrb[207].mxu0  ;;  %v10417_v49 = vadd.f32 %v4193_v57, %v11163_v14  ;;  %v11165_v9 = vld [vmem:[#allocation30_spill] sm:$0xff]  ;;  %v5212_v14 = vpop.permute.xlu1 %5211  ;;  %v11166_v57 = vld [vmem:[#allocation31_spill] sm:$0xff] }
 0x3f5   :  { %v10420_v56 = vadd.f32 %v4194_v59, %v11164_v47  ;;  %v5214_v47 = vpop.permute.xlu0 %5213 }
 0x3f6   :  { %7353 = vmatmul.mubr.bf16.gmra.mrb[220].mxu1 %v10193_v19 }
 0x3f7   :  { %7364 = vmatprep.mubr.msk.bf16.mxu1 %vm2164_vm1, %v5210_v13 }
 0x3f8   :  { %v3497_v39 = vpop.f32.mrb[208].mxu0 }
 0x3f9   :  { %v4195_v40 = vadd.f32 %v10252_v38, %v3497_v39  ;;  %v3499_v45 = vpop.f32.mrb[209].mxu0 }
 0x3fa   :  { %v3500_v17 = vpop.f32.mrb[210].mxu0 }
 0x3fb   :  { %v4196_v5 = vadd.f32 %v10256_v26, %v3500_v17  ;;  %v3502_v15 = vpop.f32.mrb[211].mxu0  ;;  %v10427_v33 = vadd.f32 %v4195_v40, %v11165_v9  ;;  %v11167_v17 = vld [vmem:[#allocation13_spill] sm:$0xff]  ;;  %v11168_v9 = vld [vmem:[#allocation14_spill] sm:$0xff] }
 0x3fc   :  { %v5216_v15 = vpop.permute.xlu1 %5215 }
 0x3fd   :  { %v10430_v59 = vadd.f32 %v4196_v5, %v11166_v57  ;;  %v5218_v57 = vpop.permute.xlu0 %5217 }
 0x3fe   :  { %7365 = vmatmul.mubr.msk.bf16.vlgmr.msra.gmra.mrb[168].mxu1 %vm2164_vm1, %v5212_v14 }
 0x3ff   :  { %7368 = vmatprep.mubr.msk.bf16.mxu1 %vm2164_vm1, %v5214_v47 }
 0x400   :  { %v3505_v19 = vpop.f32.mrb[212].mxu0 }
 0x401   :  { %v4197_v38 = vadd.f32 %v10271_v30, %v3505_v19  ;;  %v3507_v13 = vpop.f32.mrb[213].mxu0 }
 0x402   :  { %v3508_v39 = vpop.f32.mrb[214].mxu0 }
 0x403   :  { %v4198_v26 = vadd.f32 %v10275_v36, %v3508_v39  ;;  %v3510_v45 = vpop.f32.mrb[215].mxu0  ;;  %v10437_v40 = vadd.f32 %v4197_v38, %v11167_v17  ;;  %v11169_v39 = vld [vmem:[#allocation32_spill] sm:$0xff]  ;;  %v11170_v17 = vld [vmem:[#allocation17_spill] sm:$0xff] }
 0x404   :  { %v5220_v45 = vpop.permute.xlu1 %5219 }
 0x405   :  { %v10440_v5 = vadd.f32 %v4198_v26, %v11168_v9  ;;  %v5222_v9 = vpop.permute.xlu0 %5221 }
 0x406   :  { %7369 = vmatmul.mubr.msk.bf16.gmra.mrb[172].mxu1 %vm2164_vm1, %v5216_v15 }
 0x407   :  { %7372 = vmatprep.mubr.msk.bf16.mxu1 %vm2164_vm1, %v5218_v57 }
 0x408   :  { %v3513_v14 = vpop.f32.mrb[216].mxu0 }
 0x409   :  { %v4199_v30 = vadd.f32 %v10269_v20, %v3513_v14  ;;  %v3515_v47 = vpop.f32.mrb[217].mxu0 }
 0x40a   :  { %v3516_v19 = vpop.f32.mrb[218].mxu0 }
 0x40b   :  { %v4200_v36 = vadd.f32 %v10273_v54, %v3516_v19  ;;  %v3518_v13 = vpop.f32.mrb[219].mxu0  ;;  %v10447_v38 = vadd.f32 %v4199_v30, %v11169_v39  ;;  %v11171_v19 = vld [vmem:[#allocation11_spill] sm:$0xff]  ;;  %v11172_v39 = vld [vmem:[#allocation33_spill] sm:$0xff] }
 0x40c   :  { %v5224_v13 = vpop.permute.xlu1 %5223 }
 0x40d   :  { %v10450_v26 = vadd.f32 %v4200_v36, %v11170_v17  ;;  %v5226_v17 = vpop.permute.xlu0 %5225 }
 0x40e   :  { %7373 = vmatmul.mubr.msk.bf16.gmra.mrb[176].mxu1 %vm2164_vm1, %v5220_v45 }
 0x40f   :  { %7376 = vmatprep.mubr.msk.bf16.mxu1 %vm2164_vm1, %v5222_v9 }
 0x410   :  { %v3521_v15 = vpop.f32.mrb[220].mxu0 }
 0x411   :  { %v4201_v20 = vadd.f32 %v10284_v8, %v3521_v15  ;;  %v3523_v57 = vpop.f32.mrb[221].mxu0 }
 0x412   :  { %v3524_v14 = vpop.f32.mrb[222].mxu0 }
 0x413   :  { %v4202_v54 = vadd.f32 %v10288_v31, %v3524_v14  ;;  %v3526_v47 = vpop.f32.mrb[223].mxu0  ;;  %v10457_v30 = vadd.f32 %v4201_v20, %v11171_v19  ;;  %v11173_v14 = vld [vmem:[#allocation15_spill] sm:$0xff]  ;;  %v11174_v19 = vld [vmem:[#allocation36_spill] sm:$0xff] }
 0x414   :  { %v5228_v47 = vpop.permute.xlu1 %5227 }
 0x415   :  { %v10460_v36 = vadd.f32 %v4202_v54, %v11172_v39  ;;  %v5230_v39 = vpop.permute.xlu0 %5229 }
 0x416   :  { %7377 = vmatmul.mubr.msk.bf16.gmra.mrb[180].mxu1 %vm2164_vm1, %v5224_v13 }
 0x417   :  { %7380 = vmatprep.mubr.msk.bf16.mxu1 %vm2164_vm1, %v5226_v17 }
 0x418   :  { %v3529_v45 = vpop.f32.mrb[224].mxu0 }
 0x419   :  { %v4203_v8 = vadd.f32 %v10282_v43, %v3529_v45  ;;  %v3531_v9 = vpop.f32.mrb[225].mxu0 }
 0x41a   :  { %v3532_v15 = vpop.f32.mrb[226].mxu0 }
 0x41b   :  { %v4204_v31 = vadd.f32 %v10286_v22, %v3532_v15  ;;  %v3534_v57 = vpop.f32.mrb[227].mxu0  ;;  %v10467_v20 = vadd.f32 %v4203_v8, %v11173_v14  ;;  %v11175_v15 = vld [vmem:[#allocation37_spill] sm:$0xff] }
 0x41c   :  { %v5232_v57 = vpop.permute.xlu1 %5231  ;;  %v11176_v14 = vld [vmem:[#allocation21_spill] sm:$0xff] }
 0x41d   :  { %v10470_v54 = vadd.f32 %v4204_v31, %v11174_v19  ;;  %v5234_v19 = vpop.permute.xlu0 %5233 }
 0x41e   :  { %7381 = vmatmul.mubr.msk.bf16.gmra.mrb[184].mxu1 %vm2164_vm1, %v5228_v47 }
 0x41f   :  { %7384 = vmatprep.mubr.msk.bf16.mxu1 %vm2164_vm1, %v5230_v39 }
 0x420   :  { %v3537_v13 = vpop.f32.mrb[228].mxu0 }
 0x421   :  { %v4205_v43 = vadd.f32 %v10294_v52, %v3537_v13  ;;  %v3539_v17 = vpop.f32.mrb[229].mxu0 }
 0x422   :  { %v3540_v45 = vpop.f32.mrb[230].mxu0 }
 0x423   :  { %v4206_v22 = vadd.f32 %v10298_v63, %v3540_v45  ;;  %v3542_v9 = vpop.f32.mrb[231].mxu0  ;;  %v10477_v8 = vadd.f32 %v4205_v43, %v11175_v15  ;;  %v11177_v45 = vld [vmem:[#allocation16_spill] sm:$0xff]  ;;  %v11178_v15 = vld [vmem:[#allocation38_spill] sm:$0xff] }
 0x424   :  { %v5236_v9 = vpop.permute.xlu1 %5235 }
 0x425   :  { %v10480_v31 = vadd.f32 %v4206_v22, %v11176_v14  ;;  %v5238_v14 = vpop.permute.xlu0 %5237 }
 0x426   :  { %7385 = vmatmul.mubr.msk.bf16.gmra.mrb[188].mxu1 %vm2164_vm1, %v5232_v57 }
 0x427   :  { %7388 = vmatprep.mubr.msk.bf16.mxu1 %vm2164_vm1, %v5234_v19 }
 0x428   :  { %v3545_v47 = vpop.f32.mrb[232].mxu0 }
 0x429   :  { %v4207_v52 = vadd.f32 %v10292_v18, %v3545_v47  ;;  %v3547_v39 = vpop.f32.mrb[233].mxu0 }
 0x42a   :  { %v3548_v13 = vpop.f32.mrb[234].mxu0 }
 0x42b   :  { %v4208_v63 = vadd.f32 %v10296_v44, %v3548_v13  ;;  %v3550_v17 = vpop.f32.mrb[235].mxu0  ;;  %v10487_v43 = vadd.f32 %v4207_v52, %v11177_v45  ;;  %v11179_v13 = vld [vmem:[#allocation22_spill] sm:$0xff] }
 0x42c   :  { %v5240_v17 = vpop.permute.xlu1 %5239  ;;  %v11180_v45 = vld [vmem:[#allocation18_spill] sm:$0xff] }
 0x42d   :  { %v10490_v22 = vadd.f32 %v4208_v63, %v11178_v15  ;;  %v5242_v15 = vpop.permute.xlu0 %5241 }
 0x42e   :  { %7389 = vmatmul.mubr.msk.bf16.gmra.mrb[192].mxu1 %vm2164_vm1, %v5236_v9 }
 0x42f   :  { %7392 = vmatprep.mubr.msk.bf16.mxu1 %vm2164_vm1, %v5238_v14 }
 0x430   :  { %v3553_v57 = vpop.f32.mrb[236].mxu0 }
 0x431   :  { %v4209_v18 = vadd.f32 %v10304_v46, %v3553_v57  ;;  %v3555_v19 = vpop.f32.mrb[237].mxu0 }
 0x432   :  { %v3556_v47 = vpop.f32.mrb[238].mxu0 }
 0x433   :  { %v4210_v44 = vadd.f32 %v10308_v35, %v3556_v47  ;;  %v3558_v39 = vpop.f32.mrb[239].mxu0  ;;  %v10497_v52 = vadd.f32 %v4209_v18, %v11179_v13  ;;  %v11181_v47 = vld [vmem:[#allocation23_spill] sm:$0xff]  ;;  %v5246_v13 = vpop.permute.xlu0 %5245 }
 0x434   :  { %v5244_v39 = vpop.permute.xlu1 %5243 }
 0x435   :  { %v10500_v63 = vadd.f32 %v4210_v44, %v11180_v45 }
 0x436   :  { %7393 = vmatmul.mubr.msk.bf16.gmra.mrb[196].mxu1 %vm2164_vm1, %v5240_v17 }
 0x437   :  { %7396 = vmatprep.mubr.msk.bf16.mxu1 %vm2164_vm1, %v5242_v15 }
 0x438   :  { %v3561_v9 = vpop.f32.mrb[240].mxu0 }
 0x439   :  { %v4211_v46 = vadd.f32 %v10302_v4, %v3561_v9  ;;  %v3563_v14 = vpop.f32.mrb[241].mxu0 }
 0x43a   :  { %v3564_v57 = vpop.f32.mrb[242].mxu0  ;;  %v5248_v14 = vpop.permute.xlu1 %5247 }
 0x43b   :  { %v4212_v35 = vadd.f32 %v10306_v41, %v3564_v57  ;;  %v3566_v19 = vpop.f32.mrb[243].mxu0  ;;  %v10507_v18 = vadd.f32 %v4211_v46, %v11181_v47  ;;  %v5250_v57 = vpop.permute.xlu0 %5249 }
 0x43d   :  { %v10510_v44 = vadd.f32 %v4212_v35, %v10006_v48 }
 0x43e   :  { %7397 = vmatmul.mubr.msk.bf16.gmra.mrb[200].mxu1 %vm2164_vm1, %v5244_v39 }
 0x43f   :  { %7400 = vmatprep.mubr.msk.bf16.mxu1 %vm2164_vm1, %v5246_v13  ;;  %v5254_v13 = vpop.permute.xlu0 %5253 }
 0x440   :  { %v3569_v17 = vpop.f32.mrb[244].mxu0 }
 0x441   :  { %v4213_v4 = vadd.f32 %v10314_v7, %v3569_v17  ;;  %v3571_v45 = vpop.f32.mrb[245].mxu0  ;;  %v5252_v17 = vpop.permute.xlu1 %5251 }
 0x442   :  { %v3572_v15 = vpop.f32.mrb[246].mxu0 }
 0x443   :  { %v4214_v41 = vadd.f32 %v10318_v60, %v3572_v15  ;;  %v3574_v9 = vpop.f32.mrb[247].mxu0  ;;  %v10517_v46 = vadd.f32 %v4213_v4, %v10012_v58  ;;  %v7792_v45 = vpop.permute.xlu0 %7791 }
 0x445   :  { %v10520_v48 = vadd.f32 %v4214_v41, %v10016_v25 }
 0x446   :  { %7401 = vmatmul.mubr.msk.bf16.gmra.mrb[204].mxu1 %vm2164_vm1, %v5248_v14  ;;  %v7793_v14 = vunpack.i.l.bf16 %v7792_v45 }
 0x447   :  { %7404 = vmatprep.mubr.msk.bf16.mxu1 %vm2164_vm1, %v5250_v57  ;;  %v11182_v57 = vld [vmem:[#allocation20_spill] sm:$0xff] }
 0x448   :  { %v3577_v35 = vpop.f32.mrb[248].mxu0 }
 0x449   :  { %v4215_v7 = vadd.f32 %v10312_v0, %v3577_v35  ;;  %v3579_v19 = vpop.f32.mrb[249].mxu0 }
 0x44a   :  { %v3580_v47 = vpop.f32.mrb[250].mxu0 }
 0x44b   :  { %v4216_v60 = vadd.f32 %v10316_v10, %v3580_v47  ;;  %v3582_v39 = vpop.f32.mrb[251].mxu0  ;;  %v10527_v58 = vadd.f32 %v4215_v7, %v10021_v21  ;;  %v5256_v21 = vpop.permute.xlu1 %5255 }
 0x44d   :  { %v10530_v25 = vadd.f32 %v4216_v60, %v10024_v24  ;;  %v11183_v24 = vld [vmem:[#allocation25_spill] sm:$0xff] }
 0x44e   :  { %7405 = vmatmul.mubr.msk.bf16.gmra.mrb[208].mxu1 %vm2164_vm1, %v5252_v17 }
 0x44f   :  { %7408 = vmatprep.mubr.msk.bf16.mxu1 %vm2164_vm1, %v5254_v13  ;;  %v7797_v47 = vpop.permute.xlu1 %7796  ;;  %v7794_v13 = vunpack.i.h.bf16 %v7792_v45 }
 0x450   :  { %v3585_v4 = vpop.f32.mrb[252].mxu0  ;;  %v7799_v45 = vunpack.i.h.bf16 %v7797_v47 }
 0x451   :  { %v4217_v0 = vadd.f32 %v10324_v32, %v3585_v4  ;;  %v3587_v15 = vpop.f32.mrb[253].mxu0  ;;  %v11184_v32 = vld [vmem:[#allocation55_spill] sm:$0xff] }
 0x452   :  { %v3588_v41 = vpop.f32.mrb[254].mxu0  ;;  %v7798_v15 = vunpack.i.l.bf16 %v7797_v47 }
 0x453   :  { %v4218_v10 = vadd.f32 %v10328_v55, %v3588_v41  ;;  %v3590_v9 = vpop.f32.mrb[255].mxu0  ;;  %v10537_v35 = vadd.f32 %v4217_v0, %v11182_v57  ;;  %v11185_v0 = vld [vmem:[#allocation19_spill] sm:$0xff] }
 0x455   :  { %v10540_v7 = vadd.f32 %v4218_v10, %v11183_v24  ;;  %v11186_v10 = vld [vmem:[#allocation24_spill] sm:$0xff] }
 0x456   :  { %7409 = vmatmul.mubr.msk.bf16.gmra.mrb[212].mxu1 %vm2164_vm1, %v5256_v21 }
 0x457   :  { %7412 = vmatprep.mubr.msk.bf16.mxu1 %vm2164_vm1, %v7793_v14 }
 0x458   :  { %v3593_v19 = vpop.f32.mrb[0].mxu0 }
 0x459   :  { %v4219_v60 = vadd.f32 %v11184_v32, %v3593_v19  ;;  %v3595_v39 = vpop.f32.mrb[1].mxu0  ;;  %v11187_v32 = vld [vmem:[#allocation39_spill] sm:$0xff] }
 0x45a   :  { %v3596_v55 = vpop.f32.mrb[2].mxu0 }
 0x45b   :  { %v4220_v17 = vadd.f32 %v10326_v42, %v3596_v55  ;;  %v3598_v4 = vpop.f32.mrb[3].mxu0  ;;  %v10547_v41 = vadd.f32 %v4219_v60, %v11185_v0  ;;  %v11188_v60 = vld [vmem:[#allocation42_spill] sm:$0xff]  ;;  %v11189_v0 = vld [vmem:[#allocation40_spill] sm:$0xff] }
 0x45d   :  { %v10550_v9 = vadd.f32 %v4220_v17, %v11186_v10 }
 0x45e   :  { %7413 = vmatmul.mubr.msk.bf16.gmra.mrb[216].mxu1 %vm2164_vm1, %v7794_v13 }
 0x45f   :  { %7416 = vmatprep.mubr.msk.bf16.mxu1 %vm2164_vm1, %v7798_v15 }
 0x460   :  { %v3601_v21 = vpop.f32.mrb[4].mxu0 }
 0x461   :  { %v4221_v14 = vadd.f32 %v10332_v23, %v3601_v21  ;;  %v3603_v57 = vpop.f32.mrb[5].mxu0 }
 0x462   :  { %v3604_v24 = vpop.f32.mrb[6].mxu0 }
 0x463   :  { %v4222_v42 = vadd.f32 %v10336_v53, %v3604_v24  ;;  %v3606_v19 = vpop.f32.mrb[7].mxu0  ;;  %v10557_v39 = vadd.f32 %v4221_v14, %v11187_v32  ;;  %v11190_v53 = vld [vmem:[#allocation44_spill] sm:$0xff] }
 0x465   :  { %v10560_v55 = vadd.f32 %v4222_v42, %v11188_v60  ;;  %v11192_v60 = vld [vmem:[#allocation48_spill] sm:$0xff] }
 0x466   :  { %7417 = vmatmul.mubr.msk.bf16.gmra.mrb[220].mxu1 %vm2164_vm1, %v7799_v45 }
 0x468   :  { %v3609_v13 = vpop.f32.mrb[8].mxu0 }
 0x469   :  { %v4223_v17 = vadd.f32 %v10330_v50, %v3609_v13  ;;  %v3611_v4 = vpop.f32.mrb[9].mxu0  ;;  %v11191_v50 = vld [vmem:[#allocation35_spill] sm:$0xff] }
 0x46a   :  { %v3612_v15 = vpop.f32.mrb[10].mxu0 }
 0x46b   :  { %v4224_v23 = vadd.f32 %v10334_v1, %v3612_v15  ;;  %v3614_v47 = vpop.f32.mrb[11].mxu0  ;;  %v10566_v10 = vadd.f32 %v4223_v17, %v11189_v0 }
 0x46d   :  { %v10569_v21 = vadd.f32 %v4224_v23, %v11190_v53  ;;  %v11194_v53 = vld [vmem:[#allocation47_spill] sm:$0xff] }
 0x470   :  { %v3617_v14 = vpop.f32.mrb[12].mxu0 }
 0x471   :  { %v4225_v57 = vadd.f32 %v10343_v6, %v3617_v14  ;;  %v3619_v24 = vpop.f32.mrb[13].mxu0  ;;  %v11193_v6 = vld [vmem:[#allocation46_spill] sm:$0xff] }
 0x472   :  { %v3620_v42 = vpop.f32.mrb[14].mxu0 }
 0x473   :  { %v4226_v45 = vadd.f32 %v10347_v28, %v3620_v42  ;;  %v3622_v19 = vpop.f32.mrb[15].mxu0  ;;  %v10574_v32 = vadd.f32 %v4225_v57, %v11191_v50 }
 0x475   :  { %v10577_v1 = vadd.f32 %v4226_v45, %v11192_v60  ;;  %v11197_v60 = vld [vmem:[#allocation54_spill] sm:$0xff] }
 0x478   :  { %v3625_v13 = vpop.f32.mrb[16].mxu0 }
 0x479   :  { %v4227_v17 = vadd.f32 %v10341_v62, %v3625_v13  ;;  %v3627_v4 = vpop.f32.mrb[17].mxu0  ;;  %v11195_v62 = vld [vmem:[#allocation51_spill] sm:$0xff] }
 0x47a   :  { %v3628_v15 = vpop.f32.mrb[18].mxu0 }
 0x47b   :  { %v4228_v23 = vadd.f32 %v10345_v11, %v3628_v15  ;;  %v3630_v47 = vpop.f32.mrb[19].mxu0  ;;  %v10582_v0 = vadd.f32 %v4227_v17, %v11193_v6 }
 0x47d   :  { %v10585_v28 = vadd.f32 %v4228_v23, %v11194_v53  ;;  %v11199_v23 = vld [vmem:[#allocation57_spill] sm:$0xff] }
 0x480   :  { %v3633_v14 = vpop.f32.mrb[20].mxu0 }
 0x481   :  { %v4229_v57 = vadd.f32 %v10355_v29, %v3633_v14  ;;  %v3635_v24 = vpop.f32.mrb[21].mxu0  ;;  %v11200_v29 = vld [vmem:[#allocation50_spill] sm:$0xff]  ;;  %v11201_v14 = vld [vmem:[#allocation52_spill] sm:$0xff] }
 0x482   :  { %v3636_v42 = vpop.f32.mrb[22].mxu0 }
 0x483   :  { %v4230_v45 = vadd.f32 %v10359_v37, %v3636_v42  ;;  %v3638_v19 = vpop.f32.mrb[23].mxu0  ;;  %v10590_v50 = vadd.f32 %v4229_v57, %v11195_v62  ;;  %v11203_v57 = vld [vmem:[#allocation59_spill] sm:$0xff]  ;;  %v11204_v62 = vld [vmem:[#allocation61_spill] sm:$0xff] }
 0x485   :  { %11196 = vst [vmem:[#allocation12_spill] sm:$0xff] %v10590_v50  ;;  %v10593_v11 = vadd.f32 %v4230_v45, %v11197_v60 }
 0x487   :  { %11198 = vst [vmem:[#allocation29_spill] sm:$0xff] %v10593_v11 }
 0x488   :  { %v3641_v13 = vpop.f32.mrb[24].mxu0 }
 0x489   :  { %v4231_v17 = vadd.f32 %v10353_v3, %v3641_v13  ;;  %v3643_v4 = vpop.f32.mrb[25].mxu0  ;;  %v11205_v3 = vld [vmem:[#allocation5_spill] sm:$0xff] }
 0x48a   :  { %v3644_v15 = vpop.f32.mrb[26].mxu0  ;;  %v11206_v4 = vld [vmem:[#allocation10_spill] sm:$0xff] }
 0x48b   :  { %v4232_v47 = vadd.f32 %v11199_v23, %v3644_v15  ;;  %v3646_v6 = vpop.f32.mrb[27].mxu0  ;;  %v10598_v53 = vadd.f32 %v4231_v17, %v11200_v29  ;;  %v11207_v17 = vld [vmem:[#allocation58_spill] sm:$0xff] }
 0x48d   :  { %v10601_v37 = vadd.f32 %v4232_v47, %v11201_v14  ;;  %v11208_v14 = vld [vmem:[#allocation60_spill] sm:$0xff] }
 0x48f   :  { %11202 = vst [vmem:[#allocation30_spill] sm:$0xff] %v10601_v37 }
 0x490   :  { %v3649_v24 = vpop.f32.mrb[28].mxu0 }
 0x491   :  { %v4233_v42 = vadd.f32 %v11203_v57, %v3649_v24  ;;  %v3651_v19 = vpop.f32.mrb[29].mxu0  ;;  %v11209_v24 = vld [vmem:[#allocation6_spill] sm:$0xff] }
 0x492   :  { %v3652_v45 = vpop.f32.mrb[30].mxu0  ;;  %v11210_v19 = vld [vmem:[#allocation7_spill] sm:$0xff] }
 0x493   :  { %v4234_v60 = vadd.f32 %v11204_v62, %v3652_v45  ;;  %v3654_v11 = vpop.f32.mrb[31].mxu0  ;;  %v10606_v13 = vadd.f32 %v4233_v42, %v11205_v3 }
 0x495   :  { %v10609_v15 = vadd.f32 %v4234_v60, %v11206_v4 }
 0x498   :  { %v3657_v23 = vpop.f32.mrb[32].mxu0 }
 0x499   :  { %v4235_v6 = vadd.f32 %v11207_v17, %v3657_v23  ;;  %v3659_v29 = vpop.f32.mrb[33].mxu0  ;;  %v11211_v23 = vld [vmem:[#allocation8_spill] sm:$0xff] }
 0x49a   :  { %v3660_v47 = vpop.f32.mrb[34].mxu0  ;;  %v11212_v29 = vld [vmem:[#allocation41_spill] sm:$0xff] }
 0x49b   :  { %v4236_v37 = vadd.f32 %v11208_v14, %v3660_v47  ;;  %v3662_v50 = vpop.f32.mrb[35].mxu0  ;;  %v10614_v57 = vadd.f32 %v4235_v6, %v11209_v24 }
 0x49d   :  { %v10617_v45 = vadd.f32 %v4236_v37, %v11210_v19 }
 0x4a0   :  { %v3665_v11 = vpop.f32.mrb[36].mxu0 }
 0x4a1   :  { %v4237_v42 = vadd.f32 %v10380_v2, %v3665_v11  ;;  %v3667_v62 = vpop.f32.mrb[37].mxu0  ;;  %v11214_v2 = vld [vmem:[#allocation43_spill] sm:$0xff] }
 0x4a2   :  { %v3668_v60 = vpop.f32.mrb[38].mxu0  ;;  %v11215_v62 = vld [vmem:[#allocation45_spill] sm:$0xff] }
 0x4a3   :  { %v4238_v3 = vadd.f32 %v10388_v27, %v3668_v60  ;;  %v3670_v4 = vpop.f32.mrb[39].mxu0  ;;  %v10622_v17 = vadd.f32 %v4237_v42, %v11211_v23 }
 0x4a5   :  { %v10625_v47 = vadd.f32 %v4238_v3, %v11212_v29 }
 0x4a7   :  { %11213 = vst [vmem:[#allocation31_spill] sm:$0xff] %v10625_v47 }
 0x4a8   :  { %v3673_v50 = vpop.f32.mrb[40].mxu0 }
 0x4a9   :  { %v4239_v6 = vadd.f32 %v10378_v16, %v3673_v50  ;;  %v3675_v14 = vpop.f32.mrb[41].mxu0  ;;  %v11216_v16 = vld [vmem:[#allocation34_spill] sm:$0xff] }
 0x4aa   :  { %v3676_v37 = vpop.f32.mrb[42].mxu0  ;;  %v11218_v14 = vld [vmem:[#allocation49_spill] sm:$0xff] }
 0x4ab   :  { %v4240_v24 = vadd.f32 %v10383_v61, %v3676_v37  ;;  %v3678_v19 = vpop.f32.mrb[43].mxu0  ;;  %v10630_v11 = vadd.f32 %v4239_v6, %v11214_v2  ;;  %v11220_v2 = vld [vmem:[#allocation62_spill] sm:$0xff] }
 0x4ad   :  { %v10633_v27 = vadd.f32 %v4240_v24, %v11215_v62 }
 0x4b0   :  { %v3681_v60 = vpop.f32.mrb[44].mxu0 }
 0x4b1   :  { %v4241_v42 = vadd.f32 %v10399_v34, %v3681_v60  ;;  %v3683_v4 = vpop.f32.mrb[45].mxu0  ;;  %v11221_v34 = vld [vmem:[#allocation53_spill] sm:$0xff] }
 0x4b2   :  { %v3684_v3 = vpop.f32.mrb[46].mxu0  ;;  %v11223_v4 = vld [vmem:[#allocation56_spill] sm:$0xff] }
 0x4b3   :  { %v4242_v23 = vadd.f32 %v10407_v12, %v3684_v3  ;;  %v3686_v29 = vpop.f32.mrb[47].mxu0  ;;  %v10638_v50 = vadd.f32 %v4241_v42, %v11216_v16  ;;  %v11225_v42 = vld [vmem:[#allocation27_spill] sm:$0xff]  ;;  %v11226_v16 = vld [vmem:[#allocation9_spill] sm:$0xff] }
 0x4b5   :  { %11217 = vst [vmem:[#allocation13_spill] sm:$0xff] %v10638_v50  ;;  %v10641_v61 = vadd.f32 %v4242_v23, %v11218_v14  ;;  %v10655_v23 = vld [vmem:[%s10946_s4] ss:$0 sm:$0xff] }
 0x4b7   :  { %11219 = vst [vmem:[#allocation14_spill] sm:$0xff] %v10641_v61 }
 0x4b8   :  { %v3689_v37 = vpop.f32.mrb[48].mxu0 }
 0x4b9   :  { %v4243_v6 = vadd.f32 %v10397_v51, %v3689_v37  ;;  %v3691_v19 = vpop.f32.mrb[49].mxu0 }
 0x4ba   :  { %v3692_v24 = vpop.f32.mrb[50].mxu0  ;;  %v11227_v19 = vld [vmem:[#allocation28_spill] sm:$0xff] }
 0x4bb   :  { %v4244_v62 = vadd.f32 %v11220_v2, %v3692_v24  ;;  %v3694_v47 = vpop.f32.mrb[51].mxu0  ;;  %v10646_v60 = vadd.f32 %v4243_v6, %v11221_v34 }
 0x4bd   :  { %11222 = vst [vmem:[#allocation32_spill] sm:$0xff] %v10646_v60  ;;  %v10649_v12 = vadd.f32 %v4244_v62, %v11223_v4  ;;  %v11228_v62 = vld [vmem:[#allocation26_spill] sm:$0xff] }
 0x4be   :  { %v6835_v4 = vld [vmem:[%s10947_s5] ss:$0 sm:$0xff] }
 0x4bf   :  { %11224 = vst [vmem:[#allocation17_spill] sm:$0xff] %v10649_v12 }
 0x4d1   :  { %v7366_v3 = vpop.f32.mrb[168].mxu1 }
 0x4d2   :  { %v5745_v29 = vadd.f32 %v7366_v3, %v11225_v42  ;;  %v5408_v51 = vpop.f32.mrb[169].mxu1 }
 0x4d3   :  { %v5743_v14 = vadd.f32 %v5408_v51, %v11226_v16  ;;  %v7367_v37 = vpop.f32.mrb[170].mxu1  ;;  %v6836_v51 = vld [vmem:[%s10947_s5 + $0x1] ss:$0 sm:$0xff] }
 0x4d4   :  { %v5746_v47 = vadd.f32 %v7367_v37, %v11227_v19  ;;  %v5411_v24 = vpop.f32.mrb[171].mxu1  ;;  %v5920_v6 = vadd.f32 %v10655_v23, %v5745_v29 }
 0x4d5   :  { %v5918_v2 = vadd.f32 %v10655_v23, %v5743_v14  ;;  %v5744_v34 = vadd.f32 %v5411_v24, %v11228_v62  ;;  %v6837_v62 = vld [vmem:[%s10947_s5 + $0x2] ss:$0 sm:$0xff] }
 0x4d6   :  { %v5921_v61 = vadd.f32 %v10655_v23, %v5746_v47  ;;  %v5976_v16 = vmax.f32 %v5920_v6, 0.0 }
 0x4d7   :  { %v5974_v3 = vmax.f32 %v5918_v2, 0.0  ;;  %v5919_v42 = vadd.f32 %v10655_v23, %v5744_v34 }
 0x4d8   :  { %v5977_v12 = vmax.f32 %v5921_v61, 0.0 }
 0x4d9   :  { %v5975_v37 = vmax.f32 %v5919_v42, 0.0  ;;  %v7370_v29 = vpop.f32.mrb[172].mxu1  ;;  %v6422_v19 = vmul.f32 %v6835_v4, %v5974_v3  ;;  %v6424_v3 = vmul.f32 %v6837_v62, %v5976_v16  ;;  %v6838_v42 = vld [vmem:[%s10947_s5 + $0x3] ss:$0 sm:$0xff]  ;;  %v6841_v62 = vld [vmem:[%s10947_s5 + $0x6] ss:$0 sm:$0xff] }
 0x4da   :  { %v5749_v14 = vadd.f32 %v7370_v29, %v10427_v33  ;;  %v5424_v24 = vpop.f32.mrb[173].mxu1 }
 0x4db   :  { %v5747_v2 = vadd.f32 %v5424_v24, %v10417_v49  ;;  %v7371_v34 = vpop.f32.mrb[174].mxu1  ;;  %6478 = vadd.xlane.f32.xlu0 %v6422_v19  ;;  %v6423_v47 = vmul.f32 %v6836_v51, %v5975_v37  ;;  %v6839_v49 = vld [vmem:[%s10947_s5 + $0x4] ss:$0 sm:$0xff]  ;;  %v6840_v24 = vld [vmem:[%s10947_s5 + $0x5] ss:$0 sm:$0xff] }
 0x4dc   :  { %v5750_v50 = vadd.f32 %v7371_v34, %v10430_v59  ;;  %v5427_v60 = vpop.f32.mrb[175].mxu1  ;;  %v5924_v6 = vadd.f32 %v10655_v23, %v5749_v14 }
 0x4dd   :  { %v5922_v4 = vadd.f32 %v10655_v23, %v5747_v2  ;;  %v5748_v33 = vadd.f32 %v5427_v60, %v10420_v56  ;;  %6480 = vadd.xlane.f32.xlu1 %v6423_v47  ;;  %v6425_v56 = vmul.f32 %v6838_v42, %v5977_v12  ;;  %v6842_v42 = vld [vmem:[%s10947_s5 + $0x7] ss:$0 sm:$0xff] }
 0x4de   :  { %v5925_v51 = vadd.f32 %v10655_v23, %v5750_v50  ;;  %v5980_v37 = vmax.f32 %v5924_v6, 0.0 }
 0x4df   :  { %v5978_v61 = vmax.f32 %v5922_v4, 0.0  ;;  %v5923_v59 = vadd.f32 %v10655_v23, %v5748_v33  ;;  %6482 = vadd.xlane.f32.xlu0 %v6424_v3 }
 0x4e0   :  { %v5981_v50 = vmax.f32 %v5925_v51, 0.0  ;;  %v6428_v3 = vmul.f32 %v6841_v62, %v5980_v37 }
 0x4e1   :  { %v5979_v29 = vmax.f32 %v5923_v59, 0.0  ;;  %v7374_v19 = vpop.f32.mrb[176].mxu1  ;;  %v6426_v60 = vmul.f32 %v6839_v49, %v5978_v61 }
 0x4e2   :  { %v5753_v16 = vadd.f32 %v7374_v19, %v10447_v38  ;;  %v5440_v14 = vpop.f32.mrb[177].mxu1  ;;  %v6845_v19 = vld [vmem:[%s10947_s5 + $0xa] ss:$0 sm:$0xff] }
 0x4e3   :  { %v5751_v2 = vadd.f32 %v5440_v14, %v10437_v40  ;;  %v7375_v34 = vpop.f32.mrb[178].mxu1  ;;  %6484 = vadd.xlane.f32.xlu0 %v6425_v56  ;;  %6486 = vadd.xlane.f32.xlu1 %v6426_v60  ;;  %v6427_v33 = vmul.f32 %v6840_v24, %v5979_v29  ;;  %v6843_v40 = vld [vmem:[%s10947_s5 + $0x8] ss:$0 sm:$0xff]  ;;  %v6429_v29 = vmul.f32 %v6842_v42, %v5981_v50 }
 0x4e4   :  { %v5928_v12 = vadd.f32 %v10655_v23, %v5753_v16  ;;  %v5754_v47 = vadd.f32 %v7375_v34, %v10450_v26  ;;  %v5443_v38 = vpop.f32.mrb[179].mxu1  ;;  %v6844_v16 = vld [vmem:[%s10947_s5 + $0x9] ss:$0 sm:$0xff] }
 0x4e5   :  { %v5926_v6 = vadd.f32 %v10655_v23, %v5751_v2  ;;  %v5752_v4 = vadd.f32 %v5443_v38, %v10440_v5 }
 0x4e6   :  { %v5984_v26 = vmax.f32 %v5928_v12, 0.0  ;;  %v5929_v59 = vadd.f32 %v10655_v23, %v5754_v47 }
 0x4e7   :  { %v5982_v49 = vmax.f32 %v5926_v6, 0.0  ;;  %v5927_v61 = vadd.f32 %v10655_v23, %v5752_v4  ;;  %6488 = vadd.xlane.f32.xlu0 %v6427_v33  ;;  %6490 = vadd.xlane.f32.xlu1 %v6428_v3  ;;  %v6846_v6 = vld [vmem:[%s10947_s5 + $0xb] ss:$0 sm:$0xff] }
 0x4e8   :  { %v5985_v62 = vmax.f32 %v5929_v59, 0.0  ;;  %v6432_v50 = vmul.f32 %v6845_v19, %v5984_v26  ;;  %v6848_v59 = vld [vmem:[%s10947_s5 + $0xd] ss:$0 sm:$0xff] }
 0x4e9   :  { %v5983_v51 = vmax.f32 %v5927_v61, 0.0  ;;  %v7378_v5 = vpop.f32.mrb[180].mxu1  ;;  %v6430_v37 = vmul.f32 %v6843_v40, %v5982_v49 }
 0x4ea   :  { %v5757_v56 = vadd.f32 %v7378_v5, %v10467_v20  ;;  %v5456_v60 = vpop.f32.mrb[181].mxu1 }
 0x4eb   :  { %v5755_v14 = vadd.f32 %v5456_v60, %v10457_v30  ;;  %v7379_v24 = vpop.f32.mrb[182].mxu1  ;;  %6492 = vadd.xlane.f32.xlu0 %v6429_v29  ;;  %6494 = vadd.xlane.f32.xlu1 %v6430_v37  ;;  %v6431_v38 = vmul.f32 %v6844_v16, %v5983_v51  ;;  %v6847_v30 = vld [vmem:[%s10947_s5 + $0xc] ss:$0 sm:$0xff]  ;;  %v6849_v51 = vld [vmem:[%s10947_s5 + $0xe] ss:$0 sm:$0xff] }
 0x4ec   :  { %v5758_v2 = vadd.f32 %v7379_v24, %v10470_v54  ;;  %v5459_v34 = vpop.f32.mrb[183].mxu1  ;;  %v5932_v12 = vadd.f32 %v10655_v23, %v5757_v56 }
 0x4ed   :  { %v5930_v47 = vadd.f32 %v10655_v23, %v5755_v14  ;;  %v5756_v20 = vadd.f32 %v5459_v34, %v10460_v36  ;;  %v6433_v36 = vmul.f32 %v6846_v6, %v5985_v62  ;;  %v6850_v62 = vld [vmem:[%s10947_s5 + $0xf] ss:$0 sm:$0xff] }
 0x4ee   :  { %v5933_v33 = vadd.f32 %v10655_v23, %v5758_v2  ;;  %v5988_v3 = vmax.f32 %v5932_v12, 0.0 }
 0x4ef   :  { %v5986_v4 = vmax.f32 %v5930_v47, 0.0  ;;  %v5931_v54 = vadd.f32 %v10655_v23, %v5756_v20  ;;  %6496 = vadd.xlane.f32.xlu0 %v6431_v38  ;;  %6498 = vadd.xlane.f32.xlu1 %v6432_v50  ;;  %v6853_v38 = vld [vmem:[%s10947_s5 + $0x12] ss:$0 sm:$0xff] }
 0x4f0   :  { %v5989_v37 = vmax.f32 %v5933_v33, 0.0  ;;  %v6436_v24 = vmul.f32 %v6849_v51, %v5988_v3 }
 0x4f1   :  { %v5987_v42 = vmax.f32 %v5931_v54, 0.0  ;;  %v7382_v40 = vpop.f32.mrb[184].mxu1  ;;  %v6434_v49 = vmul.f32 %v6847_v30, %v5986_v4  ;;  %v6852_v4 = vld [vmem:[%s10947_s5 + $0x11] ss:$0 sm:$0xff] }
 0x4f2   :  { %v5761_v61 = vadd.f32 %v7382_v40, %v10487_v43  ;;  %v5472_v26 = vpop.f32.mrb[185].mxu1  ;;  %v6437_v47 = vmul.f32 %v6850_v62, %v5989_v37 }
 0x4f3   :  { %v5759_v5 = vadd.f32 %v5472_v26, %v10477_v8  ;;  %v7383_v29 = vpop.f32.mrb[186].mxu1  ;;  %6500 = vadd.xlane.f32.xlu0 %v6433_v36  ;;  %6502 = vadd.xlane.f32.xlu1 %v6434_v49  ;;  %v6435_v14 = vmul.f32 %v6848_v59, %v5987_v42  ;;  %v6851_v8 = vld [vmem:[%s10947_s5 + $0x10] ss:$0 sm:$0xff]  ;;  %v6854_v59 = vld [vmem:[%s10947_s5 + $0x13] ss:$0 sm:$0xff] }
 0x4f4   :  { %v5936_v19 = vadd.f32 %v10655_v23, %v5761_v61  ;;  %v5762_v56 = vadd.f32 %v7383_v29, %v10490_v22  ;;  %v5475_v43 = vpop.f32.mrb[187].mxu1 }
 0x4f5   :  { %v5934_v60 = vadd.f32 %v10655_v23, %v5759_v5  ;;  %v5760_v16 = vadd.f32 %v5475_v43, %v10480_v31 }
 0x4f6   :  { %v5992_v22 = vmax.f32 %v5936_v19, 0.0  ;;  %v5937_v50 = vadd.f32 %v10655_v23, %v5762_v56 }
 0x4f7   :  { %v5990_v2 = vmax.f32 %v5934_v60, 0.0  ;;  %v5935_v34 = vadd.f32 %v10655_v23, %v5760_v16  ;;  %6504 = vadd.xlane.f32.xlu0 %v6435_v14  ;;  %6506 = vadd.xlane.f32.xlu1 %v6436_v24  ;;  %v6856_v16 = vld [vmem:[%s10947_s5 + $0x15] ss:$0 sm:$0xff]  ;;  %v6857_v14 = vld [vmem:[%s10947_s5 + $0x16] ss:$0 sm:$0xff] }
 0x4f8   :  { %v5993_v3 = vmax.f32 %v5937_v50, 0.0  ;;  %v6440_v36 = vmul.f32 %v6853_v38, %v5992_v22 }
 0x4f9   :  { %v5991_v12 = vmax.f32 %v5935_v34, 0.0  ;;  %v7386_v31 = vpop.f32.mrb[188].mxu1  ;;  %v6438_v20 = vmul.f32 %v6851_v8, %v5990_v2 }
 0x4fa   :  { %v5765_v6 = vadd.f32 %v7386_v31, %v10507_v18  ;;  %v5488_v30 = vpop.f32.mrb[189].mxu1 }
 0x4fb   :  { %v5763_v54 = vadd.f32 %v5488_v30, %v10497_v52  ;;  %v7387_v33 = vpop.f32.mrb[190].mxu1  ;;  %6508 = vadd.xlane.f32.xlu0 %v6437_v47  ;;  %6510 = vadd.xlane.f32.xlu1 %v6438_v20  ;;  %v6439_v26 = vmul.f32 %v6852_v4, %v5991_v12  ;;  %v6855_v52 = vld [vmem:[%s10947_s5 + $0x14] ss:$0 sm:$0xff]  ;;  %v6858_v47 = vld [vmem:[%s10947_s5 + $0x17] ss:$0 sm:$0xff] }
 0x4fc   :  { %v5766_v42 = vadd.f32 %v7387_v33, %v10510_v44  ;;  %v5491_v40 = vpop.f32.mrb[191].mxu1  ;;  %v5940_v49 = vadd.f32 %v10655_v23, %v5765_v6  ;;  %v6861_v33 = vld [vmem:[%s10947_s5 + $0x1a] ss:$0 sm:$0xff] }
 0x4fd   :  { %v5938_v61 = vadd.f32 %v10655_v23, %v5763_v54  ;;  %v5764_v18 = vadd.f32 %v5491_v40, %v10500_v63  ;;  %v6441_v63 = vmul.f32 %v6854_v59, %v5993_v3  ;;  %v6860_v40 = vld [vmem:[%s10947_s5 + $0x19] ss:$0 sm:$0xff] }
 0x4fe   :  { %v5941_v5 = vadd.f32 %v10655_v23, %v5766_v42  ;;  %v5996_v29 = vmax.f32 %v5940_v49, 0.0 }
 0x4ff   :  { %v5994_v51 = vmax.f32 %v5938_v61, 0.0  ;;  %v5939_v44 = vadd.f32 %v10655_v23, %v5764_v18  ;;  %6512 = vadd.xlane.f32.xlu0 %v6439_v26  ;;  %6514 = vadd.xlane.f32.xlu1 %v6440_v36 }
 0x500   :  { %v5997_v8 = vmax.f32 %v5941_v5, 0.0  ;;  %v6444_v31 = vmul.f32 %v6857_v14, %v5996_v29  ;;  %v6862_v5 = vld [vmem:[%s10947_s5 + $0x1b] ss:$0 sm:$0xff]  ;;  %v6864_v14 = vld [vmem:[%s10947_s5 + $0x1d] ss:$0 sm:$0xff] }
 0x501   :  { %v5995_v37 = vmax.f32 %v5939_v44, 0.0  ;;  %v7390_v19 = vpop.f32.mrb[192].mxu1  ;;  %v6442_v56 = vmul.f32 %v6855_v52, %v5994_v51 }
 0x502   :  { %v5769_v43 = vadd.f32 %v7390_v19, %v10527_v58  ;;  %v5504_v60 = vpop.f32.mrb[193].mxu1  ;;  %v6445_v4 = vmul.f32 %v6858_v47, %v5997_v8  ;;  %v6866_v47 = vld [vmem:[%s10947_s5 + $0x1f] ss:$0 sm:$0xff] }
 0x503   :  { %v5767_v24 = vadd.f32 %v5504_v60, %v10517_v46  ;;  %v7391_v62 = vpop.f32.mrb[194].mxu1  ;;  %6516 = vadd.xlane.f32.xlu0 %v6441_v63  ;;  %6518 = vadd.xlane.f32.xlu1 %v6442_v56  ;;  %v6443_v12 = vmul.f32 %v6856_v16, %v5995_v37  ;;  %v6859_v46 = vld [vmem:[%s10947_s5 + $0x18] ss:$0 sm:$0xff] }
 0x504   :  { %v5944_v2 = vadd.f32 %v10655_v23, %v5769_v43  ;;  %v5770_v34 = vadd.f32 %v7391_v62, %v10530_v25  ;;  %v5507_v58 = vpop.f32.mrb[195].mxu1 }
 0x505   :  { %v5942_v22 = vadd.f32 %v10655_v23, %v5767_v24  ;;  %v5768_v50 = vadd.f32 %v5507_v58, %v10520_v48  ;;  %v6865_v24 = vld [vmem:[%s10947_s5 + $0x1e] ss:$0 sm:$0xff] }
 0x506   :  { %v6000_v25 = vmax.f32 %v5944_v2, 0.0  ;;  %v5945_v6 = vadd.f32 %v10655_v23, %v5770_v34 }
 0x507   :  { %v5998_v20 = vmax.f32 %v5942_v22, 0.0  ;;  %v5943_v38 = vadd.f32 %v10655_v23, %v5768_v50  ;;  %6520 = vadd.xlane.f32.xlu0 %v6443_v12  ;;  %6522 = vadd.xlane.f32.xlu1 %v6444_v31 }
 0x508   :  { %v6001_v61 = vmax.f32 %v5945_v6, 0.0  ;;  %v6448_v59 = vmul.f32 %v6861_v33, %v6000_v25  ;;  %v6868_v33 = vld [vmem:[%s10947_s5 + $0x21] ss:$0 sm:$0xff] }
 0x509   :  { %v5999_v30 = vmax.f32 %v5943_v38, 0.0  ;;  %v7394_v48 = vpop.f32.mrb[196].mxu1  ;;  %v6446_v54 = vmul.f32 %v6859_v46, %v5998_v20 }
 0x50a   :  { %v5773_v3 = vadd.f32 %v7394_v48, %v10547_v41  ;;  %v5520_v42 = vpop.f32.mrb[197].mxu1  ;;  %v6869_v48 = vld [vmem:[%s10947_s5 + $0x22] ss:$0 sm:$0xff] }
 0x50b   :  { %v5771_v36 = vadd.f32 %v5520_v42, %v10537_v35  ;;  %v7395_v49 = vpop.f32.mrb[198].mxu1  ;;  %6524 = vadd.xlane.f32.xlu0 %v6445_v4  ;;  %6526 = vadd.xlane.f32.xlu1 %v6446_v54  ;;  %v6447_v44 = vmul.f32 %v6860_v40, %v5999_v30  ;;  %v6863_v35 = vld [vmem:[%s10947_s5 + $0x1c] ss:$0 sm:$0xff] }
 0x50c   :  { %v5774_v18 = vadd.f32 %v7395_v49, %v10550_v9  ;;  %v5523_v26 = vpop.f32.mrb[199].mxu1  ;;  %v5948_v52 = vadd.f32 %v10655_v23, %v5773_v3 }
 0x50d   :  { %v5946_v51 = vadd.f32 %v10655_v23, %v5771_v36  ;;  %v5772_v41 = vadd.f32 %v5523_v26, %v10540_v7  ;;  %v6449_v7 = vmul.f32 %v6862_v5, %v6001_v61 }
 0x50e   :  { %v5949_v37 = vadd.f32 %v10655_v23, %v5774_v18  ;;  %v6004_v19 = vmax.f32 %v5948_v52, 0.0  ;;  %v6870_v52 = vld [vmem:[%s10947_s5 + $0x23] ss:$0 sm:$0xff] }
 0x50f   :  { %v6002_v29 = vmax.f32 %v5946_v51, 0.0  ;;  %v5947_v9 = vadd.f32 %v10655_v23, %v5772_v41  ;;  %6528 = vadd.xlane.f32.xlu0 %v6447_v44  ;;  %6530 = vadd.xlane.f32.xlu1 %v6448_v59 }
 0x510   :  { %v6005_v2 = vmax.f32 %v5949_v37, 0.0  ;;  %v6452_v31 = vmul.f32 %v6865_v24, %v6004_v19  ;;  %v6872_v19 = vld [vmem:[%s10947_s5 + $0x25] ss:$0 sm:$0xff] }
 0x511   :  { %v6003_v63 = vmax.f32 %v5947_v9, 0.0  ;;  %v7398_v56 = vpop.f32.mrb[200].mxu1  ;;  %v6450_v43 = vmul.f32 %v6863_v35, %v6002_v29 }
 0x512   :  { %v5777_v60 = vadd.f32 %v7398_v56, %v10566_v10  ;;  %v5536_v16 = vpop.f32.mrb[201].mxu1  ;;  %v6453_v6 = vmul.f32 %v6866_v47, %v6005_v2  ;;  %v11229_v56 = vld [vmem:[#allocation12_spill] sm:$0xff] }
 0x513   :  { %v5775_v62 = vadd.f32 %v5536_v16, %v10557_v39  ;;  %v7399_v8 = vpop.f32.mrb[202].mxu1  ;;  %6532 = vadd.xlane.f32.xlu0 %v6449_v7  ;;  %6534 = vadd.xlane.f32.xlu1 %v6450_v43  ;;  %v6451_v12 = vmul.f32 %v6864_v14, %v6003_v63  ;;  %v6867_v39 = vld [vmem:[%s10947_s5 + $0x20] ss:$0 sm:$0xff]  ;;  %v6873_v63 = vld [vmem:[%s10947_s5 + $0x26] ss:$0 sm:$0xff] }
 0x514   :  { %v5952_v34 = vadd.f32 %v10655_v23, %v5777_v60  ;;  %v5778_v58 = vadd.f32 %v7399_v8, %v10569_v21  ;;  %v5539_v10 = vpop.f32.mrb[203].mxu1  ;;  %v11230_v14 = vld [vmem:[#allocation30_spill] sm:$0xff]  ;;  %v11231_v8 = vld [vmem:[#allocation29_spill] sm:$0xff] }
 0x515   :  { %v5950_v22 = vadd.f32 %v10655_v23, %v5775_v62  ;;  %v5776_v50 = vadd.f32 %v5539_v10, %v10560_v55  ;;  %v6874_v10 = vld [vmem:[%s10947_s5 + $0x27] ss:$0 sm:$0xff] }
 0x516   :  { %v6008_v21 = vmax.f32 %v5952_v34, 0.0  ;;  %v5953_v38 = vadd.f32 %v10655_v23, %v5778_v58 }
 0x517   :  { %v6006_v46 = vmax.f32 %v5950_v22, 0.0  ;;  %v5951_v20 = vadd.f32 %v10655_v23, %v5776_v50  ;;  %6536 = vadd.xlane.f32.xlu0 %v6451_v12  ;;  %6538 = vadd.xlane.f32.xlu1 %v6452_v31  ;;  %v6875_v22 = vld [vmem:[%s10947_s5 + $0x28] ss:$0 sm:$0xff] }
 0x518   :  { %v6009_v40 = vmax.f32 %v5953_v38, 0.0  ;;  %v6456_v61 = vmul.f32 %v6869_v48, %v6008_v21  ;;  %v6877_v38 = vld [vmem:[%s10947_s5 + $0x2a] ss:$0 sm:$0xff] }
 0x519   :  { %v6007_v25 = vmax.f32 %v5951_v20, 0.0  ;;  %v7402_v55 = vpop.f32.mrb[204].mxu1  ;;  %v6454_v30 = vmul.f32 %v6867_v39, %v6006_v46 }
 0x51a   :  { %v5781_v4 = vadd.f32 %v7402_v55, %v10582_v0  ;;  %v5552_v54 = vpop.f32.mrb[205].mxu1 }
 0x51b   :  { %v5779_v3 = vadd.f32 %v5552_v54, %v10574_v32  ;;  %v7403_v42 = vpop.f32.mrb[206].mxu1  ;;  %6540 = vadd.xlane.f32.xlu0 %v6453_v6  ;;  %6542 = vadd.xlane.f32.xlu1 %v6454_v30  ;;  %v6455_v59 = vmul.f32 %v6868_v33, %v6007_v25  ;;  %v6871_v32 = vld [vmem:[%s10947_s5 + $0x24] ss:$0 sm:$0xff]  ;;  %v6876_v6 = vld [vmem:[%s10947_s5 + $0x29] ss:$0 sm:$0xff] }
 0x51c   :  { %v5782_v36 = vadd.f32 %v7403_v42, %v10585_v28  ;;  %v5555_v49 = vpop.f32.mrb[207].mxu1  ;;  %v5956_v18 = vadd.f32 %v10655_v23, %v5781_v4 }
 0x51d   :  { %v5954_v26 = vadd.f32 %v10655_v23, %v5779_v3  ;;  %v5780_v0 = vadd.f32 %v5555_v49, %v10577_v1  ;;  %v6457_v1 = vmul.f32 %v6870_v52, %v6009_v40  ;;  %v6878_v49 = vld [vmem:[%s10947_s5 + $0x2b] ss:$0 sm:$0xff] }
 0x51e   :  { %v5957_v41 = vadd.f32 %v10655_v23, %v5782_v36  ;;  %v6012_v44 = vmax.f32 %v5956_v18, 0.0 }
 0x51f   :  { %v6010_v51 = vmax.f32 %v5954_v26, 0.0  ;;  %v5955_v28 = vadd.f32 %v10655_v23, %v5780_v0  ;;  %6544 = vadd.xlane.f32.xlu0 %v6455_v59  ;;  %6546 = vadd.xlane.f32.xlu1 %v6456_v61 }
 0x520   :  { %v6013_v60 = vmax.f32 %v5957_v41, 0.0  ;;  %v6460_v58 = vmul.f32 %v6873_v63, %v6012_v44  ;;  %v6881_v41 = vld [vmem:[%s10947_s5 + $0x2e] ss:$0 sm:$0xff] }
 0x521   :  { %v6011_v5 = vmax.f32 %v5955_v28, 0.0  ;;  %v7406_v35 = vpop.f32.mrb[208].mxu1  ;;  %v6458_v29 = vmul.f32 %v6871_v32, %v6010_v51  ;;  %v6880_v28 = vld [vmem:[%s10947_s5 + $0x2d] ss:$0 sm:$0xff] }
 0x522   :  { %v5785_v9 = vadd.f32 %v7406_v35, %v10598_v53  ;;  %v5568_v37 = vpop.f32.mrb[209].mxu1  ;;  %v6461_v20 = vmul.f32 %v6874_v10, %v6013_v60  ;;  %v6884_v10 = vld [vmem:[%s10947_s5 + $0x31] ss:$0 sm:$0xff] }
 0x523   :  { %v5783_v7 = vadd.f32 %v5568_v37, %v11229_v56  ;;  %v7407_v43 = vpop.f32.mrb[210].mxu1  ;;  %6548 = vadd.xlane.f32.xlu0 %v6457_v1  ;;  %6550 = vadd.xlane.f32.xlu1 %v6458_v29  ;;  %v6459_v34 = vmul.f32 %v6872_v19, %v6011_v5  ;;  %v11232_v37 = vld [vmem:[#allocation31_spill] sm:$0xff] }
 0x524   :  { %v5960_v16 = vadd.f32 %v10655_v23, %v5785_v9  ;;  %v5786_v24 = vadd.f32 %v7407_v43, %v11230_v14  ;;  %v5571_v53 = vpop.f32.mrb[211].mxu1 }
 0x525   :  { %v5958_v62 = vadd.f32 %v10655_v23, %v5783_v7  ;;  %v5784_v2 = vadd.f32 %v5571_v53, %v11231_v8  ;;  %v6882_v7 = vld [vmem:[%s10947_s5 + $0x2f] ss:$0 sm:$0xff]  ;;  %v6885_v8 = vld [vmem:[%s10947_s5 + $0x32] ss:$0 sm:$0xff] }
 0x526   :  { %v6016_v31 = vmax.f32 %v5960_v16, 0.0  ;;  %v5961_v47 = vadd.f32 %v10655_v23, %v5786_v24 }
 0x527   :  { %v6014_v50 = vmax.f32 %v5958_v62, 0.0  ;;  %v5959_v12 = vadd.f32 %v10655_v23, %v5784_v2  ;;  %6552 = vadd.xlane.f32.xlu0 %v6459_v34  ;;  %6554 = vadd.xlane.f32.xlu1 %v6460_v58  ;;  %v11233_v2 = vld [vmem:[#allocation32_spill] sm:$0xff] }
 0x528   :  { %v6017_v4 = vmax.f32 %v5961_v47, 0.0  ;;  %v6464_v3 = vmul.f32 %v6877_v38, %v6016_v31  ;;  %v11235_v47 = vld [vmem:[#allocation17_spill] sm:$0xff] }
 0x529   :  { %v6015_v39 = vmax.f32 %v5959_v12, 0.0  ;;  %v7410_v46 = vpop.f32.mrb[212].mxu1  ;;  %v6462_v21 = vmul.f32 %v6875_v22, %v6014_v50  ;;  %v11234_v22 = vld [vmem:[#allocation13_spill] sm:$0xff] }
 0x52a   :  { %v5789_v25 = vadd.f32 %v7410_v46, %v10614_v57  ;;  %v5584_v55 = vpop.f32.mrb[213].mxu1 }
 0x52b   :  { %v5787_v30 = vadd.f32 %v5584_v55, %v10606_v13  ;;  %v7411_v48 = vpop.f32.mrb[214].mxu1  ;;  %6556 = vadd.xlane.f32.xlu0 %v6461_v20  ;;  %6558 = vadd.xlane.f32.xlu1 %v6462_v21  ;;  %v6463_v36 = vmul.f32 %v6876_v6, %v6015_v39  ;;  %v6879_v13 = vld [vmem:[%s10947_s5 + $0x2c] ss:$0 sm:$0xff] }
 0x52c   :  { %v5790_v54 = vadd.f32 %v7411_v48, %v10617_v45  ;;  %v5587_v33 = vpop.f32.mrb[215].mxu1  ;;  %v5964_v42 = vadd.f32 %v10655_v23, %v5789_v25  ;;  %v11236_v25 = vld [vmem:[#allocation14_spill] sm:$0xff]  ;;  %v6887_v48 = vld [vmem:[%s10947_s5 + $0x34] ss:$0 sm:$0xff] }
 0x52d   :  { %v5962_v40 = vadd.f32 %v10655_v23, %v5787_v30  ;;  %v5788_v57 = vadd.f32 %v5587_v33, %v10609_v15  ;;  %v6465_v15 = vmul.f32 %v6878_v49, %v6017_v4  ;;  %v6886_v30 = vld [vmem:[%s10947_s5 + $0x33] ss:$0 sm:$0xff]  ;;  %v6888_v49 = vld [vmem:[%s10947_s5 + $0x35] ss:$0 sm:$0xff] }
 0x52e   :  { %v5965_v18 = vadd.f32 %v10655_v23, %v5790_v54  ;;  %v6020_v26 = vmax.f32 %v5964_v42, 0.0 }
 0x52f   :  { %v6018_v61 = vmax.f32 %v5962_v40, 0.0  ;;  %v5963_v45 = vadd.f32 %v10655_v23, %v5788_v57  ;;  %6560 = vadd.xlane.f32.xlu0 %v6463_v36  ;;  %6562 = vadd.xlane.f32.xlu1 %v6464_v3  ;;  %v6889_v36 = vld [vmem:[%s10947_s5 + $0x36] ss:$0 sm:$0xff] }
 0x530   :  { %v6021_v35 = vmax.f32 %v5965_v18, 0.0  ;;  %v6468_v56 = vmul.f32 %v6881_v41, %v6020_v26  ;;  %v6890_v18 = vld [vmem:[%s10947_s5 + $0x37] ss:$0 sm:$0xff]  ;;  %v12_v26 = vstv %s10948_s6 }
 0x531   :  { %v6019_v0 = vmax.f32 %v5963_v45, 0.0  ;;  %v7414_v59 = vpop.f32.mrb[216].mxu1  ;;  %v6466_v52 = vmul.f32 %v6879_v13, %v6018_v61  ;;  %13 = vst [vmem:[#allocation4] sm:$0x1] %v12_v26 }
 0x532   :  { %v5793_v32 = vadd.f32 %v7414_v59, %v10630_v11  ;;  %v5600_v51 = vpop.f32.mrb[217].mxu1  ;;  %v6469_v53 = vmul.f32 %v6882_v7, %v6021_v35 }
 0x533   :  { %v5791_v44 = vadd.f32 %v5600_v51, %v10622_v17  ;;  %v7415_v5 = vpop.f32.mrb[218].mxu1  ;;  %6564 = vadd.xlane.f32.xlu0 %v6465_v15  ;;  %6566 = vadd.xlane.f32.xlu1 %v6466_v52  ;;  %v6467_v63 = vmul.f32 %v6880_v28, %v6019_v0  ;;  %v6883_v17 = vld [vmem:[%s10947_s5 + $0x30] ss:$0 sm:$0xff] }
 0x534   :  { %v5968_v1 = vadd.f32 %v10655_v23, %v5793_v32  ;;  %v5794_v29 = vadd.f32 %v7415_v5, %v10633_v27  ;;  %v5603_v11 = vpop.f32.mrb[219].mxu1 }
 0x535   :  { %v5966_v9 = vadd.f32 %v10655_v23, %v5791_v44  ;;  %v5792_v19 = vadd.f32 %v5603_v11, %v11232_v37 }
 0x536   :  { %v6024_v27 = vmax.f32 %v5968_v1, 0.0  ;;  %v5969_v16 = vadd.f32 %v10655_v23, %v5794_v29 }
 0x537   :  { %v6022_v43 = vmax.f32 %v5966_v9, 0.0  ;;  %v5967_v60 = vadd.f32 %v10655_v23, %v5792_v19  ;;  %6568 = vadd.xlane.f32.xlu0 %v6467_v63  ;;  %6570 = vadd.xlane.f32.xlu1 %v6468_v56 }
 0x538   :  { %v6025_v31 = vmax.f32 %v5969_v16, 0.0  ;;  %v6472_v20 = vmul.f32 %v6885_v8, %v6024_v27 }
 0x539   :  { %v6023_v14 = vmax.f32 %v5967_v60, 0.0  ;;  %v7418_v24 = vpop.f32.mrb[220].mxu1  ;;  %v6470_v62 = vmul.f32 %v6883_v17, %v6022_v43 }
 0x53a   :  { %v5797_v34 = vadd.f32 %v7418_v24, %v11233_v2  ;;  %v5616_v58 = vpop.f32.mrb[221].mxu1  ;;  %v6473_v33 = vmul.f32 %v6886_v30, %v6025_v31 }
 0x53b   :  { %v5795_v50 = vadd.f32 %v5616_v58, %v11234_v22  ;;  %v7419_v12 = vpop.f32.mrb[222].mxu1  ;;  %6572 = vadd.xlane.f32.xlu0 %v6469_v53  ;;  %6574 = vadd.xlane.f32.xlu1 %v6470_v62  ;;  %v6471_v6 = vmul.f32 %v6884_v10, %v6023_v14 }
 0x53c   :  { %v5798_v39 = vadd.f32 %v7419_v12, %v11235_v47  ;;  %v5619_v46 = vpop.f32.mrb[223].mxu1  ;;  %v5972_v21 = vadd.f32 %v10655_v23, %v5797_v34 }
 0x53d   :  { %v5970_v38 = vadd.f32 %v10655_v23, %v5795_v50  ;;  %v5796_v55 = vadd.f32 %v5619_v46, %v11236_v25 }
 0x53e   :  { %v6028_v3 = vmax.f32 %v5972_v21, 0.0  ;;  %v5973_v42 = vadd.f32 %v10655_v23, %v5798_v39 }
 0x53f   :  { %v6026_v4 = vmax.f32 %v5970_v38, 0.0  ;;  %v5971_v54 = vadd.f32 %v10655_v23, %v5796_v55  ;;  %6576 = vadd.xlane.f32.xlu0 %v6471_v6  ;;  %6578 = vadd.xlane.f32.xlu1 %v6472_v20 }
 0x540   :  { %v6029_v13 = vmax.f32 %v5973_v42, 0.0  ;;  %v6476_v61 = vmul.f32 %v6889_v36, %v6028_v3 }
 0x541   :  { %v6027_v40 = vmax.f32 %v5971_v54, 0.0  ;;  %v6474_v57 = vmul.f32 %v6887_v48, %v6026_v4 }
 0x542   :  { %v6477_v23 = vmul.f32 %v6890_v18, %v6029_v13 }
 0x543   :  { %6580 = vadd.xlane.f32.xlu0 %v6473_v33  ;;  %6582 = vadd.xlane.f32.xlu1 %v6474_v57  ;;  %v6475_v45 = vmul.f32 %v6888_v49, %v6027_v40 }
 0x547   :  { %6586 = vadd.xlane.f32.xlu1 %v6476_v61  ;;  %6584 = vadd.xlane.f32.xlu0 %v6475_v45 }
 0x54b   :  { %6588 = vadd.xlane.f32.xlu0 %v6477_v23 }
 0x568   :  { %v6479_v0 = vpop.xlane.xlu0 %6478 }
 0x56a   :  { %v6481_v59 = vpop.xlane.xlu1 %6480 }
 0x56b   :  { %v6590_v15 = vadd.f32 %v6481_v59, %v6479_v0 }
 0x56c   :  { %v6483_v52 = vpop.xlane.xlu0 %6482 }
 0x56d   :  { %v6591_v32 = vadd.f32 %v6590_v15, %v6483_v52 }
 0x570   :  { %v6485_v51 = vpop.xlane.xlu0 %6484  ;;  %v6487_v28 = vpop.xlane.xlu1 %6486 }
 0x571   :  { %v6592_v41 = vadd.f32 %v6591_v32, %v6485_v51 }
 0x573   :  { %v6593_v44 = vadd.f32 %v6592_v41, %v6487_v28 }
 0x574   :  { %v6489_v5 = vpop.xlane.xlu0 %6488  ;;  %v6491_v35 = vpop.xlane.xlu1 %6490 }
 0x575   :  { %v6594_v1 = vadd.f32 %v6593_v44, %v6489_v5 }
 0x577   :  { %v6595_v29 = vadd.f32 %v6594_v1, %v6491_v35 }
 0x578   :  { %v6493_v11 = vpop.xlane.xlu0 %6492  ;;  %v6495_v9 = vpop.xlane.xlu1 %6494 }
 0x579   :  { %v6596_v37 = vadd.f32 %v6595_v29, %v6493_v11 }
 0x57b   :  { %v6597_v19 = vadd.f32 %v6596_v37, %v6495_v9 }
 0x57c   :  { %v6497_v63 = vpop.xlane.xlu0 %6496  ;;  %v6499_v56 = vpop.xlane.xlu1 %6498 }
 0x57d   :  { %v6598_v7 = vadd.f32 %v6597_v19, %v6497_v63 }
 0x57f   :  { %v6599_v17 = vadd.f32 %v6598_v7, %v6499_v56 }
 0x580   :  { %v6501_v43 = vpop.xlane.xlu0 %6500  ;;  %v6503_v60 = vpop.xlane.xlu1 %6502 }
 0x581   :  { %v6600_v27 = vadd.f32 %v6599_v17, %v6501_v43 }
 0x583   :  { %v6601_v16 = vadd.f32 %v6600_v27, %v6503_v60 }
 0x584   :  { %v6505_v14 = vpop.xlane.xlu0 %6504  ;;  %v6507_v24 = vpop.xlane.xlu1 %6506 }
 0x585   :  { %v6602_v53 = vadd.f32 %v6601_v16, %v6505_v14 }
 0x587   :  { %v6603_v62 = vadd.f32 %v6602_v53, %v6507_v24 }
 0x588   :  { %v6509_v8 = vpop.xlane.xlu0 %6508  ;;  %v6511_v2 = vpop.xlane.xlu1 %6510 }
 0x589   :  { %v6604_v34 = vadd.f32 %v6603_v62, %v6509_v8 }
 0x58b   :  { %v6605_v58 = vadd.f32 %v6604_v34, %v6511_v2 }
 0x58c   :  { %v6513_v10 = vpop.xlane.xlu0 %6512  ;;  %v6515_v22 = vpop.xlane.xlu1 %6514 }
 0x58d   :  { %v6606_v50 = vadd.f32 %v6605_v58, %v6513_v10 }
 0x58f   :  { %v6607_v12 = vadd.f32 %v6606_v50, %v6515_v22 }
 0x590   :  { %v6517_v31 = vpop.xlane.xlu0 %6516  ;;  %v6519_v47 = vpop.xlane.xlu1 %6518 }
 0x591   :  { %v6608_v39 = vadd.f32 %v6607_v12, %v6517_v31 }
 0x593   :  { %v6609_v46 = vadd.f32 %v6608_v39, %v6519_v47 }
 0x594   :  { %v6521_v20 = vpop.xlane.xlu0 %6520  ;;  %v6523_v21 = vpop.xlane.xlu1 %6522 }
 0x595   :  { %v6610_v38 = vadd.f32 %v6609_v46, %v6521_v20 }
 0x597   :  { %v6611_v25 = vadd.f32 %v6610_v38, %v6523_v21 }
 0x598   :  { %v6525_v55 = vpop.xlane.xlu0 %6524  ;;  %v6527_v6 = vpop.xlane.xlu1 %6526 }
 0x599   :  { %v6612_v30 = vadd.f32 %v6611_v25, %v6525_v55  ;;  %v6891_v55 = vld [vmem:[#allocation4] ss:$0 sm:$0xff] }
 0x59b   :  { %v6613_v48 = vadd.f32 %v6612_v30, %v6527_v6 }
 0x59c   :  { %v6529_v4 = vpop.xlane.xlu0 %6528  ;;  %v6531_v54 = vpop.xlane.xlu1 %6530 }
 0x59d   :  { %v6614_v33 = vadd.f32 %v6613_v48, %v6529_v4 }
 0x59f   :  { %v6615_v3 = vadd.f32 %v6614_v33, %v6531_v54 }
 0x5a0   :  { %v6533_v42 = vpop.xlane.xlu0 %6532  ;;  %v6535_v40 = vpop.xlane.xlu1 %6534 }
 0x5a1   :  { %v6616_v57 = vadd.f32 %v6615_v3, %v6533_v42 }
 0x5a3   :  { %v6617_v36 = vadd.f32 %v6616_v57, %v6535_v40 }
 0x5a4   :  { %v6537_v49 = vpop.xlane.xlu0 %6536  ;;  %v6539_v13 = vpop.xlane.xlu1 %6538 }
 0x5a5   :  { %v6618_v61 = vadd.f32 %v6617_v36, %v6537_v49 }
 0x5a7   :  { %v6619_v45 = vadd.f32 %v6618_v61, %v6539_v13 }
 0x5a8   :  { %v6541_v18 = vpop.xlane.xlu0 %6540  ;;  %v6543_v23 = vpop.xlane.xlu1 %6542 }
 0x5a9   :  { %v6620_v26 = vadd.f32 %v6619_v45, %v6541_v18 }
 0x5ab   :  { %v6621_v0 = vadd.f32 %v6620_v26, %v6543_v23 }
 0x5ac   :  { %v6545_v59 = vpop.xlane.xlu0 %6544  ;;  %v6547_v15 = vpop.xlane.xlu1 %6546 }
 0x5ad   :  { %v6622_v52 = vadd.f32 %v6621_v0, %v6545_v59 }
 0x5af   :  { %v6623_v32 = vadd.f32 %v6622_v52, %v6547_v15 }
 0x5b0   :  { %v6549_v51 = vpop.xlane.xlu0 %6548  ;;  %v6551_v28 = vpop.xlane.xlu1 %6550 }
 0x5b1   :  { %v6624_v41 = vadd.f32 %v6623_v32, %v6549_v51 }
 0x5b3   :  { %v6625_v44 = vadd.f32 %v6624_v41, %v6551_v28 }
 0x5b4   :  { %v6553_v5 = vpop.xlane.xlu0 %6552  ;;  %v6555_v35 = vpop.xlane.xlu1 %6554 }
 0x5b5   :  { %v6626_v1 = vadd.f32 %v6625_v44, %v6553_v5 }
 0x5b7   :  { %v6627_v29 = vadd.f32 %v6626_v1, %v6555_v35 }
 0x5b8   :  { %v6557_v11 = vpop.xlane.xlu0 %6556  ;;  %v6559_v9 = vpop.xlane.xlu1 %6558 }
 0x5b9   :  { %v6628_v37 = vadd.f32 %v6627_v29, %v6557_v11 }
 0x5bb   :  { %v6629_v19 = vadd.f32 %v6628_v37, %v6559_v9 }
 0x5bc   :  { %v6561_v63 = vpop.xlane.xlu0 %6560  ;;  %v6563_v56 = vpop.xlane.xlu1 %6562 }
 0x5bd   :  { %v6630_v7 = vadd.f32 %v6629_v19, %v6561_v63 }
 0x5bf   :  { %v6631_v17 = vadd.f32 %v6630_v7, %v6563_v56 }
 0x5c0   :  { %v6565_v43 = vpop.xlane.xlu0 %6564  ;;  %v6567_v60 = vpop.xlane.xlu1 %6566 }
 0x5c1   :  { %v6632_v27 = vadd.f32 %v6631_v17, %v6565_v43 }
 0x5c3   :  { %v6633_v16 = vadd.f32 %v6632_v27, %v6567_v60 }
 0x5c4   :  { %v6569_v14 = vpop.xlane.xlu0 %6568  ;;  %v6571_v24 = vpop.xlane.xlu1 %6570 }
 0x5c5   :  { %v6634_v53 = vadd.f32 %v6633_v16, %v6569_v14 }
 0x5c7   :  { %v6635_v62 = vadd.f32 %v6634_v53, %v6571_v24 }
 0x5c8   :  { %v6573_v8 = vpop.xlane.xlu0 %6572  ;;  %v6575_v2 = vpop.xlane.xlu1 %6574 }
 0x5c9   :  { %v6636_v34 = vadd.f32 %v6635_v62, %v6573_v8 }
 0x5cb   :  { %v6637_v58 = vadd.f32 %v6636_v34, %v6575_v2 }
 0x5cc   :  { %v6577_v10 = vpop.xlane.xlu0 %6576  ;;  %v6579_v22 = vpop.xlane.xlu1 %6578 }
 0x5cd   :  { %v6638_v50 = vadd.f32 %v6637_v58, %v6577_v10 }
 0x5cf   :  { %v6639_v12 = vadd.f32 %v6638_v50, %v6579_v22 }
 0x5d0   :  { %v6581_v31 = vpop.xlane.xlu0 %6580  ;;  %v6583_v47 = vpop.xlane.xlu1 %6582 }
 0x5d1   :  { %v6640_v39 = vadd.f32 %v6639_v12, %v6581_v31 }
 0x5d3   :  { %v6641_v46 = vadd.f32 %v6640_v39, %v6583_v47 }
 0x5d4   :  { %v6585_v20 = vpop.xlane.xlu0 %6584  ;;  %v6587_v38 = vpop.xlane.xlu1 %6586 }
 0x5d5   :  { %v6642_v21 = vadd.f32 %v6641_v46, %v6585_v20 }
 0x5d7   :  { %v6643_v25 = vadd.f32 %v6642_v21, %v6587_v38 }
 0x5d8   :  { %v6589_v6 = vpop.xlane.xlu0 %6588 }
 0x5d9   :  { %v6644_v30 = vadd.f32 %v6643_v25, %v6589_v6 }
 0x5db   :  { %v6652_v48 = vadd.f32 %v6891_v55, %v6644_v30 }
 0x5dd   :  { %v6653_v4 = vsub.f32 0.0, %v6652_v48 }
 0x5df   :  { %v6654_v54 = vmul.f32 1.442695, %v6653_v4 }
 0x5e1   :  { %7949 = vpow2.f32 %v6654_v54 }
 0x5eb   :  { %v7950_v33 = vpop.eup %7949 }
 0x5ec   :  { %v6656_v3 = vadd.f32 1.0, %v7950_v33 }
 0x5ee   :  { %7951 = vrcp.f32 %v6656_v3 }
 0x5f8   :  { %v7952_v42 = vpop.eup %7951 }
 0x5f9   :  { %6660 = vst.msk [vmem:[%s10949_s7] sm:$0xff] %vm6659_vm2, %v7952_v42 }

</bundles_post_ra>
